<compile_context>
chip_gen: v7x
topology: tpu7x:2x2x1
jax: 0.10.0
libtpu: 0.0.40
codegen_flags: <defaults>
</compile_context>

<pallas_src>
import functools

import numpy as np
import jax
import jax.numpy as jnp
from jax.experimental import pallas as pl
from jax.experimental.pallas import tpu as pltpu

N1D = 64       # Lut1D knots
D3 = 17        # Lut3D lattice size
TILE_P = 2048  # pixels per grid step (lane axis)


def lut_kernel(x_ref, sel_ref, l1bd_ref, l2_ref, jcol_ref, kcol_ref, icol_ref,
               o_ref, *, d3, d3p):
    # x_ref:    (8, P)          rows: [r, g, b, 1, 0, 0, 0, 0], pixels on lanes
    # sel_ref:  (3*n1d, 8)      one-hot affine: xb[r] = (n1d-1)*x[ch(r)] - knot(r)   (f32)
    # l1bd_ref: (3, 3*n1d)      block-diag 1D LUT (row c holds lut1d[c])             (mxu dtype)
    # l2_ref:   (3*d3p, d3*d3)  3D LUT, rows=(out_ch, r-knot padded), cols=(g,b)     (mxu dtype)
    # jcol_ref: (d3*d3, 1)      g-knot index per (g,b) lattice row                   (f32)
    # kcol_ref: (d3*d3, 1)      b-knot index per (g,b) lattice row                   (f32)
    # icol_ref: (d3p, 1)        r-knot index (padded rows give zero hat weight)      (f32)
    # o_ref:    (3, P)

    # ---- Lut1D: single (192,P) hat-weight chain, channel select on the MXU ----
    xaug = jnp.clip(x_ref[...], 0.0, 1.0)                              # (8, P)
    xb = jnp.dot(sel_ref[...], xaug,
                 preferred_element_type=jnp.float32)                   # (3*n1d, P)
    w1 = jnp.maximum(0.0, 1.0 - jnp.abs(xb))                           # (3*n1d, P)
    y = jnp.dot(l1bd_ref[...], w1.astype(l1bd_ref.dtype),
                preferred_element_type=jnp.float32)                    # (3, P)
    y = jnp.clip(y, 0.0, 1.0) * (d3 - 1)            # torch.clamp(x,0,1) -> lattice coords
    tr, tg, tb = y[0:1, :], y[1:2, :], y[2:3, :]                       # (1, P) each

    # ---- Lut3D: factorized trilinear interpolation ----
    # (g,b) hat weights against the prefetched J/K knot columns (no iota/floor work).
    wjk = (jnp.maximum(0.0, 1.0 - jnp.abs(tg - jcol_ref[...])) *
           jnp.maximum(0.0, 1.0 - jnp.abs(tb - kcol_ref[...])))        # (d3*d3, P)

    # MXU contraction over the (g, b) axes.
    a = jnp.dot(l2_ref[...], wjk.astype(l2_ref.dtype),
                preferred_element_type=jnp.float32)                    # (3*d3p, P)

    # Remaining contraction over the r axis (XLU sublane reduce; padded rows are
    # exact zeros both in the LUT and in the hat weights).  Write rows directly.
    wi = jnp.maximum(0.0, 1.0 - jnp.abs(tr - icol_ref[...]))           # (d3p, P)
    for c in range(3):
        o_ref[c, :] = jnp.sum(a[c * d3p:(c + 1) * d3p, :] * wi,
                              axis=0).astype(o_ref.dtype)


def mymodel_forward(x_nchw, lut1d, lut3d, *, tile_p=TILE_P, mxu_dtype=jnp.bfloat16):
    n, c, h, w = x_nchw.shape
    assert c == 3, "LUT model operates on RGB (3-channel) images"
    n1d = lut1d.shape[1]
    d3 = lut3d.shape[1]
    d3p = ((d3 + 7) // 8) * 8          # pad r-knot axis to a sublane multiple

    # Flatten batch into the pixel (lane) axis: no per-image tile padding.
    total = n * h * w
    tile = max(128, min(tile_p, ((total + 127) // 128) * 128))
    total_pad = ((total + tile - 1) // tile) * tile

    x3 = jnp.transpose(x_nchw.reshape(n, 3, h * w).astype(jnp.float32),
                       (1, 0, 2)).reshape(3, total)
    x3 = jnp.pad(x3, ((0, 0), (0, total_pad - total)))
    x8 = jnp.concatenate([x3,
                          jnp.ones((1, total_pad), jnp.float32),
                          jnp.zeros((4, total_pad), jnp.float32)], axis=0)   # (8, total_pad)

    # One-hot affine channel-select / knot-offset matrix (kept f32 for coord precision).
    sel_np = np.zeros((3 * n1d, 8), np.float32)
    for ci in range(3):
        sel_np[ci * n1d:(ci + 1) * n1d, ci] = float(n1d - 1)
        sel_np[ci * n1d:(ci + 1) * n1d, 3] = -np.arange(n1d, dtype=np.float32)
    sel = jnp.asarray(sel_np)

    # Block-diagonal 1D LUT: row c holds lut1d[c] in columns [c*n1d, (c+1)*n1d).
    l1 = lut1d.astype(jnp.float32)
    l1bd = jnp.zeros((3, 3 * n1d), jnp.float32)
    for ci in range(3):
        l1bd = l1bd.at[ci, ci * n1d:(ci + 1) * n1d].set(l1[ci])
    l1bd = l1bd.astype(mxu_dtype)

    # 3D LUT: rows = (out_channel, r-knot padded to d3p), cols = (g,b) lattice j*d3 + k.
    l2 = lut3d.astype(jnp.float32).reshape(3, d3, d3 * d3)
    l2 = jnp.pad(l2, ((0, 0), (0, d3p - d3), (0, 0))).reshape(3 * d3p, d3 * d3)
    l2 = l2.astype(mxu_dtype)

    # Pixel-independent knot-index columns (computed once host-side, DMA'd once).
    jk = jnp.arange(d3 * d3, dtype=jnp.int32)
    jcol = (jk // d3).astype(jnp.float32).reshape(d3 * d3, 1)
    kcol = (jk % d3).astype(jnp.float32).reshape(d3 * d3, 1)
    icol = jnp.arange(d3p, dtype=jnp.float32).reshape(d3p, 1)

    grid = (total_pad // tile,)
    cost = pl.CostEstimate(
        flops=int(total_pad * (2 * 3 * n1d * 8        # channel-select matmul
                               + 2 * 3 * 3 * n1d      # 1D LUT matmul
                               + 2 * 3 * d3p * d3 * d3  # (g,b) MXU contraction
                               + 3 * 3 * n1d          # w1 hat weights
                               + 9 * d3 * d3          # wjk hat weights
                               + 4 * d3p              # wi hat weights
                               + 2 * 3 * d3p)),       # final r contraction
        transcendentals=0,
        bytes_accessed=int(total_pad * (8 + 3) * 4
                           + (sel.size + 3 * 3 * n1d + 3 * d3p * d3 * d3) * 4),
    )

    out = pl.pallas_call(
        functools.partial(lut_kernel, d3=d3, d3p=d3p),
        out_shape=jax.ShapeDtypeStruct((3, total_pad), jnp.float32),
        grid_spec=pltpu.PrefetchScalarGridSpec(
            num_scalar_prefetch=0,
            grid=grid,
            in_specs=[
                pl.BlockSpec((8, tile), lambda i: (0, i)),                 # pixel tile
                pl.BlockSpec((3 * n1d, 8), lambda i: (0, 0)),              # sel (full)
                pl.BlockSpec((3, 3 * n1d), lambda i: (0, 0)),              # 1D LUT (full)
                pl.BlockSpec((3 * d3p, d3 * d3), lambda i: (0, 0)),        # 3D LUT (full)
                pl.BlockSpec((d3 * d3, 1), lambda i: (0, 0)),              # J column
                pl.BlockSpec((d3 * d3, 1), lambda i: (0, 0)),              # K column
                pl.BlockSpec((d3p, 1), lambda i: (0, 0)),                  # r-knot column
            ],
            out_specs=pl.BlockSpec((3, tile), lambda i: (0, i)),
        ),
        compiler_params=pltpu.CompilerParams(
            dimension_semantics=("parallel",),
            vmem_limit_bytes=32 * 1024 * 1024,
        ),
        cost_estimate=cost,
    )(x8, sel, l1bd, l2, jcol, kcol, icol)

    out = out[:, :total].reshape(3, n, h * w)
    return jnp.transpose(out, (1, 0, 2)).reshape(n, 3, h, w)


# ---------------- pure-JAX reference (gather + lerp) for validation ----------------
def ref_forward(x_nchw, lut1d, lut3d):
    n1d = lut1d.shape[1]
    d3 = lut3d.shape[1]
    x = jnp.transpose(x_nchw, (0, 2, 3, 1))                        # NHWC

    t = jnp.clip(x, 0.0, 1.0) * (n1d - 1)
    i0 = jnp.clip(jnp.floor(t), 0, n1d - 2).astype(jnp.int32)
    f = t - i0
    y = jnp.stack(
        [lut1d[c, i0[..., c]] * (1 - f[..., c]) + lut1d[c, i0[..., c] + 1] * f[..., c]
         for c in range(3)], axis=-1)
    y = jnp.clip(y, 0.0, 1.0)

    t3 = y * (d3 - 1)
    i3 = jnp.clip(jnp.floor(t3), 0, d3 - 2).astype(jnp.int32)
    f3 = t3 - i3
    r0, g0, b0 = i3[..., 0], i3[..., 1], i3[..., 2]
    fr, fg, fb = f3[..., 0], f3[..., 1], f3[..., 2]
    outs = []
    for c in range(3):
        L = lut3d[c]
        c00 = L[r0, g0, b0] * (1 - fr) + L[r0 + 1, g0, b0] * fr
        c10 = L[r0, g0 + 1, b0] * (1 - fr) + L[r0 + 1, g0 + 1, b0] * fr
        c01 = L[r0, g0, b0 + 1] * (1 - fr) + L[r0 + 1, g0, b0 + 1] * fr
        c11 = L[r0, g0 + 1, b0 + 1] * (1 - fr) + L[r0 + 1, g0 + 1, b0 + 1] * fr
        c0 = c00 * (1 - fg) + c10 * fg
        c1 = c01 * (1 - fg) + c11 * fg
        outs.append(c0 * (1 - fb) + c1 * fb)
    out = jnp.stack(outs, axis=-1)
    return jnp.transpose(out, (0, 3, 1, 2))


if __name__ == "__main__":
    key = jax.random.PRNGKey(0)
    kx, k1, k3 = jax.random.split(key, 3)

    # Small input: batch=2, 3 channels (RGB), 16x16 spatial, values in [0,1]
    x = jax.random.uniform(kx, (2, 3, 16, 16), dtype=jnp.float32)

    # Deterministic parameters: identity LUTs + small perturbation
    base1d = jnp.linspace(0.0, 1.0, N1D)
    lut1d = jnp.tile(base1d[None, :], (3, 1)) + 0.01 * jax.random.normal(k1, (3, N1D))

    coords = jnp.linspace(0.0, 1.0, D3)
    gi, gj, gk = jnp.meshgrid(coords, coords, coords, indexing="ij")
    lut3d = jnp.stack([gi, gj, gk]) + 0.01 * jax.random.normal(k3, (3, D3, D3, D3))

    ref = jax.block_until_ready(ref_forward(x, lut1d, lut3d))

    # Strict semantic check: f32 MXU operands (exact hat-weight interpolation).
    out_f32 = jax.block_until_ready(
        mymodel_forward(x, lut1d, lut3d, mxu_dtype=jnp.float32))
    assert out_f32.shape == x.shape and out_f32.dtype == jnp.float32
    assert jnp.allclose(out_f32, ref, atol=1e-4, rtol=1e-4), \
        f"max err {jnp.max(jnp.abs(out_f32 - ref))}"

    # Default fast path: bf16 MXU operands with f32 accumulation (looser tolerance,
    # per review — acceptable for 8-bit imaging LUTs).
    out_bf16 = jax.block_until_ready(mymodel_forward(x, lut1d, lut3d))
    assert out_bf16.shape == x.shape and out_bf16.dtype == jnp.float32
    assert jnp.allclose(out_bf16, ref, atol=3e-2), \
        f"max err (bf16) {jnp.max(jnp.abs(out_bf16 - ref))}"

    print("KERNEL_OK")
</pallas_src>

<mosaic_0001>
module attributes {stable_mosaic.version = 11 : i64} {
  func.func @lut_kernel(%arg0: i32, %arg1: memref<8x512xf32, #tpu.memory_space<vmem>>, %arg2: memref<192x8xf32, #tpu.memory_space<vmem>>, %arg3: memref<3x192xf32, #tpu.memory_space<vmem>>, %arg4: memref<72x289xf32, #tpu.memory_space<vmem>>, %arg5: memref<289x1xf32, #tpu.memory_space<vmem>>, %arg6: memref<289x1xf32, #tpu.memory_space<vmem>>, %arg7: memref<24x1xf32, #tpu.memory_space<vmem>>, %arg8: memref<3x512xf32, #tpu.memory_space<vmem>>) attributes {dimension_semantics = [#tpu.dimension_semantics<parallel>], iteration_bounds = array<i64: 1>, scalar_prefetch = 0 : i64, scratch_operands = 0 : i64, tpu.core_type = #tpu.core_type<tc>, window_params = [{transform_indices = @transform_0, window_bounds = array<i64: 8, 512>}, {pipeline_mode = #tpu.pipeline_mode<synchronous>, transform_indices = @transform_1, window_bounds = array<i64: 192, 8>}, {pipeline_mode = #tpu.pipeline_mode<synchronous>, transform_indices = @transform_2, window_bounds = array<i64: 3, 192>}, {pipeline_mode = #tpu.pipeline_mode<synchronous>, transform_indices = @transform_3, window_bounds = array<i64: 72, 289>}, {pipeline_mode = #tpu.pipeline_mode<synchronous>, transform_indices = @transform_4, window_bounds = array<i64: 289, 1>}, {pipeline_mode = #tpu.pipeline_mode<synchronous>, transform_indices = @transform_5, window_bounds = array<i64: 289, 1>}, {pipeline_mode = #tpu.pipeline_mode<synchronous>, transform_indices = @transform_6, window_bounds = array<i64: 24, 1>}, {transform_indices = @transform_7, window_bounds = array<i64: 3, 512>}]} {
    %c0 = arith.constant 0 : index
    %c0_0 = arith.constant 0 : index
    %0 = vector.load %arg1[%c0, %c0_0] : memref<8x512xf32, #tpu.memory_space<vmem>>, vector<8x512xf32>
    %cst = arith.constant 0.000000e+00 : f32
    %cst_1 = arith.constant 1.000000e+00 : f32
    %1 = vector.broadcast %cst : f32 to vector<8x512xf32>
    %2 = arith.maximumf %1, %0 : vector<8x512xf32>
    %3 = vector.broadcast %cst_1 : f32 to vector<8x512xf32>
    %4 = arith.minimumf %3, %2 : vector<8x512xf32>
    %c0_2 = arith.constant 0 : index
    %c0_3 = arith.constant 0 : index
    %5 = vector.load %arg2[%c0_2, %c0_3] : memref<192x8xf32, #tpu.memory_space<vmem>>, vector<192x8xf32>
    %cst_4 = arith.constant dense<0.000000e+00> : vector<192x512xf32>
    %6 = tpu.matmul %5, %4, %cst_4 {dimension_numbers = #tpu.dot_dimension_numbers<[1], [0], [0], [1], [0, 0, 1, 1], [], []>} : vector<192x8xf32>, vector<8x512xf32>, vector<192x512xf32> -> vector<192x512xf32>
    %7 = math.absf %6 : vector<192x512xf32>
    %cst_5 = arith.constant 1.000000e+00 : f32
    %8 = vector.broadcast %cst_5 : f32 to vector<192x512xf32>
    %9 = arith.subf %8, %7 : vector<192x512xf32>
    %cst_6 = arith.constant 0.000000e+00 : f32
    %10 = vector.broadcast %cst_6 : f32 to vector<192x512xf32>
    %11 = arith.maximumf %10, %9 : vector<192x512xf32>
    %c0_7 = arith.constant 0 : index
    %c0_8 = arith.constant 0 : index
    %12 = vector.load %arg3[%c0_7, %c0_8] : memref<3x192xf32, #tpu.memory_space<vmem>>, vector<3x192xf32>
    %cst_9 = arith.constant dense<0.000000e+00> : vector<3x512xf32>
    %13 = tpu.matmul %12, %11, %cst_9 {dimension_numbers = #tpu.dot_dimension_numbers<[1], [0], [0], [1], [0, 0, 1, 1], [], []>} : vector<3x192xf32>, vector<192x512xf32>, vector<3x512xf32> -> vector<3x512xf32>
    %cst_10 = arith.constant 0.000000e+00 : f32
    %cst_11 = arith.constant 1.000000e+00 : f32
    %14 = vector.broadcast %cst_10 : f32 to vector<3x512xf32>
    %15 = arith.maximumf %14, %13 : vector<3x512xf32>
    %16 = vector.broadcast %cst_11 : f32 to vector<3x512xf32>
    %17 = arith.minimumf %16, %15 : vector<3x512xf32>
    %cst_12 = arith.constant 1.600000e+01 : f32
    %18 = vector.broadcast %cst_12 : f32 to vector<3x512xf32>
    %19 = arith.mulf %17, %18 : vector<3x512xf32>
    %20 = vector.extract_strided_slice %19 {offsets = [0, 0], sizes = [1, 512], strides = [1, 1]} : vector<3x512xf32> to vector<1x512xf32>
    %21 = vector.extract_strided_slice %19 {offsets = [1, 0], sizes = [1, 512], strides = [1, 1]} : vector<3x512xf32> to vector<1x512xf32>
    %22 = vector.extract_strided_slice %19 {offsets = [2, 0], sizes = [1, 512], strides = [1, 1]} : vector<3x512xf32> to vector<1x512xf32>
    %c0_13 = arith.constant 0 : index
    %c0_14 = arith.constant 0 : index
    %23 = vector.load %arg5[%c0_13, %c0_14] : memref<289x1xf32, #tpu.memory_space<vmem>>, vector<289x1xf32>
    %24 = vector.broadcast %21 : vector<1x512xf32> to vector<289x512xf32>
    %25 = vector.broadcast %23 : vector<289x1xf32> to vector<289x512xf32>
    %26 = arith.subf %24, %25 : vector<289x512xf32>
    %27 = math.absf %26 : vector<289x512xf32>
    %cst_15 = arith.constant 1.000000e+00 : f32
    %28 = vector.broadcast %cst_15 : f32 to vector<289x512xf32>
    %29 = arith.subf %28, %27 : vector<289x512xf32>
    %cst_16 = arith.constant 0.000000e+00 : f32
    %30 = vector.broadcast %cst_16 : f32 to vector<289x512xf32>
    %31 = arith.maximumf %30, %29 : vector<289x512xf32>
    %c0_17 = arith.constant 0 : index
    %c0_18 = arith.constant 0 : index
    %32 = vector.load %arg6[%c0_17, %c0_18] : memref<289x1xf32, #tpu.memory_space<vmem>>, vector<289x1xf32>
    %33 = vector.broadcast %22 : vector<1x512xf32> to vector<289x512xf32>
    %34 = vector.broadcast %32 : vector<289x1xf32> to vector<289x512xf32>
    %35 = arith.subf %33, %34 : vector<289x512xf32>
    %36 = math.absf %35 : vector<289x512xf32>
    %cst_19 = arith.constant 1.000000e+00 : f32
    %37 = vector.broadcast %cst_19 : f32 to vector<289x512xf32>
    %38 = arith.subf %37, %36 : vector<289x512xf32>
    %cst_20 = arith.constant 0.000000e+00 : f32
    %39 = vector.broadcast %cst_20 : f32 to vector<289x512xf32>
    %40 = arith.maximumf %39, %38 : vector<289x512xf32>
    %41 = arith.mulf %31, %40 : vector<289x512xf32>
    %c0_21 = arith.constant 0 : index
    %c0_22 = arith.constant 0 : index
    %42 = vector.load %arg4[%c0_21, %c0_22] : memref<72x289xf32, #tpu.memory_space<vmem>>, vector<72x289xf32>
    %cst_23 = arith.constant dense<0.000000e+00> : vector<72x512xf32>
    %43 = tpu.matmul %42, %41, %cst_23 {dimension_numbers = #tpu.dot_dimension_numbers<[1], [0], [0], [1], [0, 0, 1, 1], [], []>} : vector<72x289xf32>, vector<289x512xf32>, vector<72x512xf32> -> vector<72x512xf32>
    %c0_24 = arith.constant 0 : index
    %c0_25 = arith.constant 0 : index
    %44 = vector.load %arg7[%c0_24, %c0_25] : memref<24x1xf32, #tpu.memory_space<vmem>>, vector<24x1xf32>
    %45 = vector.broadcast %20 : vector<1x512xf32> to vector<24x512xf32>
    %46 = vector.broadcast %44 : vector<24x1xf32> to vector<24x512xf32>
    %47 = arith.subf %45, %46 : vector<24x512xf32>
    %48 = math.absf %47 : vector<24x512xf32>
    %cst_26 = arith.constant 1.000000e+00 : f32
    %49 = vector.broadcast %cst_26 : f32 to vector<24x512xf32>
    %50 = arith.subf %49, %48 : vector<24x512xf32>
    %cst_27 = arith.constant 0.000000e+00 : f32
    %51 = vector.broadcast %cst_27 : f32 to vector<24x512xf32>
    %52 = arith.maximumf %51, %50 : vector<24x512xf32>
    %53 = vector.extract_strided_slice %43 {offsets = [0, 0], sizes = [24, 512], strides = [1, 1]} : vector<72x512xf32> to vector<24x512xf32>
    %54 = arith.mulf %53, %52 : vector<24x512xf32>
    %cst_28 = arith.constant dense<0.000000e+00> : vector<512xf32>
    %55 = vector.multi_reduction <add>, %54, %cst_28 [0] : vector<24x512xf32> to vector<512xf32>
    %c0_29 = arith.constant 0 : index
    %c0_30 = arith.constant 0 : index
    %56 = vector.load %arg8[%c0_29, %c0_30] : memref<3x512xf32, #tpu.memory_space<vmem>>, vector<1x512xf32>
    %57 = vector.shape_cast %56 : vector<1x512xf32> to vector<512xf32>
    %58 = vector.shape_cast %55 : vector<512xf32> to vector<1x512xf32>
    tpu.vector_store %arg8[%c0_29, %c0_30], %58 {strides = array<i32>} : memref<3x512xf32, #tpu.memory_space<vmem>>, vector<1x512xf32>,
    %59 = vector.extract_strided_slice %43 {offsets = [24, 0], sizes = [24, 512], strides = [1, 1]} : vector<72x512xf32> to vector<24x512xf32>
    %60 = arith.mulf %59, %52 : vector<24x512xf32>
    %cst_31 = arith.constant dense<0.000000e+00> : vector<512xf32>
    %61 = vector.multi_reduction <add>, %60, %cst_31 [0] : vector<24x512xf32> to vector<512xf32>
    %c1 = arith.constant 1 : index
    %c0_32 = arith.constant 0 : index
    %62 = vector.load %arg8[%c1, %c0_32] : memref<3x512xf32, #tpu.memory_space<vmem>>, vector<1x512xf32>
    %63 = vector.shape_cast %62 : vector<1x512xf32> to vector<512xf32>
    %64 = vector.shape_cast %61 : vector<512xf32> to vector<1x512xf32>
    tpu.vector_store %arg8[%c1, %c0_32], %64 {strides = array<i32>} : memref<3x512xf32, #tpu.memory_space<vmem>>, vector<1x512xf32>,
    %65 = vector.extract_strided_slice %43 {offsets = [48, 0], sizes = [24, 512], strides = [1, 1]} : vector<72x512xf32> to vector<24x512xf32>
    %66 = arith.mulf %65, %52 : vector<24x512xf32>
    %cst_33 = arith.constant dense<0.000000e+00> : vector<512xf32>
    %67 = vector.multi_reduction <add>, %66, %cst_33 [0] : vector<24x512xf32> to vector<512xf32>
    %c2 = arith.constant 2 : index
    %c0_34 = arith.constant 0 : index
    %68 = vector.load %arg8[%c2, %c0_34] : memref<3x512xf32, #tpu.memory_space<vmem>>, vector<1x512xf32>
    %69 = vector.shape_cast %68 : vector<1x512xf32> to vector<512xf32>
    %70 = vector.shape_cast %67 : vector<512xf32> to vector<1x512xf32>
    tpu.vector_store %arg8[%c2, %c0_34], %70 {strides = array<i32>} : memref<3x512xf32, #tpu.memory_space<vmem>>, vector<1x512xf32>,
    return
  }
  func.func @transform_0(%arg0: i32) -> (i32, i32) {
    %c0_i32 = arith.constant 0 : i32
    %c0_i32_0 = arith.constant 0 : i32
    return %c0_i32, %arg0 : i32, i32
  }
  func.func @transform_1(%arg0: i32) -> (i32, i32) {
    %c0_i32 = arith.constant 0 : i32
    %c0_i32_0 = arith.constant 0 : i32
    %c0_i32_1 = arith.constant 0 : i32
    return %c0_i32, %c0_i32_0 : i32, i32
  }
  func.func @transform_2(%arg0: i32) -> (i32, i32) {
    %c0_i32 = arith.constant 0 : i32
    %c0_i32_0 = arith.constant 0 : i32
    %c0_i32_1 = arith.constant 0 : i32
    return %c0_i32, %c0_i32_0 : i32, i32
  }
  func.func @transform_3(%arg0: i32) -> (i32, i32) {
    %c0_i32 = arith.constant 0 : i32
    %c0_i32_0 = arith.constant 0 : i32
    %c0_i32_1 = arith.constant 0 : i32
    return %c0_i32, %c0_i32_0 : i32, i32
  }
  func.func @transform_4(%arg0: i32) -> (i32, i32) {
    %c0_i32 = arith.constant 0 : i32
    %c0_i32_0 = arith.constant 0 : i32
    %c0_i32_1 = arith.constant 0 : i32
    return %c0_i32, %c0_i32_0 : i32, i32
  }
  func.func @transform_5(%arg0: i32) -> (i32, i32) {
    %c0_i32 = arith.constant 0 : i32
    %c0_i32_0 = arith.constant 0 : i32
    %c0_i32_1 = arith.constant 0 : i32
    return %c0_i32, %c0_i32_0 : i32, i32
  }
  func.func @transform_6(%arg0: i32) -> (i32, i32) {
    %c0_i32 = arith.constant 0 : i32
    %c0_i32_0 = arith.constant 0 : i32
    %c0_i32_1 = arith.constant 0 : i32
    return %c0_i32, %c0_i32_0 : i32, i32
  }
  func.func @transform_7(%arg0: i32) -> (i32, i32) {
    %c0_i32 = arith.constant 0 : i32
    %c0_i32_0 = arith.constant 0 : i32
    return %c0_i32, %arg0 : i32, i32
  }
}

</mosaic_0001>

<bundles_post_ra>
// kernel: tpu_custom_call.1
= control target key start
LH: loop header
LB: loop body
LE: loop exit
PB: predicated region body
PF: predicated region fallthrough
CT: control target
= control target key end

     0   :  { %v8769_v6 = vmov 0.0   ;;  %v4059_v9 = vmov 0   ;;  %vm63_vm0 = vcmask 64512   ;;  %s8761_s0 = inlined_call_operand.vmem [shape: f32[8,512], index: 0, kind: input, shape index: {}]   ;;  %s8762_s1 = inlined_call_operand.vmem [shape: f32[192,8], index: 1, kind: input, shape index: {}]   ;;  %s8763_s2 = inlined_call_operand.vmem [shape: f32[3,192], index: 2, kind: input, shape index: {}]   ;;  %s8764_s3 = inlined_call_operand.vmem [shape: f32[72,289], index: 3, kind: input, shape index: {}]   ;;  %s8765_s4 = inlined_call_operand.vmem [shape: f32[289,1], index: 4, kind: input, shape index: {}]   ;;  %s8766_s5 = inlined_call_operand.vmem [shape: f32[289,1], index: 5, kind: input, shape index: {}]   ;;  %s8767_s6 = inlined_call_operand.vmem [shape: f32[24,1], index: 6, kind: input, shape index: {}]   ;;  %s8768_s7 = inlined_call_operand.hbm [shape: f32[3,512], index: 7, kind: output, shape index: {}]  }
   0x1   :  { %v28_v0 = vld [vmem:[%s8761_s0 + $0x8] sm:$0xff]  ;;  %v30_v1 = vld [vmem:[%s8761_s0 + $0x18] sm:$0xff]  ;;  %v27_v2 = vld [vmem:[%s8761_s0] sm:$0xff]  ;;  %200 = vmatprep.mubr.f32.mxu0 %v8769_v6  ;;  %409 = vmatprep.mubr.f32.mxu1 %v8769_v6 }
   0x2   :  { %v32_v3 = vmax.f32 %v28_v0, 0.0  ;;  %v34_v4 = vmax.f32 %v30_v1, 0.0  ;;  %v31_v5 = vmax.f32 %v27_v2, 0.0  ;;  %v29_v7 = vld [vmem:[%s8761_s0 + $0x10] sm:$0xff]  ;;  %4030 = vset.pattern.permute.xlu0 %v4059_v9  ;;  %4031 = vset.pattern.permute.xlu1 %v4059_v9  ;;  %v39_v14 = vld [vmem:[%s8762_s1] sm:$0xff]  ;;  %v40_v15 = vld [vmem:[%s8762_s1 + $0x8] sm:$0xff] }
   0x3   :  { %v33_v8 = vmax.f32 %v29_v7, 0.0  ;;  %v1002_v16 = vld [vmem:[%s8765_s4] sm:$0xff]  ;;  %v1003_v18 = vld [vmem:[%s8765_s4 + $0x8] sm:$0xff]  ;;  %v41_v20 = vld [vmem:[%s8762_s1 + $0x10] sm:$0xff] }
   0x4   :  { %v36_v10 = vmin.f32 %v32_v3, 1.0  ;;  %v38_v11 = vmin.f32 %v34_v4, 1.0  ;;  %v35_v12 = vmin.f32 %v31_v5, 1.0  ;;  %v1832_v17 = vld [vmem:[%s8766_s5] sm:$0xff]  ;;  %1057 = vperm.xlu0 %4030, %v1002_v16   ;;  %v1833_v19 = vld [vmem:[%s8766_s5 + $0x8] sm:$0xff] }
   0x5   :  { %v37_v13 = vmin.f32 %v33_v8, 1.0  ;;  %1887 = vperm.xlu1 %4031, %v1832_v17  }
   0x6   :  { %136 = vmatprep.subr.mxu0 %v36_v10  ;;  %345 = vmatprep.subr.mxu1 %v38_v11 }
   0x7   :  { %137 = vmatpush1.msra.mxu0 %v35_v12  ;;  %346 = vmatpush1.msra.mxu1 %v37_v13 }
   0x8   :  { %3678 = vmatmul.mubr.msk.f32.vlgmr.msra.gmra.mrb[0].mxu0 %vm63_vm0, %v39_v14  ;;  %3702 = vmatmul.mubr.msk.f32.vlgmr.msra.gmra.mrb[0].mxu1 %vm63_vm0, %v39_v14 }
   0x9   :  { %206 = vmatprep.mubr.f32.mxu0 %v8769_v6  ;;  %415 = vmatprep.mubr.f32.mxu1 %v8769_v6 }
   0xc   :  { %3679 = vmatmul.mubr.msk.f32.gmra.mrb[2].mxu0 %vm63_vm0, %v40_v15  ;;  %3703 = vmatmul.mubr.msk.f32.gmra.mrb[2].mxu1 %vm63_vm0, %v40_v15 }
   0xd   :  { %212 = vmatprep.mubr.f32.mxu0 %v8769_v6  ;;  %421 = vmatprep.mubr.f32.mxu1 %v8769_v6 }
   0xe   :  { %12 = vsyncpa [#allocation3], 0  ;;  %1062 = vperm.xlu0 %4030, %v1003_v18   ;;  %1892 = vperm.xlu1 %4031, %v1833_v19   ;;  %v1004_v21 = vld [vmem:[%s8765_s4 + $0x10] sm:$0xff]  ;;  %v1005_v22 = vld [vmem:[%s8765_s4 + $0x18] sm:$0xff]  ;;  %vm845_vm1 = vcmask 523264   ;;  %vm2865_vm2 = vcmask 1040384  }
   0xf   :  { %v42_v23 = vld [vmem:[%s8762_s1 + $0x18] sm:$0xff]  ;;  %v1834_v24 = vld [vmem:[%s8766_s5 + $0x10] sm:$0xff]  ;;  %v43_v26 = vld [vmem:[%s8762_s1 + $0x20] sm:$0xff]  ;;  %vm2837_vm3 = vcmask 269312  }
  0x10   :  { %3680 = vmatmul.mubr.msk.f32.gmra.mrb[4].mxu0 %vm63_vm0, %v41_v20  ;;  %3704 = vmatmul.mubr.msk.f32.gmra.mrb[4].mxu1 %vm63_vm0, %v41_v20  ;;  %v1835_v25 = vld [vmem:[%s8766_s5 + $0x18] sm:$0xff]  ;;  %v1006_v27 = vld [vmem:[%s8765_s4 + $0x20] sm:$0xff]  ;;  %v44_v28 = vld [vmem:[%s8762_s1 + $0x28] sm:$0xff] }
  0x11   :  { %218 = vmatprep.mubr.f32.mxu0 %v8769_v6  ;;  %427 = vmatprep.mubr.f32.mxu1 %v8769_v6  ;;  %v45_v29 = vld [vmem:[%s8762_s1 + $0x30] sm:$0xff]  ;;  %v46_v30 = vld [vmem:[%s8762_s1 + $0x38] sm:$0xff]  ;;  %v47_v31 = vld [vmem:[%s8762_s1 + $0x40] sm:$0xff] }
  0x12   :  { %1067 = vperm.xlu0 %4030, %v1004_v21   ;;  %1072 = vperm.xlu1 %4031, %v1005_v22   ;;  %v48_v32 = vld [vmem:[%s8762_s1 + $0x48] sm:$0xff]  ;;  %v49_v33 = vld [vmem:[%s8762_s1 + $0x50] sm:$0xff]  ;;  %v50_v34 = vld [vmem:[%s8762_s1 + $0x58] sm:$0xff] }
  0x13   :  { %v51_v35 = vld [vmem:[%s8762_s1 + $0x60] sm:$0xff]  ;;  %v52_v36 = vld [vmem:[%s8762_s1 + $0x68] sm:$0xff]  ;;  %v53_v37 = vld [vmem:[%s8762_s1 + $0x70] sm:$0xff] }
  0x14   :  { %3681 = vmatmul.mubr.msk.f32.gmra.mrb[6].mxu0 %vm63_vm0, %v42_v23  ;;  %3705 = vmatmul.mubr.msk.f32.gmra.mrb[6].mxu1 %vm63_vm0, %v42_v23  ;;  %v54_v38 = vld [vmem:[%s8762_s1 + $0x78] sm:$0xff]  ;;  %v55_v39 = vld [vmem:[%s8762_s1 + $0x80] sm:$0xff]  ;;  %v56_v40 = vld [vmem:[%s8762_s1 + $0x88] sm:$0xff] }
  0x15   :  { %224 = vmatprep.mubr.f32.mxu0 %v8769_v6  ;;  %433 = vmatprep.mubr.f32.mxu1 %v8769_v6  ;;  %v57_v41 = vld [vmem:[%s8762_s1 + $0x90] sm:$0xff]  ;;  %v58_v42 = vld [vmem:[%s8762_s1 + $0x98] sm:$0xff]  ;;  %v59_v43 = vld [vmem:[%s8762_s1 + $0xa0] sm:$0xff] }
  0x16   :  { %1897 = vperm.xlu0 %4030, %v1834_v24   ;;  %1902 = vperm.xlu1 %4031, %v1835_v25   ;;  %v60_v44 = vld [vmem:[%s8762_s1 + $0xa8] sm:$0xff]  ;;  %v61_v45 = vld [vmem:[%s8762_s1 + $0xb0] sm:$0xff]  ;;  %v1836_v47 = vld [vmem:[%s8766_s5 + $0x20] sm:$0xff] }
  0x17   :  { %v1007_v46 = vld [vmem:[%s8765_s4 + $0x28] sm:$0xff]  ;;  %v62_v48 = vld [vmem:[%s8762_s1 + $0xb8] sm:$0xff]  ;;  %v1008_v50 = vld [vmem:[%s8765_s4 + $0x30] sm:$0xff] }
  0x18   :  { %3682 = vmatmul.mubr.msk.f32.gmra.mrb[8].mxu0 %vm63_vm0, %v43_v26  ;;  %3706 = vmatmul.mubr.msk.f32.gmra.mrb[8].mxu1 %vm63_vm0, %v43_v26  ;;  %v1837_v49 = vld [vmem:[%s8766_s5 + $0x28] sm:$0xff]  ;;  %v1009_v51 = vld [vmem:[%s8765_s4 + $0x38] sm:$0xff]  ;;  %v1838_v52 = vld [vmem:[%s8766_s5 + $0x30] sm:$0xff] }
  0x19   :  { %230 = vmatprep.mubr.f32.mxu0 %v8769_v6  ;;  %439 = vmatprep.mubr.f32.mxu1 %v8769_v6  ;;  %v1839_v53 = vld [vmem:[%s8766_s5 + $0x38] sm:$0xff]  ;;  %v1010_v54 = vld [vmem:[%s8765_s4 + $0x40] sm:$0xff]  ;;  %v1011_v55 = vld [vmem:[%s8765_s4 + $0x48] sm:$0xff] }
  0x1a   :  { %1077 = vperm.xlu0 %4030, %v1006_v27   ;;  %1082 = vperm.xlu1 %4031, %v1007_v46   ;;  %v1840_v56 = vld [vmem:[%s8766_s5 + $0x40] sm:$0xff]  ;;  %v1841_v57 = vld [vmem:[%s8766_s5 + $0x48] sm:$0xff]  ;;  %v1012_v58 = vld [vmem:[%s8765_s4 + $0x50] sm:$0xff] }
  0x1b   :  { %v1013_v59 = vld [vmem:[%s8765_s4 + $0x58] sm:$0xff]  ;;  %v1842_v60 = vld [vmem:[%s8766_s5 + $0x50] sm:$0xff]  ;;  %v1014_v62 = vld [vmem:[%s8765_s4 + $0x60] sm:$0xff] }
  0x1c   :  { %3683 = vmatmul.mubr.msk.f32.gmra.mrb[10].mxu0 %vm63_vm0, %v44_v28  ;;  %3707 = vmatmul.mubr.msk.f32.gmra.mrb[10].mxu1 %vm63_vm0, %v44_v28  ;;  %v1843_v61 = vld [vmem:[%s8766_s5 + $0x58] sm:$0xff]  ;;  %v1015_v63 = vld [vmem:[%s8765_s4 + $0x68] sm:$0xff]  ;;  %v1844_v0 = vld [vmem:[%s8766_s5 + $0x60] sm:$0xff] }
  0x1d   :  { %236 = vmatprep.mubr.f32.mxu0 %v8769_v6  ;;  %445 = vmatprep.mubr.f32.mxu1 %v8769_v6  ;;  %v1845_v1 = vld [vmem:[%s8766_s5 + $0x68] sm:$0xff]  ;;  %v1016_v2 = vld [vmem:[%s8765_s4 + $0x70] sm:$0xff]  ;;  %v1017_v3 = vld [vmem:[%s8765_s4 + $0x78] sm:$0xff] }
  0x1e   :  { %1907 = vperm.xlu0 %4030, %v1836_v47   ;;  %1912 = vperm.xlu1 %4031, %v1837_v49   ;;  %v1846_v4 = vld [vmem:[%s8766_s5 + $0x70] sm:$0xff]  ;;  %v1847_v5 = vld [vmem:[%s8766_s5 + $0x78] sm:$0xff]  ;;  %v1018_v7 = vld [vmem:[%s8765_s4 + $0x80] sm:$0xff] }
  0x1f   :  { %v1019_v8 = vld [vmem:[%s8765_s4 + $0x88] sm:$0xff]  ;;  %v1848_v9 = vld [vmem:[%s8766_s5 + $0x80] sm:$0xff]  ;;  %v1020_v11 = vld [vmem:[%s8765_s4 + $0x90] sm:$0xff] }
  0x20   :  { %3684 = vmatmul.mubr.msk.f32.gmra.mrb[12].mxu0 %vm63_vm0, %v45_v29  ;;  %3708 = vmatmul.mubr.msk.f32.gmra.mrb[12].mxu1 %vm63_vm0, %v45_v29  ;;  %v1849_v10 = vld [vmem:[%s8766_s5 + $0x88] sm:$0xff]  ;;  %v1021_v12 = vld [vmem:[%s8765_s4 + $0x98] sm:$0xff]  ;;  %v1850_v13 = vld [vmem:[%s8766_s5 + $0x90] sm:$0xff] }
  0x21   :  { %242 = vmatprep.mubr.f32.mxu0 %v8769_v6  ;;  %451 = vmatprep.mubr.f32.mxu1 %v8769_v6  ;;  %v1851_v14 = vld [vmem:[%s8766_s5 + $0x98] sm:$0xff]  ;;  %v1022_v15 = vld [vmem:[%s8765_s4 + $0xa0] sm:$0xff]  ;;  %v1023_v16 = vld [vmem:[%s8765_s4 + $0xa8] sm:$0xff] }
  0x22   :  { %1087 = vperm.xlu0 %4030, %v1008_v50   ;;  %1092 = vperm.xlu1 %4031, %v1009_v51   ;;  %v1852_v17 = vld [vmem:[%s8766_s5 + $0xa0] sm:$0xff]  ;;  %v1853_v18 = vld [vmem:[%s8766_s5 + $0xa8] sm:$0xff]  ;;  %v1024_v19 = vld [vmem:[%s8765_s4 + $0xb0] sm:$0xff] }
  0x23   :  { %v1025_v20 = vld [vmem:[%s8765_s4 + $0xb8] sm:$0xff]  ;;  %v1854_v21 = vld [vmem:[%s8766_s5 + $0xb0] sm:$0xff]  ;;  %v1026_v23 = vld [vmem:[%s8765_s4 + $0xc0] sm:$0xff] }
  0x24   :  { %3685 = vmatmul.mubr.msk.f32.gmra.mrb[14].mxu0 %vm63_vm0, %v46_v30  ;;  %3709 = vmatmul.mubr.msk.f32.gmra.mrb[14].mxu1 %vm63_vm0, %v46_v30  ;;  %v1855_v22 = vld [vmem:[%s8766_s5 + $0xb8] sm:$0xff]  ;;  %v1027_v24 = vld [vmem:[%s8765_s4 + $0xc8] sm:$0xff]  ;;  %v1856_v25 = vld [vmem:[%s8766_s5 + $0xc0] sm:$0xff] }
  0x25   :  { %248 = vmatprep.mubr.f32.mxu0 %v8769_v6  ;;  %457 = vmatprep.mubr.f32.mxu1 %v8769_v6  ;;  %v1857_v26 = vld [vmem:[%s8766_s5 + $0xc8] sm:$0xff]  ;;  %v1028_v27 = vld [vmem:[%s8765_s4 + $0xd0] sm:$0xff]  ;;  %v1029_v28 = vld [vmem:[%s8765_s4 + $0xd8] sm:$0xff] }
  0x26   :  { %1917 = vperm.xlu0 %4030, %v1838_v52   ;;  %1922 = vperm.xlu1 %4031, %v1839_v53   ;;  %v1858_v29 = vld [vmem:[%s8766_s5 + $0xd0] sm:$0xff]  ;;  %v1859_v30 = vld [vmem:[%s8766_s5 + $0xd8] sm:$0xff]  ;;  %v1038_v49 = vld [vmem:[%s8765_s4 + $0x120] sm:$0x1] }
  0x27   :  { %v1037_v46 = vld [vmem:[%s8765_s4 + $0x118] sm:$0xff]  ;;  %v1866_v47 = vld [vmem:[%s8766_s5 + $0x110] sm:$0xff]  ;;  %v1868_v52 = vld [vmem:[%s8766_s5 + $0x120] sm:$0x1] }
  0x28   :  { %3686 = vmatmul.mubr.msk.f32.gmra.mrb[16].mxu0 %vm63_vm0, %v47_v31  ;;  %3710 = vmatmul.mubr.msk.f32.gmra.mrb[16].mxu1 %vm63_vm0, %v47_v31  ;;  %v1030_v31 = vld [vmem:[%s8765_s4 + $0xe0] sm:$0xff] }
  0x29   :  { %254 = vmatprep.mubr.f32.mxu0 %v8769_v6  ;;  %463 = vmatprep.mubr.f32.mxu1 %v8769_v6 }
  0x2a   :  { %1097 = vperm.xlu0 %4030, %v1010_v54   ;;  %1102 = vperm.xlu1 %4031, %v1011_v55  }
  0x2c   :  { %3687 = vmatmul.mubr.msk.f32.gmra.mrb[18].mxu0 %vm63_vm0, %v48_v32  ;;  %3711 = vmatmul.mubr.msk.f32.gmra.mrb[18].mxu1 %vm63_vm0, %v48_v32  ;;  %v1031_v32 = vld [vmem:[%s8765_s4 + $0xe8] sm:$0xff] }
  0x2d   :  { %260 = vmatprep.mubr.f32.mxu0 %v8769_v6  ;;  %469 = vmatprep.mubr.f32.mxu1 %v8769_v6 }
  0x2e   :  { %1927 = vperm.xlu0 %4030, %v1840_v56   ;;  %1932 = vperm.xlu1 %4031, %v1841_v57  }
  0x30   :  { %3688 = vmatmul.mubr.msk.f32.gmra.mrb[20].mxu0 %vm63_vm0, %v49_v33  ;;  %3712 = vmatmul.mubr.msk.f32.gmra.mrb[20].mxu1 %vm63_vm0, %v49_v33  ;;  %v1860_v33 = vld [vmem:[%s8766_s5 + $0xe0] sm:$0xff] }
  0x31   :  { %266 = vmatprep.mubr.f32.mxu0 %v8769_v6  ;;  %475 = vmatprep.mubr.f32.mxu1 %v8769_v6 }
  0x32   :  { %1107 = vperm.xlu0 %4030, %v1012_v58   ;;  %1112 = vperm.xlu1 %4031, %v1013_v59   ;;  %v3354_v59 = vld [vmem:[%s8767_s6] sm:$0xff] }
  0x34   :  { %3689 = vmatmul.mubr.msk.f32.gmra.mrb[22].mxu0 %vm63_vm0, %v50_v34  ;;  %3713 = vmatmul.mubr.msk.f32.gmra.mrb[22].mxu1 %vm63_vm0, %v50_v34  ;;  %v1861_v34 = vld [vmem:[%s8766_s5 + $0xe8] sm:$0xff] }
  0x35   :  { %272 = vmatprep.mubr.f32.mxu0 %v8769_v6  ;;  %481 = vmatprep.mubr.f32.mxu1 %v8769_v6 }
  0x36   :  { %1937 = vperm.xlu0 %4030, %v1842_v60   ;;  %1942 = vperm.xlu1 %4031, %v1843_v61  }
  0x38   :  { %3690 = vmatmul.mubr.msk.f32.gmra.mrb[24].mxu0 %vm63_vm0, %v51_v35  ;;  %3714 = vmatmul.mubr.msk.f32.gmra.mrb[24].mxu1 %vm63_vm0, %v51_v35  ;;  %v1032_v35 = vld [vmem:[%s8765_s4 + $0xf0] sm:$0xff] }
  0x39   :  { %278 = vmatprep.mubr.f32.mxu0 %v8769_v6  ;;  %487 = vmatprep.mubr.f32.mxu1 %v8769_v6 }
  0x3a   :  { %1117 = vperm.xlu0 %4030, %v1014_v62   ;;  %1122 = vperm.xlu1 %4031, %v1015_v63  }
  0x3c   :  { %3691 = vmatmul.mubr.msk.f32.gmra.mrb[26].mxu0 %vm63_vm0, %v52_v36  ;;  %3715 = vmatmul.mubr.msk.f32.gmra.mrb[26].mxu1 %vm63_vm0, %v52_v36  ;;  %v842_v36 = vld [vmem:[%s8763_s2] sm:$0x77] }
  0x3d   :  { %284 = vmatprep.mubr.f32.mxu0 %v8769_v6  ;;  %493 = vmatprep.mubr.f32.mxu1 %v8769_v6 }
  0x3e   :  { %1947 = vperm.xlu0 %4030, %v1844_v0   ;;  %1952 = vperm.xlu1 %4031, %v1845_v1  }
  0x40   :  { %3692 = vmatmul.mubr.msk.f32.gmra.mrb[28].mxu0 %vm63_vm0, %v53_v37  ;;  %3716 = vmatmul.mubr.msk.f32.gmra.mrb[28].mxu1 %vm63_vm0, %v53_v37  ;;  %v844_v37 = vcombine.high %v842_v36, %v842_v36 }
  0x41   :  { %290 = vmatprep.mubr.f32.mxu0 %v8769_v6  ;;  %499 = vmatprep.mubr.f32.mxu1 %v8769_v6 }
  0x42   :  { %1127 = vperm.xlu0 %4030, %v1016_v2   ;;  %1132 = vperm.xlu1 %4031, %v1017_v3  }
  0x44   :  { %3693 = vmatmul.mubr.msk.f32.gmra.mrb[30].mxu0 %vm63_vm0, %v54_v38  ;;  %3717 = vmatmul.mubr.msk.f32.gmra.mrb[30].mxu1 %vm63_vm0, %v54_v38  ;;  %v1033_v38 = vld [vmem:[%s8765_s4 + $0xf8] sm:$0xff] }
  0x45   :  { %296 = vmatprep.mubr.f32.mxu0 %v8769_v6  ;;  %505 = vmatprep.mubr.f32.mxu1 %v8769_v6 }
  0x46   :  { %1957 = vperm.xlu0 %4030, %v1846_v4   ;;  %1962 = vperm.xlu1 %4031, %v1847_v5  }
  0x48   :  { %3694 = vmatmul.mubr.msk.f32.gmra.mrb[32].mxu0 %vm63_vm0, %v55_v39  ;;  %3718 = vmatmul.mubr.msk.f32.gmra.mrb[32].mxu1 %vm63_vm0, %v55_v39  ;;  %v1862_v39 = vld [vmem:[%s8766_s5 + $0xf0] sm:$0xff] }
  0x49   :  { %302 = vmatprep.mubr.f32.mxu0 %v8769_v6  ;;  %511 = vmatprep.mubr.f32.mxu1 %v8769_v6 }
  0x4a   :  { %1137 = vperm.xlu0 %4030, %v1018_v7   ;;  %1142 = vperm.xlu1 %4031, %v1019_v8   ;;  %v3355_v7 = vld [vmem:[%s8767_s6 + $0x8] sm:$0xff]  ;;  %v3356_v8 = vld [vmem:[%s8767_s6 + $0x10] sm:$0xff] }
  0x4c   :  { %3695 = vmatmul.mubr.msk.f32.gmra.mrb[34].mxu0 %vm63_vm0, %v56_v40  ;;  %3719 = vmatmul.mubr.msk.f32.gmra.mrb[34].mxu1 %vm63_vm0, %v56_v40  ;;  %v1863_v40 = vld [vmem:[%s8766_s5 + $0xf8] sm:$0xff] }
  0x4d   :  { %308 = vmatprep.mubr.f32.mxu0 %v8769_v6  ;;  %517 = vmatprep.mubr.f32.mxu1 %v8769_v6 }
  0x4e   :  { %1967 = vperm.xlu0 %4030, %v1848_v9   ;;  %1972 = vperm.xlu1 %4031, %v1849_v10  }
  0x50   :  { %3696 = vmatmul.mubr.msk.f32.gmra.mrb[36].mxu0 %vm63_vm0, %v57_v41  ;;  %3720 = vmatmul.mubr.msk.f32.gmra.mrb[36].mxu1 %vm63_vm0, %v57_v41  ;;  %v1034_v41 = vld [vmem:[%s8765_s4 + $0x100] sm:$0xff] }
  0x51   :  { %314 = vmatprep.mubr.f32.mxu0 %v8769_v6  ;;  %523 = vmatprep.mubr.f32.mxu1 %v8769_v6 }
  0x52   :  { %1147 = vperm.xlu0 %4030, %v1020_v11   ;;  %1152 = vperm.xlu1 %4031, %v1021_v12  }
  0x54   :  { %3697 = vmatmul.mubr.msk.f32.gmra.mrb[38].mxu0 %vm63_vm0, %v58_v42  ;;  %3721 = vmatmul.mubr.msk.f32.gmra.mrb[38].mxu1 %vm63_vm0, %v58_v42  ;;  %v1035_v42 = vld [vmem:[%s8765_s4 + $0x108] sm:$0xff] }
  0x55   :  { %320 = vmatprep.mubr.f32.mxu0 %v8769_v6  ;;  %529 = vmatprep.mubr.f32.mxu1 %v8769_v6 }
  0x56   :  { %1977 = vperm.xlu0 %4030, %v1850_v13   ;;  %1982 = vperm.xlu1 %4031, %v1851_v14  }
  0x58   :  { %3698 = vmatmul.mubr.msk.f32.gmra.mrb[40].mxu0 %vm63_vm0, %v59_v43  ;;  %3722 = vmatmul.mubr.msk.f32.gmra.mrb[40].mxu1 %vm63_vm0, %v59_v43  ;;  %v1864_v43 = vld [vmem:[%s8766_s5 + $0x100] sm:$0xff] }
  0x59   :  { %326 = vmatprep.mubr.f32.mxu0 %v8769_v6  ;;  %535 = vmatprep.mubr.f32.mxu1 %v8769_v6 }
  0x5a   :  { %1157 = vperm.xlu0 %4030, %v1022_v15   ;;  %1162 = vperm.xlu1 %4031, %v1023_v16  }
  0x5c   :  { %3699 = vmatmul.mubr.msk.f32.gmra.mrb[42].mxu0 %vm63_vm0, %v60_v44  ;;  %3723 = vmatmul.mubr.msk.f32.gmra.mrb[42].mxu1 %vm63_vm0, %v60_v44  ;;  %v1865_v44 = vld [vmem:[%s8766_s5 + $0x108] sm:$0xff] }
  0x5d   :  { %332 = vmatprep.mubr.f32.mxu0 %v8769_v6  ;;  %541 = vmatprep.mubr.f32.mxu1 %v8769_v6 }
  0x5e   :  { %1987 = vperm.xlu0 %4030, %v1852_v17   ;;  %1992 = vperm.xlu1 %4031, %v1853_v18  }
  0x60   :  { %3700 = vmatmul.mubr.msk.f32.gmra.mrb[44].mxu0 %vm63_vm0, %v61_v45  ;;  %3724 = vmatmul.mubr.msk.f32.gmra.mrb[44].mxu1 %vm63_vm0, %v61_v45  ;;  %v1036_v45 = vld [vmem:[%s8765_s4 + $0x110] sm:$0xff] }
  0x61   :  { %338 = vmatprep.mubr.f32.mxu0 %v8769_v6  ;;  %547 = vmatprep.mubr.f32.mxu1 %v8769_v6 }
  0x62   :  { %1167 = vperm.xlu0 %4030, %v1024_v19   ;;  %1172 = vperm.xlu1 %4031, %v1025_v20  }
  0x64   :  { %3701 = vmatmul.mubr.msk.f32.gmra.mrb[46].mxu0 %vm63_vm0, %v62_v48  ;;  %3725 = vmatmul.mubr.msk.f32.gmra.mrb[46].mxu1 %vm63_vm0, %v62_v48  ;;  %v1867_v48 = vld [vmem:[%s8766_s5 + $0x118] sm:$0xff] }
  0x65   :  { %3726 = vmatprep.mubr.msk.f32.mxu0 %vm845_vm1, %v844_v37  ;;  %3727 = vmatprep.mubr.msk.f32.mxu1 %vm845_vm1, %v844_v37 }
  0x66   :  { %1997 = vperm.xlu0 %4030, %v1854_v21   ;;  %2002 = vperm.xlu1 %4031, %v1855_v22  }
  0x6a   :  { %1177 = vperm.xlu0 %4030, %v1026_v23   ;;  %1182 = vperm.xlu1 %4031, %v1027_v24  }
  0x6e   :  { %2007 = vperm.xlu0 %4030, %v1856_v25   ;;  %2012 = vperm.xlu1 %4031, %v1857_v26  }
  0x72   :  { %1187 = vperm.xlu0 %4030, %v1028_v27   ;;  %1192 = vperm.xlu1 %4031, %v1029_v28  }
  0x76   :  { %2017 = vperm.xlu0 %4030, %v1858_v29   ;;  %2022 = vperm.xlu1 %4031, %v1859_v30  }
  0x7a   :  { %1197 = vperm.xlu0 %4030, %v1030_v31   ;;  %1202 = vperm.xlu1 %4031, %v1031_v32  }
  0x7e   :  { %2027 = vperm.xlu0 %4030, %v1860_v33   ;;  %2032 = vperm.xlu1 %4031, %v1861_v34  }
  0x82   :  { %1207 = vperm.xlu0 %4030, %v1032_v35   ;;  %1212 = vperm.xlu1 %4031, %v1033_v38  }
  0x86   :  { %2037 = vperm.xlu0 %4030, %v1862_v39   ;;  %2042 = vperm.xlu1 %4031, %v1863_v40  }
  0x8a   :  { %1217 = vperm.xlu0 %4030, %v1034_v41   ;;  %1222 = vperm.xlu1 %4031, %v1035_v42  }
  0x8e   :  { %2047 = vperm.xlu0 %4030, %v1864_v43   ;;  %2052 = vperm.xlu1 %4031, %v1865_v44  }
  0x92   :  { %1227 = vperm.xlu0 %4030, %v1036_v45   ;;  %1232 = vperm.xlu1 %4031, %v1037_v46  }
  0x96   :  { %2057 = vperm.xlu0 %4030, %v1866_v47   ;;  %2062 = vperm.xlu1 %4031, %v1867_v48  }
  0x9a   :  { %1237 = vperm.xlu0 %4030, %v1038_v49   ;;  %2067 = vperm.xlu1 %4031, %v1868_v52  }
  0x9e   :  { %3375 = vperm.xlu0 %4030, %v3354_v59   ;;  %3380 = vperm.xlu1 %4031, %v3355_v7  }
  0xa2   :  { %3385 = vperm.xlu0 %4030, %v3356_v8  }
  0xdb   :  { %v202_v50 = vpop.f32.mrb[0].mxu0  ;;  %v411_v51 = vpop.f32.mrb[0].mxu1 }
  0xdc   :  { %v554_v53 = vand.u32 2147483647, %v202_v50  ;;  %v556_v54 = vand.u32 2147483647, %v411_v51  ;;  %v204_v55 = vpop.f32.mrb[1].mxu0  ;;  %v413_v56 = vpop.f32.mrb[1].mxu1 }
  0xdd   :  { %v555_v57 = vand.u32 2147483647, %v204_v55  ;;  %v557_v58 = vand.u32 2147483647, %v413_v56 }
  0xde   :  { %v650_v60 = vsub.f32 1.0, %v554_v53  ;;  %v652_v61 = vsub.f32 1.0, %v556_v54 }
  0xdf   :  { %v651_v62 = vsub.f32 1.0, %v555_v57  ;;  %v653_v63 = vsub.f32 1.0, %v557_v58  ;;  %v208_v0 = vpop.f32.mrb[2].mxu0  ;;  %v417_v1 = vpop.f32.mrb[2].mxu1 }
  0xe0   :  { %v558_v2 = vand.u32 2147483647, %v208_v0  ;;  %v560_v3 = vand.u32 2147483647, %v417_v1  ;;  %v210_v4 = vpop.f32.mrb[3].mxu0  ;;  %v419_v5 = vpop.f32.mrb[3].mxu1 }
  0xe1   :  { %v559_v11 = vand.u32 2147483647, %v210_v4  ;;  %v561_v12 = vand.u32 2147483647, %v419_v5  ;;  %v746_v13 = vmax.f32 %v650_v60, 0.0  ;;  %v748_v14 = vmax.f32 %v652_v61, 0.0 }
  0xe2   :  { %v654_v9 = vsub.f32 1.0, %v558_v2  ;;  %v656_v10 = vsub.f32 1.0, %v560_v3  ;;  %v747_v15 = vmax.f32 %v651_v62, 0.0  ;;  %v749_v16 = vmax.f32 %v653_v63, 0.0 }
  0xe3   :  { %v214_v17 = vpop.f32.mrb[4].mxu0  ;;  %v423_v18 = vpop.f32.mrb[4].mxu1  ;;  %v655_v21 = vsub.f32 1.0, %v559_v11  ;;  %v657_v22 = vsub.f32 1.0, %v561_v12 }
  0xe4   :  { %v750_v19 = vmax.f32 %v654_v9, 0.0  ;;  %v752_v20 = vmax.f32 %v656_v10, 0.0  ;;  %v216_v23 = vpop.f32.mrb[5].mxu0  ;;  %v425_v24 = vpop.f32.mrb[5].mxu1  ;;  %v562_v25 = vand.u32 2147483647, %v214_v17 }
  0xe5   :  { %v564_v26 = vand.u32 2147483647, %v423_v18  ;;  %v563_v27 = vand.u32 2147483647, %v216_v23  ;;  %v751_v30 = vmax.f32 %v655_v21, 0.0  ;;  %v753_v31 = vmax.f32 %v657_v22, 0.0 }
  0xe6   :  { %v3752_v28 = vpack.c.bf16 %v750_v19, %v746_v13  ;;  %v3800_v29 = vpack.c.bf16 %v752_v20, %v748_v14  ;;  %v658_v32 = vsub.f32 1.0, %v562_v25  ;;  %v565_v35 = vand.u32 2147483647, %v425_v24 }
  0xe7   :  { %v660_v33 = vsub.f32 1.0, %v564_v26  ;;  %v659_v34 = vsub.f32 1.0, %v563_v27  ;;  %v220_v36 = vpop.f32.mrb[6].mxu0  ;;  %v3750_v37 = vpack.c.bf16 %v751_v30, %v747_v15  ;;  %v3798_v38 = vpack.c.bf16 %v753_v31, %v749_v16  ;;  %v429_v40 = vpop.f32.mrb[6].mxu1 }
  0xe8   :  { %v566_v39 = vand.u32 2147483647, %v220_v36  ;;  %v222_v41 = vpop.f32.mrb[7].mxu0  ;;  %v754_v42 = vmax.f32 %v658_v32, 0.0  ;;  %v661_v43 = vsub.f32 1.0, %v565_v35  ;;  %v431_v44 = vpop.f32.mrb[7].mxu1 }
  0xe9   :  { %v756_v45 = vmax.f32 %v660_v33, 0.0  ;;  %v568_v47 = vand.u32 2147483647, %v429_v40  ;;  %v567_v48 = vand.u32 2147483647, %v222_v41  ;;  %3751 = vmatprep.subr.bf16.mxu0 %v3750_v37  ;;  %3799 = vmatprep.subr.bf16.mxu1 %v3798_v38  ;;  %v755_v49 = vmax.f32 %v659_v34, 0.0 }
  0xea   :  { %v662_v46 = vsub.f32 1.0, %v566_v39  ;;  %v757_v50 = vmax.f32 %v661_v43, 0.0  ;;  %v569_v51 = vand.u32 2147483647, %v431_v44  ;;  %3753 = vmatpush1.bf16.msra.mxu0 %v3752_v28  ;;  %3801 = vmatpush1.bf16.msra.mxu1 %v3800_v29 }
  0xeb   :  { %v226_v52 = vpop.f32.mrb[8].mxu0  ;;  %v435_v53 = vpop.f32.mrb[8].mxu1  ;;  %v664_v55 = vsub.f32 1.0, %v568_v47  ;;  %v663_v56 = vsub.f32 1.0, %v567_v48 }
  0xec   :  { %v758_v54 = vmax.f32 %v662_v46, 0.0  ;;  %v570_v57 = vand.u32 2147483647, %v226_v52  ;;  %v228_v58 = vpop.f32.mrb[9].mxu0  ;;  %v665_v59 = vsub.f32 1.0, %v569_v51  ;;  %v437_v62 = vpop.f32.mrb[9].mxu1 }
  0xed   :  { %v572_v60 = vand.u32 2147483647, %v435_v53  ;;  %v571_v61 = vand.u32 2147483647, %v228_v58  ;;  %v760_v0 = vmax.f32 %v664_v55, 0.0  ;;  %v759_v1 = vmax.f32 %v663_v56, 0.0 }
  0xee   :  { %v3756_v63 = vpack.c.bf16 %v758_v54, %v754_v42  ;;  %v666_v2 = vsub.f32 1.0, %v570_v57  ;;  %v761_v3 = vmax.f32 %v665_v59, 0.0  ;;  %v573_v7 = vand.u32 2147483647, %v437_v62 }
  0xef   :  { %v668_v4 = vsub.f32 1.0, %v572_v60  ;;  %v667_v5 = vsub.f32 1.0, %v571_v61  ;;  %v232_v8 = vpop.f32.mrb[10].mxu0  ;;  %v3804_v9 = vpack.c.bf16 %v760_v0, %v756_v45  ;;  %v3754_v10 = vpack.c.bf16 %v759_v1, %v755_v49  ;;  %v441_v12 = vpop.f32.mrb[10].mxu1 }
  0xf0   :  { %v574_v11 = vand.u32 2147483647, %v232_v8  ;;  %v234_v13 = vpop.f32.mrb[11].mxu0  ;;  %v3802_v14 = vpack.c.bf16 %v761_v3, %v757_v50  ;;  %v762_v15 = vmax.f32 %v666_v2, 0.0  ;;  %v669_v16 = vsub.f32 1.0, %v573_v7  ;;  %v443_v17 = vpop.f32.mrb[11].mxu1 }
  0xf1   :  { %v764_v18 = vmax.f32 %v668_v4, 0.0  ;;  %v576_v20 = vand.u32 2147483647, %v441_v12  ;;  %v575_v21 = vand.u32 2147483647, %v234_v13  ;;  %3755 = vmatprep.subr.bf16.mxu0 %v3754_v10  ;;  %v763_v22 = vmax.f32 %v667_v5, 0.0 }
  0xf2   :  { %v670_v19 = vsub.f32 1.0, %v574_v11  ;;  %v765_v23 = vmax.f32 %v669_v16, 0.0  ;;  %v577_v24 = vand.u32 2147483647, %v443_v17  ;;  %3803 = vmatprep.subr.bf16.mxu1 %v3802_v14  ;;  %3757 = vmatpush1.bf16.msra.mxu0 %v3756_v63 }
  0xf3   :  { %v238_v25 = vpop.f32.mrb[12].mxu0  ;;  %v447_v26 = vpop.f32.mrb[12].mxu1  ;;  %v672_v28 = vsub.f32 1.0, %v576_v20  ;;  %v671_v29 = vsub.f32 1.0, %v575_v21  ;;  %3805 = vmatpush1.bf16.msra.mxu1 %v3804_v9 }
  0xf4   :  { %v766_v27 = vmax.f32 %v670_v19, 0.0  ;;  %v578_v30 = vand.u32 2147483647, %v238_v25  ;;  %v240_v31 = vpop.f32.mrb[13].mxu0  ;;  %v673_v32 = vsub.f32 1.0, %v577_v24  ;;  %v449_v35 = vpop.f32.mrb[13].mxu1 }
  0xf5   :  { %v580_v33 = vand.u32 2147483647, %v447_v26  ;;  %v579_v34 = vand.u32 2147483647, %v240_v31  ;;  %v768_v37 = vmax.f32 %v672_v28, 0.0  ;;  %v767_v38 = vmax.f32 %v671_v29, 0.0 }
  0xf6   :  { %v3760_v36 = vpack.c.bf16 %v766_v27, %v762_v15  ;;  %v674_v39 = vsub.f32 1.0, %v578_v30  ;;  %v769_v40 = vmax.f32 %v673_v32, 0.0  ;;  %v581_v43 = vand.u32 2147483647, %v449_v35 }
  0xf7   :  { %v676_v41 = vsub.f32 1.0, %v580_v33  ;;  %v675_v42 = vsub.f32 1.0, %v579_v34  ;;  %v244_v44 = vpop.f32.mrb[14].mxu0  ;;  %v3808_v45 = vpack.c.bf16 %v768_v37, %v764_v18  ;;  %v3758_v46 = vpack.c.bf16 %v767_v38, %v763_v22  ;;  %v453_v48 = vpop.f32.mrb[14].mxu1 }
  0xf8   :  { %v582_v47 = vand.u32 2147483647, %v244_v44  ;;  %v246_v49 = vpop.f32.mrb[15].mxu0  ;;  %v3806_v50 = vpack.c.bf16 %v769_v40, %v765_v23  ;;  %v770_v51 = vmax.f32 %v674_v39, 0.0  ;;  %v677_v52 = vsub.f32 1.0, %v581_v43  ;;  %v455_v53 = vpop.f32.mrb[15].mxu1 }
  0xf9   :  { %v772_v54 = vmax.f32 %v676_v41, 0.0  ;;  %v584_v56 = vand.u32 2147483647, %v453_v48  ;;  %v583_v57 = vand.u32 2147483647, %v246_v49  ;;  %3759 = vmatprep.subr.bf16.mxu0 %v3758_v46  ;;  %v771_v58 = vmax.f32 %v675_v42, 0.0 }
  0xfa   :  { %v678_v55 = vsub.f32 1.0, %v582_v47  ;;  %v773_v59 = vmax.f32 %v677_v52, 0.0  ;;  %v585_v60 = vand.u32 2147483647, %v455_v53  ;;  %3807 = vmatprep.subr.bf16.mxu1 %v3806_v50  ;;  %3761 = vmatpush1.bf16.msra.mxu0 %v3760_v36 }
  0xfb   :  { %v250_v61 = vpop.f32.mrb[16].mxu0  ;;  %v459_v62 = vpop.f32.mrb[16].mxu1  ;;  %v680_v0 = vsub.f32 1.0, %v584_v56  ;;  %v679_v1 = vsub.f32 1.0, %v583_v57  ;;  %3809 = vmatpush1.bf16.msra.mxu1 %v3808_v45 }
  0xfc   :  { %v774_v63 = vmax.f32 %v678_v55, 0.0  ;;  %v586_v2 = vand.u32 2147483647, %v250_v61  ;;  %v252_v3 = vpop.f32.mrb[17].mxu0  ;;  %v681_v4 = vsub.f32 1.0, %v585_v60  ;;  %v461_v8 = vpop.f32.mrb[17].mxu1 }
  0xfd   :  { %v588_v5 = vand.u32 2147483647, %v459_v62  ;;  %v587_v7 = vand.u32 2147483647, %v252_v3  ;;  %v776_v10 = vmax.f32 %v680_v0, 0.0  ;;  %v775_v11 = vmax.f32 %v679_v1, 0.0 }
  0xfe   :  { %v3764_v9 = vpack.c.bf16 %v774_v63, %v770_v51  ;;  %v682_v12 = vsub.f32 1.0, %v586_v2  ;;  %v777_v13 = vmax.f32 %v681_v4, 0.0  ;;  %v589_v16 = vand.u32 2147483647, %v461_v8 }
  0xff   :  { %v684_v14 = vsub.f32 1.0, %v588_v5  ;;  %v683_v15 = vsub.f32 1.0, %v587_v7  ;;  %v256_v17 = vpop.f32.mrb[18].mxu0  ;;  %v3812_v18 = vpack.c.bf16 %v776_v10, %v772_v54  ;;  %v3762_v19 = vpack.c.bf16 %v775_v11, %v771_v58  ;;  %v465_v21 = vpop.f32.mrb[18].mxu1 }
 0x100   :  { %v590_v20 = vand.u32 2147483647, %v256_v17  ;;  %v258_v22 = vpop.f32.mrb[19].mxu0  ;;  %v3810_v23 = vpack.c.bf16 %v777_v13, %v773_v59  ;;  %v778_v24 = vmax.f32 %v682_v12, 0.0  ;;  %v685_v25 = vsub.f32 1.0, %v589_v16  ;;  %v467_v26 = vpop.f32.mrb[19].mxu1 }
 0x101   :  { %v780_v27 = vmax.f32 %v684_v14, 0.0  ;;  %v592_v29 = vand.u32 2147483647, %v465_v21  ;;  %v591_v30 = vand.u32 2147483647, %v258_v22  ;;  %3763 = vmatprep.subr.bf16.mxu0 %v3762_v19  ;;  %v779_v31 = vmax.f32 %v683_v15, 0.0 }
 0x102   :  { %v686_v28 = vsub.f32 1.0, %v590_v20  ;;  %v781_v32 = vmax.f32 %v685_v25, 0.0  ;;  %v593_v33 = vand.u32 2147483647, %v467_v26  ;;  %3811 = vmatprep.subr.bf16.mxu1 %v3810_v23  ;;  %3765 = vmatpush1.bf16.msra.mxu0 %v3764_v9 }
 0x103   :  { %v262_v34 = vpop.f32.mrb[20].mxu0  ;;  %v471_v35 = vpop.f32.mrb[20].mxu1  ;;  %v688_v37 = vsub.f32 1.0, %v592_v29  ;;  %v687_v38 = vsub.f32 1.0, %v591_v30  ;;  %3813 = vmatpush1.bf16.msra.mxu1 %v3812_v18 }
 0x104   :  { %v782_v36 = vmax.f32 %v686_v28, 0.0  ;;  %v594_v39 = vand.u32 2147483647, %v262_v34  ;;  %v264_v40 = vpop.f32.mrb[21].mxu0  ;;  %v689_v41 = vsub.f32 1.0, %v593_v33  ;;  %v473_v44 = vpop.f32.mrb[21].mxu1 }
 0x105   :  { %v596_v42 = vand.u32 2147483647, %v471_v35  ;;  %v595_v43 = vand.u32 2147483647, %v264_v40  ;;  %v784_v46 = vmax.f32 %v688_v37, 0.0  ;;  %v783_v47 = vmax.f32 %v687_v38, 0.0 }
 0x106   :  { %v3768_v45 = vpack.c.bf16 %v782_v36, %v778_v24  ;;  %v690_v48 = vsub.f32 1.0, %v594_v39  ;;  %v785_v49 = vmax.f32 %v689_v41, 0.0  ;;  %v597_v52 = vand.u32 2147483647, %v473_v44 }
 0x107   :  { %v692_v50 = vsub.f32 1.0, %v596_v42  ;;  %v691_v51 = vsub.f32 1.0, %v595_v43  ;;  %v268_v53 = vpop.f32.mrb[22].mxu0  ;;  %v3816_v54 = vpack.c.bf16 %v784_v46, %v780_v27  ;;  %v3766_v55 = vpack.c.bf16 %v783_v47, %v779_v31  ;;  %v477_v57 = vpop.f32.mrb[22].mxu1 }
 0x108   :  { %v598_v56 = vand.u32 2147483647, %v268_v53  ;;  %v270_v58 = vpop.f32.mrb[23].mxu0  ;;  %v3814_v59 = vpack.c.bf16 %v785_v49, %v781_v32  ;;  %v786_v60 = vmax.f32 %v690_v48, 0.0  ;;  %v693_v61 = vsub.f32 1.0, %v597_v52  ;;  %v479_v62 = vpop.f32.mrb[23].mxu1 }
 0x109   :  { %v788_v63 = vmax.f32 %v692_v50, 0.0  ;;  %v600_v1 = vand.u32 2147483647, %v477_v57  ;;  %v599_v2 = vand.u32 2147483647, %v270_v58  ;;  %3767 = vmatprep.subr.bf16.mxu0 %v3766_v55  ;;  %v787_v3 = vmax.f32 %v691_v51, 0.0 }
 0x10a   :  { %v694_v0 = vsub.f32 1.0, %v598_v56  ;;  %v789_v4 = vmax.f32 %v693_v61, 0.0  ;;  %v601_v5 = vand.u32 2147483647, %v479_v62  ;;  %3815 = vmatprep.subr.bf16.mxu1 %v3814_v59  ;;  %3769 = vmatpush1.bf16.msra.mxu0 %v3768_v45 }
 0x10b   :  { %v274_v7 = vpop.f32.mrb[24].mxu0  ;;  %v483_v8 = vpop.f32.mrb[24].mxu1  ;;  %v696_v10 = vsub.f32 1.0, %v600_v1  ;;  %v695_v11 = vsub.f32 1.0, %v599_v2  ;;  %3817 = vmatpush1.bf16.msra.mxu1 %v3816_v54 }
 0x10c   :  { %v790_v9 = vmax.f32 %v694_v0, 0.0  ;;  %v602_v12 = vand.u32 2147483647, %v274_v7  ;;  %v276_v13 = vpop.f32.mrb[25].mxu0  ;;  %v697_v14 = vsub.f32 1.0, %v601_v5  ;;  %v485_v17 = vpop.f32.mrb[25].mxu1 }
 0x10d   :  { %v604_v15 = vand.u32 2147483647, %v483_v8  ;;  %v603_v16 = vand.u32 2147483647, %v276_v13  ;;  %v792_v19 = vmax.f32 %v696_v10, 0.0  ;;  %v791_v20 = vmax.f32 %v695_v11, 0.0 }
 0x10e   :  { %v3772_v18 = vpack.c.bf16 %v790_v9, %v786_v60  ;;  %v698_v21 = vsub.f32 1.0, %v602_v12  ;;  %v793_v22 = vmax.f32 %v697_v14, 0.0  ;;  %v605_v25 = vand.u32 2147483647, %v485_v17 }
 0x10f   :  { %v700_v23 = vsub.f32 1.0, %v604_v15  ;;  %v699_v24 = vsub.f32 1.0, %v603_v16  ;;  %v280_v26 = vpop.f32.mrb[26].mxu0  ;;  %v3820_v27 = vpack.c.bf16 %v792_v19, %v788_v63  ;;  %v3770_v28 = vpack.c.bf16 %v791_v20, %v787_v3  ;;  %v489_v30 = vpop.f32.mrb[26].mxu1 }
 0x110   :  { %v606_v29 = vand.u32 2147483647, %v280_v26  ;;  %v282_v31 = vpop.f32.mrb[27].mxu0  ;;  %v3818_v32 = vpack.c.bf16 %v793_v22, %v789_v4  ;;  %v794_v33 = vmax.f32 %v698_v21, 0.0  ;;  %v701_v34 = vsub.f32 1.0, %v605_v25  ;;  %v491_v35 = vpop.f32.mrb[27].mxu1 }
 0x111   :  { %v796_v36 = vmax.f32 %v700_v23, 0.0  ;;  %v608_v38 = vand.u32 2147483647, %v489_v30  ;;  %v607_v39 = vand.u32 2147483647, %v282_v31  ;;  %3771 = vmatprep.subr.bf16.mxu0 %v3770_v28  ;;  %v795_v40 = vmax.f32 %v699_v24, 0.0 }
 0x112   :  { %v702_v37 = vsub.f32 1.0, %v606_v29  ;;  %v797_v41 = vmax.f32 %v701_v34, 0.0  ;;  %v609_v42 = vand.u32 2147483647, %v491_v35  ;;  %3819 = vmatprep.subr.bf16.mxu1 %v3818_v32  ;;  %3773 = vmatpush1.bf16.msra.mxu0 %v3772_v18 }
 0x113   :  { %v286_v43 = vpop.f32.mrb[28].mxu0  ;;  %v495_v44 = vpop.f32.mrb[28].mxu1  ;;  %v704_v46 = vsub.f32 1.0, %v608_v38  ;;  %v703_v47 = vsub.f32 1.0, %v607_v39  ;;  %3821 = vmatpush1.bf16.msra.mxu1 %v3820_v27 }
 0x114   :  { %v798_v45 = vmax.f32 %v702_v37, 0.0  ;;  %v610_v48 = vand.u32 2147483647, %v286_v43  ;;  %v288_v49 = vpop.f32.mrb[29].mxu0  ;;  %v705_v50 = vsub.f32 1.0, %v609_v42  ;;  %v497_v53 = vpop.f32.mrb[29].mxu1 }
 0x115   :  { %v612_v51 = vand.u32 2147483647, %v495_v44  ;;  %v611_v52 = vand.u32 2147483647, %v288_v49  ;;  %v800_v55 = vmax.f32 %v704_v46, 0.0  ;;  %v799_v56 = vmax.f32 %v703_v47, 0.0 }
 0x116   :  { %v3776_v54 = vpack.c.bf16 %v798_v45, %v794_v33  ;;  %v706_v57 = vsub.f32 1.0, %v610_v48  ;;  %v801_v58 = vmax.f32 %v705_v50, 0.0  ;;  %v613_v61 = vand.u32 2147483647, %v497_v53 }
 0x117   :  { %v708_v59 = vsub.f32 1.0, %v612_v51  ;;  %v707_v60 = vsub.f32 1.0, %v611_v52  ;;  %v292_v62 = vpop.f32.mrb[30].mxu0  ;;  %v3824_v63 = vpack.c.bf16 %v800_v55, %v796_v36  ;;  %v3774_v0 = vpack.c.bf16 %v799_v56, %v795_v40  ;;  %v501_v2 = vpop.f32.mrb[30].mxu1 }
 0x118   :  { %v614_v1 = vand.u32 2147483647, %v292_v62  ;;  %v294_v3 = vpop.f32.mrb[31].mxu0  ;;  %v3822_v4 = vpack.c.bf16 %v801_v58, %v797_v41  ;;  %v802_v5 = vmax.f32 %v706_v57, 0.0  ;;  %v709_v7 = vsub.f32 1.0, %v613_v61  ;;  %v503_v8 = vpop.f32.mrb[31].mxu1 }
 0x119   :  { %v804_v9 = vmax.f32 %v708_v59, 0.0  ;;  %v616_v11 = vand.u32 2147483647, %v501_v2  ;;  %v615_v12 = vand.u32 2147483647, %v294_v3  ;;  %3775 = vmatprep.subr.bf16.mxu0 %v3774_v0  ;;  %v803_v13 = vmax.f32 %v707_v60, 0.0 }
 0x11a   :  { %v710_v10 = vsub.f32 1.0, %v614_v1  ;;  %v805_v14 = vmax.f32 %v709_v7, 0.0  ;;  %v617_v15 = vand.u32 2147483647, %v503_v8  ;;  %3823 = vmatprep.subr.bf16.mxu1 %v3822_v4  ;;  %3777 = vmatpush1.bf16.msra.mxu0 %v3776_v54 }
 0x11b   :  { %v298_v16 = vpop.f32.mrb[32].mxu0  ;;  %v507_v17 = vpop.f32.mrb[32].mxu1  ;;  %v712_v19 = vsub.f32 1.0, %v616_v11  ;;  %v711_v20 = vsub.f32 1.0, %v615_v12  ;;  %3825 = vmatpush1.bf16.msra.mxu1 %v3824_v63 }
 0x11c   :  { %v806_v18 = vmax.f32 %v710_v10, 0.0  ;;  %v618_v21 = vand.u32 2147483647, %v298_v16  ;;  %v300_v22 = vpop.f32.mrb[33].mxu0  ;;  %v713_v23 = vsub.f32 1.0, %v617_v15  ;;  %v509_v26 = vpop.f32.mrb[33].mxu1 }
 0x11d   :  { %v620_v24 = vand.u32 2147483647, %v507_v17  ;;  %v619_v25 = vand.u32 2147483647, %v300_v22  ;;  %v808_v28 = vmax.f32 %v712_v19, 0.0  ;;  %v807_v29 = vmax.f32 %v711_v20, 0.0 }
 0x11e   :  { %v3780_v27 = vpack.c.bf16 %v806_v18, %v802_v5  ;;  %v714_v30 = vsub.f32 1.0, %v618_v21  ;;  %v809_v31 = vmax.f32 %v713_v23, 0.0  ;;  %v621_v34 = vand.u32 2147483647, %v509_v26 }
 0x11f   :  { %v716_v32 = vsub.f32 1.0, %v620_v24  ;;  %v715_v33 = vsub.f32 1.0, %v619_v25  ;;  %v304_v35 = vpop.f32.mrb[34].mxu0  ;;  %v3828_v36 = vpack.c.bf16 %v808_v28, %v804_v9  ;;  %v3778_v37 = vpack.c.bf16 %v807_v29, %v803_v13  ;;  %v513_v39 = vpop.f32.mrb[34].mxu1 }
 0x120   :  { %v622_v38 = vand.u32 2147483647, %v304_v35  ;;  %v306_v40 = vpop.f32.mrb[35].mxu0  ;;  %v3826_v41 = vpack.c.bf16 %v809_v31, %v805_v14  ;;  %v810_v42 = vmax.f32 %v714_v30, 0.0  ;;  %v515_v43 = vpop.f32.mrb[35].mxu1  ;;  %v717_v49 = vsub.f32 1.0, %v621_v34 }
 0x121   :  { %v812_v44 = vmax.f32 %v716_v32, 0.0  ;;  %v624_v46 = vand.u32 2147483647, %v513_v39  ;;  %v623_v47 = vand.u32 2147483647, %v306_v40  ;;  %3779 = vmatprep.subr.bf16.mxu0 %v3778_v37  ;;  %v811_v48 = vmax.f32 %v715_v33, 0.0 }
 0x122   :  { %v718_v45 = vsub.f32 1.0, %v622_v38  ;;  %v625_v50 = vand.u32 2147483647, %v515_v43  ;;  %3827 = vmatprep.subr.bf16.mxu1 %v3826_v41  ;;  %3781 = vmatpush1.bf16.msra.mxu0 %v3780_v27  ;;  %v813_v2 = vmax.f32 %v717_v49, 0.0 }
 0x123   :  { %v310_v51 = vpop.f32.mrb[36].mxu0  ;;  %v519_v52 = vpop.f32.mrb[36].mxu1  ;;  %v720_v54 = vsub.f32 1.0, %v624_v46  ;;  %v719_v55 = vsub.f32 1.0, %v623_v47  ;;  %3829 = vmatpush1.bf16.msra.mxu1 %v3828_v36 }
 0x124   :  { %v814_v53 = vmax.f32 %v718_v45, 0.0  ;;  %v626_v56 = vand.u32 2147483647, %v310_v51  ;;  %v312_v57 = vpop.f32.mrb[37].mxu0  ;;  %v721_v58 = vsub.f32 1.0, %v625_v50  ;;  %v521_v61 = vpop.f32.mrb[37].mxu1 }
 0x125   :  { %v628_v59 = vand.u32 2147483647, %v519_v52  ;;  %v627_v60 = vand.u32 2147483647, %v312_v57  ;;  %v816_v63 = vmax.f32 %v720_v54, 0.0  ;;  %v815_v0 = vmax.f32 %v719_v55, 0.0 }
 0x126   :  { %v3784_v62 = vpack.c.bf16 %v814_v53, %v810_v42  ;;  %v722_v1 = vsub.f32 1.0, %v626_v56  ;;  %v817_v3 = vmax.f32 %v721_v58, 0.0  ;;  %v629_v5 = vand.u32 2147483647, %v521_v61 }
 0x127   :  { %v724_v4 = vsub.f32 1.0, %v628_v59  ;;  %v316_v7 = vpop.f32.mrb[38].mxu0  ;;  %v3832_v8 = vpack.c.bf16 %v816_v63, %v812_v44  ;;  %v3782_v9 = vpack.c.bf16 %v815_v0, %v811_v48  ;;  %v525_v11 = vpop.f32.mrb[38].mxu1  ;;  %v723_v14 = vsub.f32 1.0, %v627_v60 }
 0x128   :  { %v630_v10 = vand.u32 2147483647, %v316_v7  ;;  %v318_v12 = vpop.f32.mrb[39].mxu0  ;;  %v3830_v13 = vpack.c.bf16 %v817_v3, %v813_v2  ;;  %v527_v15 = vpop.f32.mrb[39].mxu1  ;;  %v818_v16 = vmax.f32 %v722_v1, 0.0  ;;  %v725_v21 = vsub.f32 1.0, %v629_v5 }
 0x129   :  { %v632_v18 = vand.u32 2147483647, %v525_v11  ;;  %v631_v19 = vand.u32 2147483647, %v318_v12  ;;  %3783 = vmatprep.subr.bf16.mxu0 %v3782_v9  ;;  %v820_v20 = vmax.f32 %v724_v4, 0.0  ;;  %v819_v34 = vmax.f32 %v723_v14, 0.0 }
 0x12a   :  { %v726_v17 = vsub.f32 1.0, %v630_v10  ;;  %v633_v22 = vand.u32 2147483647, %v527_v15  ;;  %3831 = vmatprep.subr.bf16.mxu1 %v3830_v13  ;;  %3785 = vmatpush1.bf16.msra.mxu0 %v3784_v62  ;;  %v821_v38 = vmax.f32 %v725_v21, 0.0 }
 0x12b   :  { %v322_v23 = vpop.f32.mrb[40].mxu0  ;;  %v531_v24 = vpop.f32.mrb[40].mxu1  ;;  %v728_v26 = vsub.f32 1.0, %v632_v18  ;;  %v727_v27 = vsub.f32 1.0, %v631_v19  ;;  %3833 = vmatpush1.bf16.msra.mxu1 %v3832_v8 }
 0x12c   :  { %v822_v25 = vmax.f32 %v726_v17, 0.0  ;;  %v634_v28 = vand.u32 2147483647, %v322_v23  ;;  %v324_v29 = vpop.f32.mrb[41].mxu0  ;;  %v729_v30 = vsub.f32 1.0, %v633_v22  ;;  %v533_v33 = vpop.f32.mrb[41].mxu1 }
 0x12d   :  { %v636_v31 = vand.u32 2147483647, %v531_v24  ;;  %v635_v32 = vand.u32 2147483647, %v324_v29  ;;  %v824_v36 = vmax.f32 %v728_v26, 0.0  ;;  %v823_v37 = vmax.f32 %v727_v27, 0.0 }
 0x12e   :  { %v3788_v35 = vpack.c.bf16 %v822_v25, %v818_v16  ;;  %v825_v39 = vmax.f32 %v729_v30, 0.0  ;;  %v730_v40 = vsub.f32 1.0, %v634_v28  ;;  %v637_v41 = vand.u32 2147483647, %v533_v33 }
 0x12f   :  { %v328_v42 = vpop.f32.mrb[42].mxu0  ;;  %v3836_v43 = vpack.c.bf16 %v824_v36, %v820_v20  ;;  %v3786_v44 = vpack.c.bf16 %v823_v37, %v819_v34  ;;  %v537_v46 = vpop.f32.mrb[42].mxu1  ;;  %v732_v49 = vsub.f32 1.0, %v636_v31  ;;  %v731_v50 = vsub.f32 1.0, %v635_v32 }
 0x130   :  { %v638_v45 = vand.u32 2147483647, %v328_v42  ;;  %v330_v47 = vpop.f32.mrb[43].mxu0  ;;  %v3834_v48 = vpack.c.bf16 %v825_v39, %v821_v38  ;;  %v539_v51 = vpop.f32.mrb[43].mxu1  ;;  %v640_v53 = vand.u32 2147483647, %v537_v46 }
 0x131   :  { %v639_v54 = vand.u32 2147483647, %v330_v47  ;;  %3787 = vmatprep.subr.bf16.mxu0 %v3786_v44  ;;  %v826_v55 = vmax.f32 %v730_v40, 0.0  ;;  %v733_v56 = vsub.f32 1.0, %v637_v41  ;;  %v641_v57 = vand.u32 2147483647, %v539_v51  ;;  %v4519_v46 = vpop.permute.xlu0 %1057 }
 0x132   :  { %v734_v52 = vsub.f32 1.0, %v638_v45  ;;  %3835 = vmatprep.subr.bf16.mxu1 %v3834_v48  ;;  %3789 = vmatpush1.bf16.msra.mxu0 %v3788_v35  ;;  %v736_v61 = vsub.f32 1.0, %v640_v53  ;;  %v828_v1 = vmax.f32 %v732_v49, 0.0  ;;  %v827_v2 = vmax.f32 %v731_v50, 0.0  ;;  %v4033_v45 = vld [vmem:[%s8763_s2] sm:$0x77]  ;;  %v4523_v48 = vpop.permute.xlu1 %1887 }
 0x133   :  { %v334_v58 = vpop.f32.mrb[44].mxu0  ;;  %v543_v59 = vpop.f32.mrb[44].mxu1  ;;  %v735_v62 = vsub.f32 1.0, %v639_v54  ;;  %3837 = vmatpush1.bf16.msra.mxu1 %v3836_v43  ;;  %v737_v3 = vsub.f32 1.0, %v641_v57  ;;  %v829_v11 = vmax.f32 %v733_v56, 0.0  ;;  %9276 = vst [vmem:[#allocation5_spill] sm:$0xff] %v4523_v48 }
 0x134   :  { %v830_v60 = vmax.f32 %v734_v52, 0.0  ;;  %v642_v63 = vand.u32 2147483647, %v334_v58  ;;  %v336_v0 = vpop.f32.mrb[45].mxu0  ;;  %v644_v4 = vand.u32 2147483647, %v543_v59 }
 0x135   :  { %v545_v5 = vpop.f32.mrb[45].mxu1  ;;  %v832_v8 = vmax.f32 %v736_v61, 0.0  ;;  %v831_v9 = vmax.f32 %v735_v62, 0.0  ;;  %v643_v10 = vand.u32 2147483647, %v336_v0  ;;  %v833_v12 = vmax.f32 %v737_v3, 0.0  ;;  %v4521_v47 = vpop.permute.xlu0 %1062 }
 0x136   :  { %v3792_v7 = vpack.c.bf16 %v830_v60, %v826_v55  ;;  %v645_v13 = vand.u32 2147483647, %v545_v5  ;;  %v738_v17 = vsub.f32 1.0, %v642_v63  ;;  %v740_v22 = vsub.f32 1.0, %v644_v4  ;;  %v4527_v50 = vpop.permute.xlu1 %1892 }
 0x137   :  { %v340_v14 = vpop.f32.mrb[46].mxu0  ;;  %v3840_v15 = vpack.c.bf16 %v832_v8, %v828_v1  ;;  %v3790_v16 = vpack.c.bf16 %v831_v9, %v827_v2  ;;  %v549_v19 = vpop.f32.mrb[46].mxu1  ;;  %v3838_v21 = vpack.c.bf16 %v833_v12, %v829_v11  ;;  %v739_v24 = vsub.f32 1.0, %v643_v10  ;;  %9278 = vst [vmem:[#allocation7_spill] sm:$0xff] %v4527_v50 }
 0x138   :  { %v646_v18 = vand.u32 2147483647, %v340_v14  ;;  %v342_v20 = vpop.f32.mrb[47].mxu0  ;;  %v551_v23 = vpop.f32.mrb[47].mxu1  ;;  %v648_v26 = vand.u32 2147483647, %v549_v19 }
 0x139   :  { %v647_v27 = vand.u32 2147483647, %v342_v20  ;;  %3791 = vmatprep.subr.bf16.mxu0 %v3790_v16  ;;  %v741_v28 = vsub.f32 1.0, %v645_v13  ;;  %v649_v29 = vand.u32 2147483647, %v551_v23  ;;  %3839 = vmatprep.subr.bf16.mxu1 %v3838_v21  ;;  %v834_v30 = vmax.f32 %v738_v17, 0.0  ;;  %v4525_v49 = vpop.permute.xlu0 %1067 }
 0x13a   :  { %v742_v25 = vsub.f32 1.0, %v646_v18  ;;  %3793 = vmatpush1.bf16.msra.mxu0 %v3792_v7  ;;  %v744_v32 = vsub.f32 1.0, %v648_v26  ;;  %3841 = vmatpush1.bf16.msra.mxu1 %v3840_v15  ;;  %v836_v34 = vmax.f32 %v740_v22, 0.0  ;;  %v835_v36 = vmax.f32 %v739_v24, 0.0  ;;  %9277 = vst [vmem:[#allocation6_spill] sm:$0xff] %v4525_v49  ;;  %v4531_v52 = vpop.permute.xlu1 %1072 }
 0x13b   :  { %v743_v33 = vsub.f32 1.0, %v647_v27  ;;  %v745_v35 = vsub.f32 1.0, %v649_v29  ;;  %v837_v40 = vmax.f32 %v741_v28, 0.0 }
 0x13c   :  { %v838_v31 = vmax.f32 %v742_v25, 0.0  ;;  %v840_v38 = vmax.f32 %v744_v32, 0.0 }
 0x13d   :  { %v839_v39 = vmax.f32 %v743_v33, 0.0  ;;  %v841_v41 = vmax.f32 %v745_v35, 0.0  ;;  %v4529_v51 = vpop.permute.xlu0 %1897 }
 0x13e   :  { %v3796_v37 = vpack.c.bf16 %v838_v31, %v834_v30  ;;  %v3844_v42 = vpack.c.bf16 %v840_v38, %v836_v34  ;;  %9279 = vst [vmem:[#allocation8_spill] sm:$0xff] %v4529_v51  ;;  %v4535_v54 = vpop.permute.xlu1 %1902 }
 0x13f   :  { %v3794_v43 = vpack.c.bf16 %v839_v39, %v835_v36  ;;  %v3842_v44 = vpack.c.bf16 %v841_v41, %v837_v40  ;;  %9280 = vst [vmem:[#allocation9_spill] sm:$0xff] %v4535_v54 }
 0x141   :  { %3795 = vmatprep.subr.bf16.mxu0 %v3794_v43  ;;  %3843 = vmatprep.subr.bf16.mxu1 %v3842_v44  ;;  %v4533_v53 = vpop.permute.xlu0 %1077 }
 0x142   :  { %3797 = vmatpush1.bf16.msra.mxu0 %v3796_v37  ;;  %3845 = vmatpush1.bf16.msra.mxu1 %v3844_v42  ;;  %v4539_v56 = vpop.permute.xlu1 %1082 }
 0x143   :  { %9282 = vst [vmem:[#allocation11_spill] sm:$0xff] %v4539_v56 }
 0x145   :  { %913 = vmatmul.mubr.f32.vlgmr.msra.gmra.mrb[48].mxu0 %v4033_v45  ;;  %984 = vmatmul.mubr.f32.vlgmr.msra.gmra.mrb[48].mxu1 %v4033_v45  ;;  %v4537_v55 = vpop.permute.xlu0 %1907 }
 0x146   :  { %9281 = vst [vmem:[#allocation10_spill] sm:$0xff] %v4537_v55  ;;  %v4543_v58 = vpop.permute.xlu1 %1912 }
 0x147   :  { %9283 = vst [vmem:[#allocation12_spill] sm:$0xff] %v4543_v58 }
 0x149   :  { %v4541_v57 = vpop.permute.xlu0 %1087 }
 0x14a   :  { %v4547_v60 = vpop.permute.xlu1 %1092 }
 0x14d   :  { %v4545_v59 = vpop.permute.xlu0 %1917 }
 0x14e   :  { %9284 = vst [vmem:[#allocation13_spill] sm:$0xff] %v4545_v59  ;;  %v4551_v62 = vpop.permute.xlu1 %1922 }
 0x14f   :  { %9285 = vst [vmem:[#allocation14_spill] sm:$0xff] %v4551_v62 }
 0x151   :  { %v4549_v61 = vpop.permute.xlu0 %1097 }
 0x152   :  { %v4555_v0 = vpop.permute.xlu1 %1102 }
 0x155   :  { %v4553_v63 = vpop.permute.xlu0 %1927 }
 0x156   :  { %9286 = vst [vmem:[#allocation15_spill] sm:$0xff] %v4553_v63  ;;  %v4559_v2 = vpop.permute.xlu1 %1932 }
 0x157   :  { %9287 = vst [vmem:[#allocation16_spill] sm:$0xff] %v4559_v2 }
 0x159   :  { %v4557_v1 = vpop.permute.xlu0 %1107 }
 0x15a   :  { %v4563_v4 = vpop.permute.xlu1 %1112 }
 0x15d   :  { %v4561_v3 = vpop.permute.xlu0 %1937 }
 0x15e   :  { %9288 = vst [vmem:[#allocation17_spill] sm:$0xff] %v4561_v3  ;;  %v4567_v7 = vpop.permute.xlu1 %1942 }
 0x15f   :  { %9289 = vst [vmem:[#allocation18_spill] sm:$0xff] %v4567_v7 }
 0x161   :  { %v4565_v5 = vpop.permute.xlu0 %1117 }
 0x162   :  { %v4571_v9 = vpop.permute.xlu1 %1122 }
 0x165   :  { %v4569_v8 = vpop.permute.xlu0 %1947 }
 0x166   :  { %9290 = vst [vmem:[#allocation19_spill] sm:$0xff] %v4569_v8  ;;  %v4575_v11 = vpop.permute.xlu1 %1952 }
 0x167   :  { %9291 = vst [vmem:[#allocation20_spill] sm:$0xff] %v4575_v11 }
 0x169   :  { %v4573_v10 = vpop.permute.xlu0 %1127 }
 0x16a   :  { %v4579_v13 = vpop.permute.xlu1 %1132 }
 0x16d   :  { %v4577_v12 = vpop.permute.xlu0 %1957 }
 0x16e   :  { %9292 = vst [vmem:[#allocation21_spill] sm:$0xff] %v4577_v12  ;;  %v4583_v15 = vpop.permute.xlu1 %1962 }
 0x16f   :  { %9294 = vst [vmem:[#allocation23_spill] sm:$0xff] %v4583_v15 }
 0x171   :  { %v4581_v14 = vpop.permute.xlu0 %1137 }
 0x172   :  { %9293 = vst [vmem:[#allocation22_spill] sm:$0xff] %v4581_v14  ;;  %v4587_v17 = vpop.permute.xlu1 %1142 }
 0x173   :  { %9296 = vst [vmem:[#allocation25_spill] sm:$0xff] %v4587_v17 }
 0x175   :  { %v4585_v16 = vpop.permute.xlu0 %1967 }
 0x176   :  { %9295 = vst [vmem:[#allocation24_spill] sm:$0xff] %v4585_v16  ;;  %v4591_v19 = vpop.permute.xlu1 %1972 }
 0x177   :  { %9298 = vst [vmem:[#allocation27_spill] sm:$0xff] %v4591_v19 }
 0x179   :  { %v4589_v18 = vpop.permute.xlu0 %1147 }
 0x17a   :  { %9297 = vst [vmem:[#allocation26_spill] sm:$0xff] %v4589_v18  ;;  %v4595_v21 = vpop.permute.xlu1 %1152 }
 0x17b   :  { %9300 = vst [vmem:[#allocation29_spill] sm:$0xff] %v4595_v21 }
 0x17d   :  { %v4593_v20 = vpop.permute.xlu0 %1977 }
 0x17e   :  { %9299 = vst [vmem:[#allocation28_spill] sm:$0xff] %v4593_v20  ;;  %v4599_v23 = vpop.permute.xlu1 %1982 }
 0x17f   :  { %9302 = vst [vmem:[#allocation31_spill] sm:$0xff] %v4599_v23 }
 0x181   :  { %v4597_v22 = vpop.permute.xlu0 %1157 }
 0x182   :  { %9301 = vst [vmem:[#allocation30_spill] sm:$0xff] %v4597_v22  ;;  %v4603_v25 = vpop.permute.xlu1 %1162 }
 0x183   :  { %9304 = vst [vmem:[#allocation33_spill] sm:$0xff] %v4603_v25 }
 0x185   :  { %v4601_v24 = vpop.permute.xlu0 %1987 }
 0x186   :  { %9303 = vst [vmem:[#allocation32_spill] sm:$0xff] %v4601_v24  ;;  %v4607_v27 = vpop.permute.xlu1 %1992 }
 0x187   :  { %9306 = vst [vmem:[#allocation35_spill] sm:$0xff] %v4607_v27 }
 0x189   :  { %v4605_v26 = vpop.permute.xlu0 %1167 }
 0x18a   :  { %9305 = vst [vmem:[#allocation34_spill] sm:$0xff] %v4605_v26  ;;  %v4611_v29 = vpop.permute.xlu1 %1172 }
 0x18b   :  { %9308 = vst [vmem:[#allocation37_spill] sm:$0xff] %v4611_v29 }
 0x18d   :  { %v4609_v28 = vpop.permute.xlu0 %1997 }
 0x18e   :  { %9307 = vst [vmem:[#allocation36_spill] sm:$0xff] %v4609_v28  ;;  %v4615_v31 = vpop.permute.xlu1 %2002 }
 0x18f   :  { %9310 = vst [vmem:[#allocation39_spill] sm:$0xff] %v4615_v31 }
 0x191   :  { %v4613_v30 = vpop.permute.xlu0 %1177 }
 0x192   :  { %9309 = vst [vmem:[#allocation38_spill] sm:$0xff] %v4613_v30  ;;  %v4619_v33 = vpop.permute.xlu1 %1182 }
 0x193   :  { %9312 = vst [vmem:[#allocation41_spill] sm:$0xff] %v4619_v33 }
 0x195   :  { %v4617_v32 = vpop.permute.xlu0 %2007 }
 0x196   :  { %9311 = vst [vmem:[#allocation40_spill] sm:$0xff] %v4617_v32  ;;  %v4623_v35 = vpop.permute.xlu1 %2012  ;;  %v9355_v55 = vld [vmem:[#allocation39_spill] sm:$0xff] }
 0x197   :  { %9314 = vst [vmem:[#allocation43_spill] sm:$0xff] %v4623_v35  ;;  %v8784_v35 = vlaneseq }
 0x199   :  { %v4621_v34 = vpop.permute.xlu0 %1187  ;;  %v4644_v28 = vshrl.u32 %v8784_v35, 7 }
 0x19a   :  { %9313 = vst [vmem:[#allocation42_spill] sm:$0xff] %v4621_v34  ;;  %v4627_v37 = vpop.permute.xlu1 %1192 }
 0x19b   :  { %9316 = vst [vmem:[#allocation45_spill] sm:$0xff] %v4627_v37  ;;  %9324 = vst [vmem:[#allocation53_spill] sm:$0xff] %v4644_v28  ;;  %v4649_v23 = vsub.s32 1, %v4644_v28 }
 0x19d   :  { %v4625_v36 = vpop.permute.xlu0 %2017  ;;  %9326 = vst [vmem:[#allocation55_spill] sm:$0xff] %v4649_v23  ;;  %v9356_v63 = vld [vmem:[#allocation40_spill] sm:$0xff] }
 0x19e   :  { %9315 = vst [vmem:[#allocation44_spill] sm:$0xff] %v4625_v36  ;;  %v4631_v39 = vpop.permute.xlu1 %2022 }
 0x19f   :  { %9318 = vst [vmem:[#allocation47_spill] sm:$0xff] %v4631_v39 }
 0x1a1   :  { %v4629_v38 = vpop.permute.xlu0 %1197 }
 0x1a2   :  { %9317 = vst [vmem:[#allocation46_spill] sm:$0xff] %v4629_v38  ;;  %v4635_v45 = vpop.permute.xlu1 %1202 }
 0x1a3   :  { %9320 = vst [vmem:[#allocation49_spill] sm:$0xff] %v4635_v45 }
 0x1a5   :  { %v4633_v44 = vpop.permute.xlu0 %2027 }
 0x1a6   :  { %9319 = vst [vmem:[#allocation48_spill] sm:$0xff] %v4633_v44  ;;  %v4639_v32 = vpop.permute.xlu1 %2032  ;;  %v9359_v7 = vld [vmem:[#allocation47_spill] sm:$0xff] }
 0x1a7   :  { %9322 = vst [vmem:[#allocation51_spill] sm:$0xff] %v4639_v32 }
 0x1a9   :  { %v4637_v6 = vpop.permute.xlu0 %1207 }
 0x1aa   :  { %9321 = vst [vmem:[#allocation50_spill] sm:$0xff] %v4637_v6  ;;  %v4646_v27 = vpop.permute.xlu1 %1212 }
 0x1ab   :  { %9325 = vst [vmem:[#allocation54_spill] sm:$0xff] %v4646_v27 }
 0x1ad   :  { %v4641_v31 = vpop.permute.xlu0 %2037  ;;  %v9360_v8 = vld [vmem:[#allocation48_spill] sm:$0xff] }
 0x1ae   :  { %9323 = vst [vmem:[#allocation52_spill] sm:$0xff] %v4641_v31  ;;  %v4655_v19 = vpop.permute.xlu1 %2042 }
 0x1af   :  { %9329 = vst [vmem:[#allocation58_spill] sm:$0xff] %v4655_v19 }
 0x1b1   :  { %v4653_v20 = vpop.permute.xlu0 %1217 }
 0x1b2   :  { %9328 = vst [vmem:[#allocation57_spill] sm:$0xff] %v4653_v20  ;;  %v4669_v12 = vpop.permute.xlu1 %1222 }
 0x1b3   :  { %9333 = vst [vmem:[#allocation62_spill] sm:$0xff] %v4669_v12 }
 0x1b5   :  { %v4661_v31 = vpop.permute.xlu0 %2047 }
 0x1b6   :  { %9331 = vst [vmem:[#allocation60_spill] sm:$0xff] %v4661_v31 }
 0x1bd   :  { %v9364_v2 = vld [vmem:[#allocation60_spill] sm:$0xff] }
 0x218   :  { %v914_v40 = vpop.f32.mrb[48].mxu0  ;;  %v985_v41 = vpop.f32.mrb[48].mxu1 }
 0x219   :  { %v916_v42 = vpop.f32.mrb[49].mxu0  ;;  %v987_v43 = vpop.f32.mrb[49].mxu1  ;;  %v992_v36 = vmax.f32 %v985_v41, 0.0  ;;  %v990_v24 = vmax.f32 %v914_v40, 0.0 }
 0x21a   :  { %v991_v35 = vmax.f32 %v916_v42, 0.0 }
 0x21b   :  { %v996_v39 = vmin.f32 %v992_v36, 1.0  ;;  %v994_v32 = vmin.f32 %v990_v24, 1.0  ;;  %v993_v36 = vmax.f32 %v987_v43, 0.0  ;;  %v4672_v24 = vsub.s32 2, %v4644_v28  ;;  %v4680_v43 = vpop.permute.xlu0 %1227 }
 0x21c   :  { %v995_v15 = vmin.f32 %v991_v35, 1.0  ;;  %9336 = vst [vmem:[#allocation65_spill] sm:$0xff] %v4680_v43 }
 0x21d   :  { %v4651_v44 = vmul.f32 16.0, %v996_v39  ;;  %v4663_v16 = vmul.f32 16.0, %v994_v32  ;;  %9334 = vst [vmem:[#allocation63_spill] sm:$0xff] %v4672_v24  ;;  %v997_v32 = vmin.f32 %v993_v36, 1.0  ;;  %v4686_v39 = vpop.permute.xlu1 %2052 }
 0x21e   :  { %v4678_v31 = vmul.f32 16.0, %v995_v15  ;;  %9338 = vst [vmem:[#allocation67_spill] sm:$0xff] %v4686_v39 }
 0x21f   :  { %9327 = vst [vmem:[#allocation56_spill] sm:$0xff] %v4651_v44  ;;  %v4659_v41 = vrot.slane %v4651_v44, %v4649_v23  ;;  %9332 = vst [vmem:[#allocation61_spill] sm:$0xff] %v4663_v16  ;;  %v4676_v42 = vrot.slane %v4663_v16, %v4649_v23  ;;  %v4684_v40 = vrot.slane %v4663_v16, %v4672_v24  ;;  %v4698_v36 = vmul.f32 16.0, %v997_v32 }
 0x220   :  { %9335 = vst [vmem:[#allocation64_spill] sm:$0xff] %v4678_v31  ;;  %v4692_v28 = vrot.slane %v4651_v44, %v4672_v24  ;;  %v4696_v15 = vrot.slane %v4678_v31, %v4649_v23 }
 0x221   :  { %9330 = vst [vmem:[#allocation59_spill] sm:$0xff] %v4659_v41  ;;  %9337 = vst [vmem:[#allocation66_spill] sm:$0xff] %v4684_v40  ;;  %v9367_v41 = vsub.f32 %v4676_v42, %v4519_v46  ;;  %v9369_v39 = vsub.f32 %v4676_v42, %v4521_v47  ;;  %v9371_v44 = vsub.f32 %v4676_v42, %v4525_v49 }
 0x222   :  { %9339 = vst [vmem:[#allocation68_spill] sm:$0xff] %v4692_v28  ;;  %9340 = vst [vmem:[#allocation69_spill] sm:$0xff] %v4696_v15  ;;  %v4742_v15 = vpop.permute.xlu1 %1232  ;;  %v9373_v32 = vsub.f32 %v4676_v42, %v4531_v52  ;;  %v9375_v11 = vsub.f32 %v4676_v42, %v4533_v53 }
 0x223   :  { %9341 = vst [vmem:[#allocation70_spill] sm:$0xff] %v4698_v36  ;;  %v4716_v36 = vpop.permute.xlu0 %2057  ;;  %9343 = vst [vmem:[#allocation72_spill] sm:$0xff] %v4742_v15  ;;  %v4934_v16 = vand.u32 2147483647, %v9369_v39  ;;  %v4939_v23 = vand.u32 2147483647, %v9371_v44  ;;  %v9377_v39 = vsub.f32 %v4676_v42, %v4539_v56  ;;  %v9379_v44 = vsub.f32 %v4676_v42, %v4541_v57 }
 0x224   :  { %9342 = vst [vmem:[#allocation71_spill] sm:$0xff] %v4716_v36  ;;  %v4944_v40 = vand.u32 2147483647, %v9373_v32  ;;  %v9389_v32 = vsub.f32 %v4676_v42, %v4563_v4 }
 0x225   :  { %v9365_v3 = vld [vmem:[#allocation67_spill] sm:$0xff]  ;;  %9370 = vst [vmem:[#allocation77_spill] sm:$0xff] %v4934_v16  ;;  %9372 = vst [vmem:[#allocation78_spill] sm:$0xff] %v4939_v23  ;;  %v4956_v16 = vand.u32 2147483647, %v9377_v39  ;;  %v9385_v39 = vsub.f32 %v4676_v42, %v4555_v0 }
 0x226   :  { %v4794_v24 = vpop.permute.xlu1 %2062  ;;  %9374 = vst [vmem:[#allocation79_spill] sm:$0xff] %v4944_v40  ;;  %v4961_v23 = vand.u32 2147483647, %v9379_v44  ;;  %v9387_v44 = vsub.f32 %v4676_v42, %v4557_v1 }
 0x227   :  { %v4768_v31 = vpop.permute.xlu0 %1237  ;;  %9345 = vst [vmem:[#allocation74_spill] sm:$0xff] %v4794_v24  ;;  %9378 = vst [vmem:[#allocation81_spill] sm:$0xff] %v4956_v16  ;;  %v4978_v16 = vand.u32 2147483647, %v9385_v39  ;;  %v9393_v39 = vsub.f32 %v4676_v42, %v4571_v9  ;;  %v9483_v28 = vld [vmem:[#allocation64_spill] sm:$0xff] }
 0x228   :  { %9344 = vst [vmem:[#allocation73_spill] sm:$0xff] %v4768_v31  ;;  %9380 = vst [vmem:[#allocation82_spill] sm:$0xff] %v4961_v23  ;;  %v4983_v23 = vand.u32 2147483647, %v9387_v44  ;;  %v9395_v44 = vsub.f32 %v4676_v42, %v4573_v10 }
 0x229   :  { %9386 = vst [vmem:[#allocation85_spill] sm:$0xff] %v4978_v16  ;;  %v5000_v16 = vand.u32 2147483647, %v9393_v39  ;;  %v9401_v39 = vsub.f32 %v4676_v42, %v4587_v17 }
 0x22a   :  { %v4844_v58 = vpop.permute.xlu1 %2067  ;;  %9388 = vst [vmem:[#allocation86_spill] sm:$0xff] %v4983_v23  ;;  %v5005_v23 = vand.u32 2147483647, %v9395_v44  ;;  %v9403_v44 = vsub.f32 %v4676_v42, %v4589_v18 }
 0x22b   :  { %9362 = vst [vmem:[#allocation75_spill] sm:$0xff] %v4844_v58  ;;  %v4927_v58 = vand.u32 2147483647, %v9367_v41  ;;  %v9381_v41 = vsub.f32 %v4676_v42, %v4547_v60  ;;  %9394 = vst [vmem:[#allocation89_spill] sm:$0xff] %v5000_v16  ;;  %v5022_v16 = vand.u32 2147483647, %v9401_v39  ;;  %v9409_v39 = vsub.f32 %v4676_v42, %v4603_v25 }
 0x22c   :  { %9396 = vst [vmem:[#allocation90_spill] sm:$0xff] %v5005_v23  ;;  %v5027_v23 = vand.u32 2147483647, %v9403_v44  ;;  %v9417_v44 = vsub.f32 %v4676_v42, %v4619_v33  ;;  %v9456_v33 = vld [vmem:[#allocation43_spill] sm:$0xff]  ;;  %v9460_v25 = vld [vmem:[#allocation66_spill] sm:$0xff] }
 0x22d   :  { %9368 = vst [vmem:[#allocation76_spill] sm:$0xff] %v4927_v58  ;;  %v4951_v58 = vand.u32 2147483647, %v9375_v11  ;;  %v4968_v40 = vand.u32 2147483647, %v9381_v41  ;;  %v9383_v11 = vsub.f32 %v4676_v42, %v4549_v61  ;;  %9402 = vst [vmem:[#allocation93_spill] sm:$0xff] %v5022_v16 }
 0x22e   :  { %v4988_v41 = vand.u32 2147483647, %v9389_v32  ;;  %v9397_v32 = vsub.f32 %v4676_v42, %v4579_v13  ;;  %9404 = vst [vmem:[#allocation94_spill] sm:$0xff] %v5027_v23  ;;  %v5044_v16 = vand.u32 2147483647, %v9409_v39  ;;  %v9423_v39 = vsub.f32 %v4676_v42, %v4629_v38  ;;  %v9453_v38 = vld [vmem:[#allocation32_spill] sm:$0xff] }
 0x22f   :  { %9376 = vst [vmem:[#allocation80_spill] sm:$0xff] %v4951_v58  ;;  %9382 = vst [vmem:[#allocation83_spill] sm:$0xff] %v4968_v40  ;;  %v4973_v58 = vand.u32 2147483647, %v9383_v11  ;;  %v9391_v40 = vsub.f32 %v4676_v42, %v4565_v5 }
 0x230   :  { %9390 = vst [vmem:[#allocation87_spill] sm:$0xff] %v4988_v41  ;;  %v5010_v41 = vand.u32 2147483647, %v9397_v32  ;;  %9410 = vst [vmem:[#allocation97_spill] sm:$0xff] %v5044_v16  ;;  %v9411_v32 = vsub.f32 %v4676_v42, %v4605_v26  ;;  %v5068_v16 = vand.u32 2147483647, %v9417_v44  ;;  %v9425_v44 = vsub.f32 %v4676_v42, %v4635_v45 }
 0x231   :  { %9384 = vst [vmem:[#allocation84_spill] sm:$0xff] %v4973_v58  ;;  %v4993_v11 = vand.u32 2147483647, %v9391_v40  ;;  %v9399_v58 = vsub.f32 %v4676_v42, %v4581_v14  ;;  %v9405_v40 = vsub.f32 %v4676_v42, %v4595_v21  ;;  %v9452_v45 = vld [vmem:[#allocation31_spill] sm:$0xff]  ;;  %v9459_v26 = vld [vmem:[#allocation52_spill] sm:$0xff] }
 0x232   :  { %9398 = vst [vmem:[#allocation91_spill] sm:$0xff] %v5010_v41  ;;  %v5051_v23 = vand.u32 2147483647, %v9411_v32  ;;  %9418 = vst [vmem:[#allocation101_spill] sm:$0xff] %v5068_v16  ;;  %v9419_v32 = vsub.f32 %v4676_v42, %v4621_v34  ;;  %v5090_v16 = vand.u32 2147483647, %v9425_v44  ;;  %v9434_v44 = vsub.f32 %v4676_v42, %v4669_v12 }
 0x233   :  { %9392 = vst [vmem:[#allocation88_spill] sm:$0xff] %v4993_v11  ;;  %v5017_v11 = vand.u32 2147483647, %v9399_v58  ;;  %v5034_v41 = vand.u32 2147483647, %v9405_v40  ;;  %v9407_v58 = vsub.f32 %v4676_v42, %v4597_v22  ;;  %v9413_v40 = vsub.f32 %v4676_v42, %v4611_v29  ;;  %v9444_v12 = vld [vmem:[#allocation18_spill] sm:$0xff] }
 0x234   :  { %9412 = vst [vmem:[#allocation98_spill] sm:$0xff] %v5051_v23  ;;  %v5073_v23 = vand.u32 2147483647, %v9419_v32  ;;  %9426 = vst [vmem:[#allocation105_spill] sm:$0xff] %v5090_v16  ;;  %v9427_v32 = vsub.f32 %v4676_v42, %v4637_v6  ;;  %v5112_v16 = vand.u32 2147483647, %v9434_v44 }
 0x235   :  { %9400 = vst [vmem:[#allocation92_spill] sm:$0xff] %v5017_v11  ;;  %9406 = vst [vmem:[#allocation95_spill] sm:$0xff] %v5034_v41  ;;  %v5039_v11 = vand.u32 2147483647, %v9407_v58  ;;  %v5056_v41 = vand.u32 2147483647, %v9413_v40  ;;  %v9415_v58 = vsub.f32 %v4676_v42, %v4613_v30  ;;  %v9421_v40 = vsub.f32 %v4676_v42, %v4627_v37 }
 0x236   :  { %9420 = vst [vmem:[#allocation102_spill] sm:$0xff] %v5073_v23  ;;  %v5095_v23 = vand.u32 2147483647, %v9427_v32  ;;  %9435 = vst [vmem:[#allocation109_spill] sm:$0xff] %v5112_v16  ;;  %v9436_v32 = vld [vmem:[#allocation16_spill] sm:$0xff]  ;;  %v9443_v44 = vld [vmem:[#allocation17_spill] sm:$0xff]  ;;  %v9463_v16 = vsub.f32 %v9460_v25, %v4527_v50 }
 0x237   :  { %9408 = vst [vmem:[#allocation96_spill] sm:$0xff] %v5039_v11  ;;  %9414 = vst [vmem:[#allocation99_spill] sm:$0xff] %v5056_v41  ;;  %v5061_v11 = vand.u32 2147483647, %v9415_v58  ;;  %v5078_v41 = vand.u32 2147483647, %v9421_v40  ;;  %v9430_v58 = vsub.f32 %v4676_v42, %v4646_v27 }
 0x238   :  { %9428 = vst [vmem:[#allocation106_spill] sm:$0xff] %v5095_v23  ;;  %v9429_v40 = vld [vmem:[#allocation15_spill] sm:$0xff]  ;;  %v9451_v27 = vld [vmem:[#allocation28_spill] sm:$0xff]  ;;  %v9465_v23 = vsub.f32 %v9460_v25, %v4529_v51 }
 0x239   :  { %9416 = vst [vmem:[#allocation100_spill] sm:$0xff] %v5061_v11  ;;  %9422 = vst [vmem:[#allocation103_spill] sm:$0xff] %v5078_v41  ;;  %v5085_v11 = vand.u32 2147483647, %v9423_v39  ;;  %v5102_v35 = vand.u32 2147483647, %v9430_v58  ;;  %v9432_v39 = vsub.f32 %v4676_v42, %v4653_v20  ;;  %v9437_v41 = vsub.f32 %v4676_v42, %v4680_v43 }
 0x23a   :  { %v9439_v58 = vsub.f32 %v4676_v42, %v4742_v15  ;;  %v9445_v20 = vld [vmem:[#allocation19_spill] sm:$0xff]  ;;  %v9447_v15 = vld [vmem:[#allocation21_spill] sm:$0xff]  ;;  %v9455_v34 = vld [vmem:[#allocation36_spill] sm:$0xff]  ;;  %v9478_v43 = vsub.f32 %v9460_v25, %v4551_v62 }
 0x23b   :  { %9424 = vst [vmem:[#allocation104_spill] sm:$0xff] %v5085_v11  ;;  %9431 = vst [vmem:[#allocation107_spill] sm:$0xff] %v5102_v35  ;;  %v5107_v11 = vand.u32 2147483647, %v9432_v39  ;;  %v5119_v6 = vand.u32 2147483647, %v9437_v41  ;;  %v9441_v39 = vsub.f32 %v4676_v42, %v4768_v31  ;;  %v9461_v42 = vsub.f32 %v9460_v25, %v4523_v48 }
 0x23c   :  { %v5124_v35 = vand.u32 2147483647, %v9439_v58  ;;  %v9450_v31 = vld [vmem:[#allocation27_spill] sm:$0xff]  ;;  %v9457_v30 = vld [vmem:[#allocation44_spill] sm:$0xff]  ;;  %v5196_v41 = vand.u32 2147483647, %v9465_v23  ;;  %v9468_v58 = vsub.f32 %v9460_v25, %v4535_v54  ;;  %v9476_v23 = vsub.f32 %v9460_v25, %v4545_v59 }
 0x23d   :  { %9433 = vst [vmem:[#allocation108_spill] sm:$0xff] %v5107_v11  ;;  %9438 = vst [vmem:[#allocation110_spill] sm:$0xff] %v5119_v6  ;;  %v5129_v11 = vand.u32 2147483647, %v9441_v39  ;;  %v9446_v6 = vld [vmem:[#allocation20_spill] sm:$0xff]  ;;  %v9454_v37 = vld [vmem:[#allocation35_spill] sm:$0xff] }
 0x23e   :  { %9440 = vst [vmem:[#allocation111_spill] sm:$0xff] %v5124_v35  ;;  %v9448_v35 = vld [vmem:[#allocation23_spill] sm:$0xff]  ;;  %v9449_v39 = vld [vmem:[#allocation24_spill] sm:$0xff]  ;;  %v5186_v22 = vand.u32 2147483647, %v9461_v42  ;;  %9466 = vst [vmem:[#allocation114_spill] sm:$0xff] %v5196_v41 }
 0x23f   :  { %9442 = vst [vmem:[#allocation112_spill] sm:$0xff] %v5129_v11  ;;  %v9458_v29 = vld [vmem:[#allocation51_spill] sm:$0xff]  ;;  %v5191_v11 = vand.u32 2147483647, %v9463_v16  ;;  %v5203_v18 = vand.u32 2147483647, %v9468_v58 }
 0x240   :  { %9462 = vst [vmem:[#allocation66_spill] sm:$0xff] %v5186_v22  ;;  %v9467_v21 = vld [vmem:[#allocation75_spill] sm:$0xff]  ;;  %v9470_v42 = vld [vmem:[#allocation10_spill] sm:$0xff]  ;;  %v9473_v16 = vld [vmem:[#allocation12_spill] sm:$0xff]  ;;  %v5218_v41 = vand.u32 2147483647, %v9476_v23  ;;  %v9487_v23 = vsub.f32 %v9460_v25, %v9443_v44 }
 0x241   :  { %9464 = vst [vmem:[#allocation113_spill] sm:$0xff] %v5191_v11  ;;  %9469 = vst [vmem:[#allocation115_spill] sm:$0xff] %v5203_v18  ;;  %v9471_v22 = vsub.f32 %v9460_v25, %v9470_v42  ;;  %v9474_v11 = vsub.f32 %v9460_v25, %v9473_v16  ;;  %v5223_v58 = vand.u32 2147483647, %v9478_v43  ;;  %v9480_v18 = vsub.f32 %v9460_v25, %v9429_v40 }
 0x242   :  { %9477 = vst [vmem:[#allocation118_spill] sm:$0xff] %v5218_v41  ;;  %v5242_v41 = vand.u32 2147483647, %v9487_v23  ;;  %v9489_v43 = vsub.f32 %v9460_v25, %v9444_v12  ;;  %v9496_v23 = vsub.f32 %v9460_v25, %v9447_v15 }
 0x243   :  { %v5208_v48 = vand.u32 2147483647, %v9471_v22  ;;  %v5213_v50 = vand.u32 2147483647, %v9474_v11  ;;  %9479 = vst [vmem:[#allocation119_spill] sm:$0xff] %v5223_v58  ;;  %v9485_v11 = vsub.f32 %v9460_v25, %v9436_v32 }
 0x244   :  { %v5228_v22 = vand.u32 2147483647, %v9480_v18  ;;  %9488 = vst [vmem:[#allocation123_spill] sm:$0xff] %v5242_v41  ;;  %v5247_v58 = vand.u32 2147483647, %v9489_v43  ;;  %v9504_v43 = vsub.f32 %v9460_v25, %v9451_v27 }
 0x245   :  { %9472 = vst [vmem:[#allocation116_spill] sm:$0xff] %v5208_v48  ;;  %9475 = vst [vmem:[#allocation117_spill] sm:$0xff] %v5213_v50  ;;  %v9482_v48 = vld [vmem:[#allocation63_spill] sm:$0xff]  ;;  %v5237_v50 = vand.u32 2147483647, %v9485_v11  ;;  %v9494_v11 = vsub.f32 %v9460_v25, %v9446_v6 }
 0x246   :  { %9481 = vst [vmem:[#allocation120_spill] sm:$0xff] %v5228_v22  ;;  %v5232_v16 = vrot.slane %v9483_v28, %v9482_v48  ;;  %9490 = vst [vmem:[#allocation124_spill] sm:$0xff] %v5247_v58  ;;  %v9492_v28 = vsub.f32 %v9460_v25, %v9445_v20  ;;  %v5264_v41 = vand.u32 2147483647, %v9496_v23  ;;  %v9498_v22 = vsub.f32 %v9460_v25, %v9448_v35 }
 0x247   :  { %9486 = vst [vmem:[#allocation122_spill] sm:$0xff] %v5237_v50  ;;  %v5259_v50 = vand.u32 2147483647, %v9494_v11  ;;  %v9502_v11 = vsub.f32 %v9460_v25, %v9450_v31  ;;  %v9510_v23 = vsub.f32 %v9460_v25, %v9454_v37  ;;  %v9560_v37 = vld [vmem:[#allocation73_spill] sm:$0xff] }
 0x248   :  { %9484 = vst [vmem:[#allocation121_spill] sm:$0xff] %v5232_v16  ;;  %v5254_v48 = vand.u32 2147483647, %v9492_v28  ;;  %9497 = vst [vmem:[#allocation127_spill] sm:$0xff] %v5264_v41  ;;  %v5271_v58 = vand.u32 2147483647, %v9498_v22  ;;  %v9500_v28 = vsub.f32 %v9460_v25, %v9449_v39  ;;  %v9506_v22 = vsub.f32 %v9460_v25, %v9452_v45 }
 0x249   :  { %9495 = vst [vmem:[#allocation126_spill] sm:$0xff] %v5259_v50  ;;  %v5281_v50 = vand.u32 2147483647, %v9502_v11  ;;  %v5288_v41 = vand.u32 2147483647, %v9504_v43  ;;  %v9512_v43 = vsub.f32 %v9460_v25, %v9455_v34  ;;  %v9516_v11 = vsub.f32 %v9460_v25, %v9356_v63  ;;  %v9557_v63 = vld [vmem:[#allocation62_spill] sm:$0xff] }
 0x24a   :  { %9493 = vst [vmem:[#allocation125_spill] sm:$0xff] %v5254_v48  ;;  %9499 = vst [vmem:[#allocation128_spill] sm:$0xff] %v5271_v58  ;;  %v5276_v48 = vand.u32 2147483647, %v9500_v28  ;;  %v5293_v58 = vand.u32 2147483647, %v9506_v22  ;;  %v9508_v28 = vsub.f32 %v9460_v25, %v9453_v38  ;;  %v9514_v22 = vsub.f32 %v9460_v25, %v9355_v55 }
 0x24b   :  { %9503 = vst [vmem:[#allocation130_spill] sm:$0xff] %v5281_v50  ;;  %9505 = vst [vmem:[#allocation131_spill] sm:$0xff] %v5288_v41  ;;  %v5305_v50 = vand.u32 2147483647, %v9510_v23  ;;  %v5310_v41 = vand.u32 2147483647, %v9512_v43  ;;  %v9518_v23 = vsub.f32 %v9460_v25, %v9456_v33  ;;  %v9520_v43 = vsub.f32 %v9460_v25, %v9457_v30 }
 0x24c   :  { %9501 = vst [vmem:[#allocation129_spill] sm:$0xff] %v5276_v48  ;;  %9507 = vst [vmem:[#allocation132_spill] sm:$0xff] %v5293_v58  ;;  %v5298_v48 = vand.u32 2147483647, %v9508_v28  ;;  %v5315_v58 = vand.u32 2147483647, %v9514_v22  ;;  %v9522_v28 = vsub.f32 %v9460_v25, %v9359_v7  ;;  %v9528_v22 = vsub.f32 %v9460_v25, %v9459_v26 }
 0x24d   :  { %9511 = vst [vmem:[#allocation134_spill] sm:$0xff] %v5305_v50  ;;  %9513 = vst [vmem:[#allocation135_spill] sm:$0xff] %v5310_v41  ;;  %v5327_v50 = vand.u32 2147483647, %v9518_v23  ;;  %v5332_v41 = vand.u32 2147483647, %v9520_v43  ;;  %v9526_v23 = vsub.f32 %v9460_v25, %v9458_v29  ;;  %v9534_v43 = vsub.f32 %v9460_v25, %v9365_v3 }
 0x24e   :  { %9509 = vst [vmem:[#allocation133_spill] sm:$0xff] %v5298_v48  ;;  %9515 = vst [vmem:[#allocation136_spill] sm:$0xff] %v5315_v58  ;;  %v5322_v48 = vand.u32 2147483647, %v9516_v11  ;;  %v5339_v58 = vand.u32 2147483647, %v9522_v28  ;;  %v9524_v11 = vsub.f32 %v9460_v25, %v9360_v8  ;;  %v9530_v28 = vsub.f32 %v9460_v25, %v4655_v19 }
 0x24f   :  { %9519 = vst [vmem:[#allocation138_spill] sm:$0xff] %v5327_v50  ;;  %9521 = vst [vmem:[#allocation139_spill] sm:$0xff] %v5332_v41  ;;  %v5349_v50 = vand.u32 2147483647, %v9526_v23  ;;  %v5356_v41 = vand.u32 2147483647, %v9528_v22  ;;  %v9536_v22 = vsub.f32 %v9460_v25, %v4716_v36  ;;  %v9540_v23 = vsub.f32 %v9460_v25, %v9467_v21 }
 0x250   :  { %9517 = vst [vmem:[#allocation137_spill] sm:$0xff] %v5322_v48  ;;  %9523 = vst [vmem:[#allocation140_spill] sm:$0xff] %v5339_v58  ;;  %v5344_v48 = vand.u32 2147483647, %v9524_v11  ;;  %v5361_v58 = vand.u32 2147483647, %v9530_v28  ;;  %v9532_v11 = vsub.f32 %v9460_v25, %v9364_v2  ;;  %v9538_v28 = vsub.f32 %v9460_v25, %v4794_v24 }
 0x251   :  { %9527 = vst [vmem:[#allocation142_spill] sm:$0xff] %v5349_v50  ;;  %9529 = vst [vmem:[#allocation143_spill] sm:$0xff] %v5356_v41  ;;  %v5373_v50 = vand.u32 2147483647, %v9534_v43  ;;  %v5378_v41 = vand.u32 2147483647, %v9536_v22 }
 0x252   :  { %9525 = vst [vmem:[#allocation141_spill] sm:$0xff] %v5344_v48  ;;  %9531 = vst [vmem:[#allocation144_spill] sm:$0xff] %v5361_v58  ;;  %v5366_v48 = vand.u32 2147483647, %v9532_v11  ;;  %v5383_v58 = vand.u32 2147483647, %v9538_v28 }
 0x253   :  { %9535 = vst [vmem:[#allocation146_spill] sm:$0xff] %v5373_v50  ;;  %9537 = vst [vmem:[#allocation147_spill] sm:$0xff] %v5378_v41  ;;  %v9544_v50 = vld [vmem:[#allocation30_spill] sm:$0xff]  ;;  %v9545_v21 = vld [vmem:[#allocation33_spill] sm:$0xff] }
 0x254   :  { %9533 = vst [vmem:[#allocation145_spill] sm:$0xff] %v5366_v48  ;;  %9539 = vst [vmem:[#allocation148_spill] sm:$0xff] %v5383_v58  ;;  %v5390_v48 = vand.u32 2147483647, %v9540_v23  ;;  %v9543_v58 = vld [vmem:[#allocation29_spill] sm:$0xff]  ;;  %v9546_v24 = vld [vmem:[#allocation34_spill] sm:$0xff] }
 0x255   :  { %v9547_v36 = vld [vmem:[#allocation37_spill] sm:$0xff]  ;;  %v9548_v3 = vld [vmem:[#allocation38_spill] sm:$0xff]  ;;  %v9559_v34 = vld [vmem:[#allocation72_spill] sm:$0xff] }
 0x256   :  { %9541 = vst [vmem:[#allocation149_spill] sm:$0xff] %v5390_v48  ;;  %v9542_v48 = vld [vmem:[#allocation26_spill] sm:$0xff]  ;;  %v9549_v2 = vld [vmem:[#allocation41_spill] sm:$0xff]  ;;  %v9561_v38 = vld [vmem:[#allocation59_spill] sm:$0xff] }
 0x257   :  { %v9550_v19 = vld [vmem:[#allocation42_spill] sm:$0xff]  ;;  %v9551_v26 = vld [vmem:[#allocation45_spill] sm:$0xff]  ;;  %v9562_v43 = vsub.f32 %v9561_v38, %v4519_v46  ;;  %v9564_v41 = vsub.f32 %v9561_v38, %v4521_v47  ;;  %v9566_v28 = vsub.f32 %v9561_v38, %v4525_v49  ;;  %v9568_v25 = vsub.f32 %v9561_v38, %v4531_v52 }
 0x258   :  { %v9552_v29 = vld [vmem:[#allocation46_spill] sm:$0xff]  ;;  %v9553_v8 = vld [vmem:[#allocation49_spill] sm:$0xff]  ;;  %v9570_v23 = vsub.f32 %v9561_v38, %v4533_v53  ;;  %v9582_v18 = vsub.f32 %v9561_v38, %v4555_v0 }
 0x259   :  { %v9554_v7 = vld [vmem:[#allocation50_spill] sm:$0xff]  ;;  %v9556_v33 = vld [vmem:[#allocation57_spill] sm:$0xff]  ;;  %v5451_v45 = vand.u32 2147483647, %v9562_v43  ;;  %v5456_v22 = vand.u32 2147483647, %v9564_v41 }
 0x25a   :  { %v9555_v30 = vld [vmem:[#allocation54_spill] sm:$0xff]  ;;  %v9558_v55 = vld [vmem:[#allocation65_spill] sm:$0xff]  ;;  %v5461_v11 = vand.u32 2147483647, %v9566_v28  ;;  %v5466_v27 = vand.u32 2147483647, %v9568_v25  ;;  %v9575_v28 = vsub.f32 %v9561_v38, %v4541_v57  ;;  %v9577_v25 = vsub.f32 %v9561_v38, %v4547_v60 }
 0x25b   :  { %9563 = vst [vmem:[#allocation59_spill] sm:$0xff] %v5451_v45  ;;  %9565 = vst [vmem:[#allocation150_spill] sm:$0xff] %v5456_v22  ;;  %v5471_v43 = vand.u32 2147483647, %v9570_v23  ;;  %v9572_v45 = vsub.f32 %v9561_v38, %v4539_v56  ;;  %v9574_v22 = vld [vmem:[#allocation5_spill] sm:$0xff]  ;;  %v9579_v23 = vsub.f32 %v9561_v38, %v4549_v61 }
 0x25c   :  { %9567 = vst [vmem:[#allocation151_spill] sm:$0xff] %v5461_v11  ;;  %9569 = vst [vmem:[#allocation152_spill] sm:$0xff] %v5466_v27  ;;  %v5483_v11 = vand.u32 2147483647, %v9575_v28  ;;  %v5488_v27 = vand.u32 2147483647, %v9577_v25  ;;  %v9584_v28 = vsub.f32 %v9561_v38, %v4557_v1  ;;  %v9586_v25 = vsub.f32 %v9561_v38, %v4563_v4 }
 0x25d   :  { %9571 = vst [vmem:[#allocation153_spill] sm:$0xff] %v5471_v43  ;;  %v5476_v41 = vand.u32 2147483647, %v9572_v45  ;;  %v5493_v43 = vand.u32 2147483647, %v9579_v23  ;;  %v9581_v45 = vld [vmem:[#allocation7_spill] sm:$0xff]  ;;  %v9594_v23 = vsub.f32 %v9561_v38, %v4579_v13 }
 0x25e   :  { %9576 = vst [vmem:[#allocation155_spill] sm:$0xff] %v5483_v11  ;;  %9578 = vst [vmem:[#allocation156_spill] sm:$0xff] %v5488_v27  ;;  %v5500_v56 = vand.u32 2147483647, %v9582_v18  ;;  %v5505_v11 = vand.u32 2147483647, %v9584_v28  ;;  %v9590_v18 = vsub.f32 %v9561_v38, %v4571_v9  ;;  %v9592_v28 = vsub.f32 %v9561_v38, %v4573_v10 }
 0x25f   :  { %9573 = vst [vmem:[#allocation154_spill] sm:$0xff] %v5476_v41  ;;  %9580 = vst [vmem:[#allocation157_spill] sm:$0xff] %v5493_v43  ;;  %v5510_v27 = vand.u32 2147483647, %v9586_v25  ;;  %v9588_v41 = vsub.f32 %v9561_v38, %v4565_v5  ;;  %v9600_v25 = vsub.f32 %v9561_v38, %v9542_v48 }
 0x260   :  { %9583 = vst [vmem:[#allocation158_spill] sm:$0xff] %v5500_v56  ;;  %9585 = vst [vmem:[#allocation159_spill] sm:$0xff] %v5505_v11  ;;  %v5522_v56 = vand.u32 2147483647, %v9590_v18  ;;  %v5527_v11 = vand.u32 2147483647, %v9592_v28  ;;  %v9598_v18 = vsub.f32 %v9561_v38, %v4587_v17  ;;  %v9607_v28 = vsub.f32 %v9561_v38, %v9545_v21 }
 0x261   :  { %9587 = vst [vmem:[#allocation160_spill] sm:$0xff] %v5510_v27  ;;  %v5517_v43 = vand.u32 2147483647, %v9588_v41  ;;  %v5534_v27 = vand.u32 2147483647, %v9594_v23  ;;  %v9596_v41 = vsub.f32 %v9561_v38, %v4581_v14  ;;  %v9602_v23 = vsub.f32 %v9561_v38, %v9543_v58  ;;  %v9698_v58 = vld [vmem:[#allocation74_spill] sm:$0xff] }
 0x262   :  { %9591 = vst [vmem:[#allocation162_spill] sm:$0xff] %v5522_v56  ;;  %9593 = vst [vmem:[#allocation163_spill] sm:$0xff] %v5527_v11  ;;  %v5544_v56 = vand.u32 2147483647, %v9598_v18  ;;  %v5551_v11 = vand.u32 2147483647, %v9600_v25  ;;  %v9609_v25 = vsub.f32 %v9561_v38, %v9546_v24 }
 0x263   :  { %9589 = vst [vmem:[#allocation161_spill] sm:$0xff] %v5517_v43  ;;  %9595 = vst [vmem:[#allocation164_spill] sm:$0xff] %v5534_v27  ;;  %v5539_v43 = vand.u32 2147483647, %v9596_v41  ;;  %v5556_v27 = vand.u32 2147483647, %v9602_v23  ;;  %v9604_v41 = vsub.f32 %v9561_v38, %v9544_v50  ;;  %v9611_v23 = vsub.f32 %v9561_v38, %v9547_v36 }
 0x264   :  { %9599 = vst [vmem:[#allocation166_spill] sm:$0xff] %v5544_v56  ;;  %9601 = vst [vmem:[#allocation167_spill] sm:$0xff] %v5551_v11  ;;  %v9606_v18 = vld [vmem:[#allocation12_spill] sm:$0xff]  ;;  %v5568_v17 = vand.u32 2147483647, %v9607_v28  ;;  %v9613_v56 = vsub.f32 %v9561_v38, %v9548_v3  ;;  %v9615_v28 = vsub.f32 %v9561_v38, %v9549_v2  ;;  %v9691_v3 = vld [vmem:[#allocation67_spill] sm:$0xff] }
 0x265   :  { %9597 = vst [vmem:[#allocation165_spill] sm:$0xff] %v5539_v43  ;;  %9603 = vst [vmem:[#allocation168_spill] sm:$0xff] %v5556_v27  ;;  %v5561_v43 = vand.u32 2147483647, %v9604_v41  ;;  %v5573_v11 = vand.u32 2147483647, %v9609_v25  ;;  %v9617_v25 = vsub.f32 %v9561_v38, %v9550_v19  ;;  %v9619_v41 = vsub.f32 %v9561_v38, %v9551_v26 }
 0x266   :  { %9608 = vst [vmem:[#allocation170_spill] sm:$0xff] %v5568_v17  ;;  %v5578_v27 = vand.u32 2147483647, %v9611_v23  ;;  %v5590_v17 = vand.u32 2147483647, %v9615_v28  ;;  %v9623_v28 = vsub.f32 %v9561_v38, %v9553_v8  ;;  %v9625_v23 = vsub.f32 %v9561_v38, %v9554_v7  ;;  %v9685_v19 = vld [vmem:[#allocation47_spill] sm:$0xff] }
 0x267   :  { %9605 = vst [vmem:[#allocation169_spill] sm:$0xff] %v5561_v43  ;;  %9610 = vst [vmem:[#allocation171_spill] sm:$0xff] %v5573_v11  ;;  %v5585_v43 = vand.u32 2147483647, %v9613_v56  ;;  %v5595_v11 = vand.u32 2147483647, %v9617_v25  ;;  %v9621_v56 = vsub.f32 %v9561_v38, %v9552_v29  ;;  %v9631_v25 = vsub.f32 %v9561_v38, %v9557_v63 }
 0x268   :  { %9612 = vst [vmem:[#allocation172_spill] sm:$0xff] %v5578_v27  ;;  %9616 = vst [vmem:[#allocation174_spill] sm:$0xff] %v5590_v17  ;;  %v5602_v27 = vand.u32 2147483647, %v9619_v41  ;;  %v5612_v17 = vand.u32 2147483647, %v9623_v28  ;;  %v9627_v41 = vsub.f32 %v9561_v38, %v9555_v30  ;;  %v9637_v28 = vsub.f32 %v9561_v38, %v9560_v37 }
 0x269   :  { %9614 = vst [vmem:[#allocation173_spill] sm:$0xff] %v5585_v43  ;;  %9618 = vst [vmem:[#allocation175_spill] sm:$0xff] %v5595_v11  ;;  %v5607_v43 = vand.u32 2147483647, %v9621_v56  ;;  %v5619_v11 = vand.u32 2147483647, %v9625_v23  ;;  %v9629_v56 = vsub.f32 %v9561_v38, %v9556_v33  ;;  %v9633_v23 = vsub.f32 %v9561_v38, %v9558_v55 }
 0x26a   :  { %9620 = vst [vmem:[#allocation176_spill] sm:$0xff] %v5602_v27  ;;  %9624 = vst [vmem:[#allocation178_spill] sm:$0xff] %v5612_v17  ;;  %v5624_v27 = vand.u32 2147483647, %v9627_v41  ;;  %v5636_v17 = vand.u32 2147483647, %v9631_v25  ;;  %v9635_v41 = vsub.f32 %v9561_v38, %v9559_v34 }
 0x26b   :  { %9622 = vst [vmem:[#allocation177_spill] sm:$0xff] %v5607_v43  ;;  %9626 = vst [vmem:[#allocation179_spill] sm:$0xff] %v5619_v11  ;;  %v5629_v43 = vand.u32 2147483647, %v9629_v56  ;;  %v5641_v11 = vand.u32 2147483647, %v9633_v23 }
 0x26c   :  { %9628 = vst [vmem:[#allocation180_spill] sm:$0xff] %v5624_v27  ;;  %9632 = vst [vmem:[#allocation182_spill] sm:$0xff] %v5636_v17  ;;  %v5646_v27 = vand.u32 2147483647, %v9635_v41  ;;  %v9676_v34 = vld [vmem:[#allocation28_spill] sm:$0xff]  ;;  %v9677_v33 = vld [vmem:[#allocation31_spill] sm:$0xff] }
 0x26d   :  { %9630 = vst [vmem:[#allocation181_spill] sm:$0xff] %v5629_v43  ;;  %9634 = vst [vmem:[#allocation183_spill] sm:$0xff] %v5641_v11  ;;  %v5653_v43 = vand.u32 2147483647, %v9637_v28  ;;  %v9678_v38 = vld [vmem:[#allocation32_spill] sm:$0xff]  ;;  %v9679_v11 = vld [vmem:[#allocation35_spill] sm:$0xff] }
 0x26e   :  { %9636 = vst [vmem:[#allocation184_spill] sm:$0xff] %v5646_v27  ;;  %v9680_v55 = vld [vmem:[#allocation36_spill] sm:$0xff]  ;;  %v9681_v63 = vld [vmem:[#allocation39_spill] sm:$0xff]  ;;  %v9689_v7 = vld [vmem:[#allocation58_spill] sm:$0xff] }
 0x26f   :  { %9638 = vst [vmem:[#allocation185_spill] sm:$0xff] %v5653_v43  ;;  %v9682_v25 = vld [vmem:[#allocation40_spill] sm:$0xff]  ;;  %v9683_v37 = vld [vmem:[#allocation43_spill] sm:$0xff]  ;;  %v9697_v50 = vld [vmem:[#allocation70_spill] sm:$0xff] }
 0x270   :  { %v9684_v28 = vld [vmem:[#allocation44_spill] sm:$0xff]  ;;  %v9687_v8 = vld [vmem:[#allocation51_spill] sm:$0xff] }
 0x271   :  { %v9686_v56 = vld [vmem:[#allocation48_spill] sm:$0xff]  ;;  %v9692_v36 = vld [vmem:[#allocation71_spill] sm:$0xff] }
 0x272   :  { %v9688_v41 = vld [vmem:[#allocation52_spill] sm:$0xff]  ;;  %v9696_v30 = vld [vmem:[#allocation55_spill] sm:$0xff] }
 0x273   :  { %v9690_v2 = vld [vmem:[#allocation60_spill] sm:$0xff]  ;;  %v5747_v27 = vrot.slane %v9697_v50, %v9696_v30  ;;  %v9705_v30 = vld [vmem:[#allocation75_spill] sm:$0xff] }
 0x274   :  { %v9693_v24 = vld [vmem:[#allocation68_spill] sm:$0xff] }
 0x275   :  { %v9694_v23 = vsub.f32 %v9693_v24, %v9574_v22  ;;  %v9699_v26 = vsub.f32 %v9693_v24, %v9581_v45  ;;  %v9701_v17 = vsub.f32 %v9693_v24, %v4529_v51  ;;  %v9706_v29 = vsub.f32 %v9693_v24, %v9470_v42 }
 0x276   :  { %v9714_v22 = vsub.f32 %v9693_v24, %v9429_v40 }
 0x277   :  { %v5743_v21 = vand.u32 2147483647, %v9694_v23  ;;  %v5754_v48 = vand.u32 2147483647, %v9699_v26  ;;  %v5759_v43 = vand.u32 2147483647, %v9701_v17  ;;  %v9703_v23 = vsub.f32 %v9693_v24, %v4535_v54 }
 0x278   :  { %v5771_v14 = vand.u32 2147483647, %v9706_v29  ;;  %v9708_v26 = vsub.f32 %v9693_v24, %v9606_v18  ;;  %v9710_v17 = vsub.f32 %v9693_v24, %v4545_v59  ;;  %v5791_v29 = vand.u32 2147483647, %v9714_v22 }
 0x279   :  { %9695 = vst [vmem:[#allocation68_spill] sm:$0xff] %v5743_v21  ;;  %9700 = vst [vmem:[#allocation55_spill] sm:$0xff] %v5754_v48  ;;  %v5764_v21 = vand.u32 2147483647, %v9703_v23  ;;  %v9712_v23 = vsub.f32 %v9693_v24, %v4551_v62  ;;  %v9724_v22 = vsub.f32 %v9693_v24, %v9445_v20 }
 0x27a   :  { %9702 = vst [vmem:[#allocation186_spill] sm:$0xff] %v5759_v43  ;;  %9707 = vst [vmem:[#allocation188_spill] sm:$0xff] %v5771_v14  ;;  %v5776_v48 = vand.u32 2147483647, %v9708_v26  ;;  %v5781_v43 = vand.u32 2147483647, %v9710_v17  ;;  %v9716_v14 = vsub.f32 %v9693_v24, %v9436_v32  ;;  %v9720_v17 = vsub.f32 %v9693_v24, %v9443_v44 }
 0x27b   :  { %9704 = vst [vmem:[#allocation187_spill] sm:$0xff] %v5764_v21  ;;  %v5786_v21 = vand.u32 2147483647, %v9712_v23  ;;  %9715 = vst [vmem:[#allocation192_spill] sm:$0xff] %v5791_v29  ;;  %v9722_v23 = vsub.f32 %v9693_v24, %v9444_v12  ;;  %v5815_v29 = vand.u32 2147483647, %v9724_v22  ;;  %v9738_v22 = vsub.f32 %v9693_v24, %v9677_v33 }
 0x27c   :  { %9709 = vst [vmem:[#allocation189_spill] sm:$0xff] %v5776_v48  ;;  %9711 = vst [vmem:[#allocation190_spill] sm:$0xff] %v5781_v43  ;;  %v5796_v26 = vand.u32 2147483647, %v9716_v14  ;;  %v9718_v48 = vld [vmem:[#allocation63_spill] sm:$0xff]  ;;  %v9732_v14 = vsub.f32 %v9693_v24, %v9449_v39  ;;  %v9832_v33 = vld [vmem:[#allocation73_spill] sm:$0xff] }
 0x27d   :  { %9713 = vst [vmem:[#allocation191_spill] sm:$0xff] %v5786_v21  ;;  %v5800_v16 = vrot.slane %v9697_v50, %v9718_v48  ;;  %v5805_v43 = vand.u32 2147483647, %v9720_v17  ;;  %v5810_v21 = vand.u32 2147483647, %v9722_v23  ;;  %9725 = vst [vmem:[#allocation196_spill] sm:$0xff] %v5815_v29  ;;  %v9726_v48 = vsub.f32 %v9693_v24, %v9446_v6 }
 0x27e   :  { %9717 = vst [vmem:[#allocation193_spill] sm:$0xff] %v5796_v26  ;;  %v9728_v17 = vsub.f32 %v9693_v24, %v9447_v15  ;;  %v9730_v23 = vsub.f32 %v9693_v24, %v9448_v35  ;;  %v5839_v29 = vand.u32 2147483647, %v9732_v14  ;;  %v9740_v14 = vsub.f32 %v9693_v24, %v9678_v38  ;;  %v9831_v38 = vld [vmem:[#allocation72_spill] sm:$0xff] }
 0x27f   :  { %9719 = vst [vmem:[#allocation63_spill] sm:$0xff] %v5800_v16  ;;  %9721 = vst [vmem:[#allocation194_spill] sm:$0xff] %v5805_v43  ;;  %v5822_v50 = vand.u32 2147483647, %v9726_v48  ;;  %v9734_v48 = vsub.f32 %v9693_v24, %v9450_v31 }
 0x280   :  { %9723 = vst [vmem:[#allocation195_spill] sm:$0xff] %v5810_v21  ;;  %v5827_v43 = vand.u32 2147483647, %v9728_v17  ;;  %v5832_v21 = vand.u32 2147483647, %v9730_v23  ;;  %9733 = vst [vmem:[#allocation200_spill] sm:$0xff] %v5839_v29  ;;  %v9736_v17 = vsub.f32 %v9693_v24, %v9676_v34  ;;  %v9744_v23 = vsub.f32 %v9693_v24, %v9680_v55 }
 0x281   :  { %9727 = vst [vmem:[#allocation197_spill] sm:$0xff] %v5822_v50  ;;  %v5844_v50 = vand.u32 2147483647, %v9734_v48  ;;  %v5861_v29 = vand.u32 2147483647, %v9740_v14  ;;  %v9742_v48 = vsub.f32 %v9693_v24, %v9679_v11  ;;  %v9748_v14 = vsub.f32 %v9693_v24, %v9682_v25  ;;  %v9827_v25 = vld [vmem:[#allocation54_spill] sm:$0xff] }
 0x282   :  { %9729 = vst [vmem:[#allocation198_spill] sm:$0xff] %v5827_v43  ;;  %9731 = vst [vmem:[#allocation199_spill] sm:$0xff] %v5832_v21  ;;  %v5849_v43 = vand.u32 2147483647, %v9736_v17  ;;  %v5856_v21 = vand.u32 2147483647, %v9738_v22  ;;  %v9746_v22 = vsub.f32 %v9693_v24, %v9681_v63  ;;  %v9750_v17 = vsub.f32 %v9693_v24, %v9683_v37 }
 0x283   :  { %9735 = vst [vmem:[#allocation201_spill] sm:$0xff] %v5844_v50  ;;  %9741 = vst [vmem:[#allocation204_spill] sm:$0xff] %v5861_v29  ;;  %v5866_v50 = vand.u32 2147483647, %v9742_v48  ;;  %v5883_v29 = vand.u32 2147483647, %v9748_v14  ;;  %v9757_v48 = vsub.f32 %v9693_v24, %v9686_v56 }
 0x284   :  { %9737 = vst [vmem:[#allocation202_spill] sm:$0xff] %v5849_v43  ;;  %9739 = vst [vmem:[#allocation203_spill] sm:$0xff] %v5856_v21  ;;  %v5873_v43 = vand.u32 2147483647, %v9744_v23  ;;  %v5878_v21 = vand.u32 2147483647, %v9746_v22  ;;  %v9752_v23 = vsub.f32 %v9693_v24, %v9684_v28  ;;  %v9754_v22 = vsub.f32 %v9693_v24, %v9685_v19 }
 0x285   :  { %9743 = vst [vmem:[#allocation205_spill] sm:$0xff] %v5866_v50  ;;  %9749 = vst [vmem:[#allocation208_spill] sm:$0xff] %v5883_v29  ;;  %v5890_v50 = vand.u32 2147483647, %v9750_v17  ;;  %v9756_v14 = vld [vmem:[#allocation11_spill] sm:$0xff]  ;;  %v9759_v17 = vsub.f32 %v9693_v24, %v9687_v8  ;;  %v9763_v29 = vsub.f32 %v9693_v24, %v9689_v7  ;;  %v9819_v28 = vld [vmem:[#allocation37_spill] sm:$0xff] }
 0x286   :  { %9745 = vst [vmem:[#allocation206_spill] sm:$0xff] %v5873_v43  ;;  %9747 = vst [vmem:[#allocation207_spill] sm:$0xff] %v5878_v21  ;;  %v5895_v43 = vand.u32 2147483647, %v9752_v23  ;;  %v5900_v21 = vand.u32 2147483647, %v9754_v22  ;;  %v9761_v23 = vsub.f32 %v9693_v24, %v9688_v41  ;;  %v9769_v22 = vsub.f32 %v9693_v24, %v9692_v36 }
 0x287   :  { %9751 = vst [vmem:[#allocation209_spill] sm:$0xff] %v5890_v50  ;;  %v5907_v26 = vand.u32 2147483647, %v9757_v48  ;;  %v5912_v50 = vand.u32 2147483647, %v9759_v17  ;;  %v9765_v48 = vsub.f32 %v9693_v24, %v9690_v2  ;;  %v9767_v17 = vsub.f32 %v9693_v24, %v9691_v3  ;;  %v9813_v2 = vld [vmem:[#allocation25_spill] sm:$0xff] }
 0x288   :  { %9753 = vst [vmem:[#allocation210_spill] sm:$0xff] %v5895_v43  ;;  %9755 = vst [vmem:[#allocation211_spill] sm:$0xff] %v5900_v21  ;;  %v5917_v43 = vand.u32 2147483647, %v9761_v23  ;;  %v5924_v21 = vand.u32 2147483647, %v9763_v29  ;;  %v9771_v29 = vsub.f32 %v9693_v24, %v9698_v58 }
 0x289   :  { %9758 = vst [vmem:[#allocation11_spill] sm:$0xff] %v5907_v26  ;;  %9760 = vst [vmem:[#allocation212_spill] sm:$0xff] %v5912_v50  ;;  %v5929_v26 = vand.u32 2147483647, %v9765_v48  ;;  %v5934_v50 = vand.u32 2147483647, %v9767_v17  ;;  %v9773_v48 = vsub.f32 %v9693_v24, %v9705_v30 }
 0x28a   :  { %9762 = vst [vmem:[#allocation213_spill] sm:$0xff] %v5917_v43  ;;  %9764 = vst [vmem:[#allocation214_spill] sm:$0xff] %v5924_v21  ;;  %v5941_v43 = vand.u32 2147483647, %v9769_v22  ;;  %v5946_v21 = vand.u32 2147483647, %v9771_v29 }
 0x28b   :  { %9766 = vst [vmem:[#allocation215_spill] sm:$0xff] %v5929_v26  ;;  %9768 = vst [vmem:[#allocation216_spill] sm:$0xff] %v5934_v50  ;;  %v5951_v26 = vand.u32 2147483647, %v9773_v48  ;;  %v9812_v58 = vld [vmem:[#allocation22_spill] sm:$0xff]  ;;  %v9817_v3 = vld [vmem:[#allocation33_spill] sm:$0xff] }
 0x28c   :  { %9770 = vst [vmem:[#allocation217_spill] sm:$0xff] %v5941_v43  ;;  %9772 = vst [vmem:[#allocation218_spill] sm:$0xff] %v5946_v21  ;;  %v9814_v30 = vld [vmem:[#allocation26_spill] sm:$0xff]  ;;  %v9815_v43 = vld [vmem:[#allocation29_spill] sm:$0xff] }
 0x28d   :  { %9774 = vst [vmem:[#allocation219_spill] sm:$0xff] %v5951_v26  ;;  %v9816_v36 = vld [vmem:[#allocation30_spill] sm:$0xff]  ;;  %v9821_v26 = vld [vmem:[#allocation41_spill] sm:$0xff] }
 0x28e   :  { %v9818_v50 = vld [vmem:[#allocation34_spill] sm:$0xff]  ;;  %v9823_v8 = vld [vmem:[#allocation45_spill] sm:$0xff] }
 0x28f   :  { %v9820_v19 = vld [vmem:[#allocation38_spill] sm:$0xff]  ;;  %v9825_v41 = vld [vmem:[#allocation49_spill] sm:$0xff] }
 0x290   :  { %v9822_v24 = vld [vmem:[#allocation42_spill] sm:$0xff]  ;;  %v9828_v63 = vld [vmem:[#allocation57_spill] sm:$0xff] }
 0x291   :  { %v9824_v29 = vld [vmem:[#allocation46_spill] sm:$0xff]  ;;  %v9830_v11 = vld [vmem:[#allocation65_spill] sm:$0xff] }
 0x292   :  { %v9826_v37 = vld [vmem:[#allocation50_spill] sm:$0xff]  ;;  %v9833_v34 = vld [vmem:[#allocation69_spill] sm:$0xff] }
 0x293   :  { %v9829_v55 = vld [vmem:[#allocation62_spill] sm:$0xff]  ;;  %v9834_v48 = vsub.f32 %v9833_v34, %v4519_v46  ;;  %v9836_v23 = vsub.f32 %v9833_v34, %v4521_v47  ;;  %v9838_v22 = vsub.f32 %v9833_v34, %v4525_v49  ;;  %v9840_v21 = vsub.f32 %v9833_v34, %v4531_v52 }
 0x294   :  { %v9842_v56 = vsub.f32 %v9833_v34, %v4533_v53  ;;  %v9853_v49 = vsub.f32 %v9833_v34, %v4555_v0 }
 0x295   :  { %v6051_v31 = vand.u32 2147483647, %v9834_v48  ;;  %v6056_v17 = vand.u32 2147483647, %v9836_v23  ;;  %v6061_v7 = vand.u32 2147483647, %v9838_v22  ;;  %v9847_v22 = vsub.f32 %v9833_v34, %v4541_v57 }
 0x296   :  { %v6066_v39 = vand.u32 2147483647, %v9840_v21  ;;  %v6071_v48 = vand.u32 2147483647, %v9842_v56  ;;  %v9849_v21 = vsub.f32 %v9833_v34, %v4547_v60  ;;  %v9851_v56 = vsub.f32 %v9833_v34, %v4549_v61 }
 0x297   :  { %9835 = vst [vmem:[#allocation22_spill] sm:$0xff] %v6051_v31  ;;  %9837 = vst [vmem:[#allocation25_spill] sm:$0xff] %v6056_v17  ;;  %v9844_v31 = vsub.f32 %v9833_v34, %v9756_v14  ;;  %v9846_v17 = vld [vmem:[#allocation5_spill] sm:$0xff] }
 0x298   :  { %9839 = vst [vmem:[#allocation26_spill] sm:$0xff] %v6061_v7  ;;  %9841 = vst [vmem:[#allocation29_spill] sm:$0xff] %v6066_v39  ;;  %v6083_v7 = vand.u32 2147483647, %v9847_v22  ;;  %v6088_v39 = vand.u32 2147483647, %v9849_v21  ;;  %v9855_v22 = vsub.f32 %v9833_v34, %v4557_v1  ;;  %v9857_v21 = vsub.f32 %v9833_v34, %v4563_v4 }
 0x299   :  { %9843 = vst [vmem:[#allocation69_spill] sm:$0xff] %v6071_v48  ;;  %v6076_v23 = vand.u32 2147483647, %v9844_v31  ;;  %v6093_v48 = vand.u32 2147483647, %v9851_v56  ;;  %v9859_v31 = vsub.f32 %v9833_v34, %v4565_v5  ;;  %v9865_v56 = vsub.f32 %v9833_v34, %v4579_v13 }
 0x29a   :  { %9848 = vst [vmem:[#allocation221_spill] sm:$0xff] %v6083_v7  ;;  %9850 = vst [vmem:[#allocation222_spill] sm:$0xff] %v6088_v39  ;;  %v6105_v7 = vand.u32 2147483647, %v9855_v22  ;;  %v6110_v39 = vand.u32 2147483647, %v9857_v21  ;;  %v9863_v22 = vsub.f32 %v9833_v34, %v4573_v10  ;;  %v9871_v21 = vsub.f32 %v9833_v34, %v9814_v30 }
 0x29b   :  { %9845 = vst [vmem:[#allocation220_spill] sm:$0xff] %v6076_v23  ;;  %9852 = vst [vmem:[#allocation223_spill] sm:$0xff] %v6093_v48  ;;  %v6100_v23 = vand.u32 2147483647, %v9853_v49  ;;  %v6117_v48 = vand.u32 2147483647, %v9859_v31  ;;  %v9861_v49 = vsub.f32 %v9833_v34, %v4571_v9  ;;  %v9867_v31 = vsub.f32 %v9833_v34, %v9812_v58 }
 0x29c   :  { %9856 = vst [vmem:[#allocation225_spill] sm:$0xff] %v6105_v7  ;;  %9858 = vst [vmem:[#allocation226_spill] sm:$0xff] %v6110_v39  ;;  %v6127_v7 = vand.u32 2147483647, %v9863_v22  ;;  %v6134_v39 = vand.u32 2147483647, %v9865_v56  ;;  %v9873_v56 = vsub.f32 %v9833_v34, %v9815_v43  ;;  %v9877_v22 = vsub.f32 %v9833_v34, %v9817_v3 }
 0x29d   :  { %9854 = vst [vmem:[#allocation224_spill] sm:$0xff] %v6100_v23  ;;  %9860 = vst [vmem:[#allocation227_spill] sm:$0xff] %v6117_v48  ;;  %v6122_v23 = vand.u32 2147483647, %v9861_v49  ;;  %v6139_v48 = vand.u32 2147483647, %v9867_v31  ;;  %v9869_v49 = vsub.f32 %v9833_v34, %v9813_v2  ;;  %v9875_v31 = vsub.f32 %v9833_v34, %v9816_v36 }
 0x29e   :  { %9864 = vst [vmem:[#allocation229_spill] sm:$0xff] %v6127_v7  ;;  %9866 = vst [vmem:[#allocation230_spill] sm:$0xff] %v6134_v39  ;;  %v6151_v7 = vand.u32 2147483647, %v9871_v21  ;;  %v6156_v39 = vand.u32 2147483647, %v9873_v56  ;;  %v9879_v21 = vsub.f32 %v9833_v34, %v9818_v50  ;;  %v9881_v56 = vsub.f32 %v9833_v34, %v9819_v28 }
 0x29f   :  { %9862 = vst [vmem:[#allocation228_spill] sm:$0xff] %v6122_v23  ;;  %9868 = vst [vmem:[#allocation231_spill] sm:$0xff] %v6139_v48  ;;  %v6144_v23 = vand.u32 2147483647, %v9869_v49  ;;  %v6161_v48 = vand.u32 2147483647, %v9875_v31  ;;  %v9883_v49 = vsub.f32 %v9833_v34, %v9820_v19  ;;  %v9889_v31 = vsub.f32 %v9833_v34, %v9823_v8 }
 0x2a0   :  { %9872 = vst [vmem:[#allocation233_spill] sm:$0xff] %v6151_v7  ;;  %9874 = vst [vmem:[#allocation234_spill] sm:$0xff] %v6156_v39  ;;  %v6173_v7 = vand.u32 2147483647, %v9879_v21  ;;  %v6178_v39 = vand.u32 2147483647, %v9881_v56  ;;  %v9887_v21 = vsub.f32 %v9833_v34, %v9822_v24  ;;  %v9895_v56 = vsub.f32 %v9833_v34, %v9826_v37 }
 0x2a1   :  { %9870 = vst [vmem:[#allocation232_spill] sm:$0xff] %v6144_v23  ;;  %9876 = vst [vmem:[#allocation235_spill] sm:$0xff] %v6161_v48  ;;  %v6168_v23 = vand.u32 2147483647, %v9877_v22  ;;  %v6185_v48 = vand.u32 2147483647, %v9883_v49  ;;  %v9885_v22 = vsub.f32 %v9833_v34, %v9821_v26  ;;  %v9891_v49 = vsub.f32 %v9833_v34, %v9824_v29 }
 0x2a2   :  { %9880 = vst [vmem:[#allocation237_spill] sm:$0xff] %v6173_v7  ;;  %9882 = vst [vmem:[#allocation238_spill] sm:$0xff] %v6178_v39  ;;  %v6195_v7 = vand.u32 2147483647, %v9887_v21  ;;  %v6202_v39 = vand.u32 2147483647, %v9889_v31  ;;  %v9897_v31 = vsub.f32 %v9833_v34, %v9827_v25  ;;  %v9901_v21 = vsub.f32 %v9833_v34, %v9829_v55 }
 0x2a3   :  { %9878 = vst [vmem:[#allocation236_spill] sm:$0xff] %v6168_v23  ;;  %9884 = vst [vmem:[#allocation239_spill] sm:$0xff] %v6185_v48  ;;  %v6190_v23 = vand.u32 2147483647, %v9885_v22  ;;  %v6207_v48 = vand.u32 2147483647, %v9891_v49  ;;  %v9893_v22 = vsub.f32 %v9833_v34, %v9825_v41  ;;  %v9899_v49 = vsub.f32 %v9833_v34, %v9828_v63 }
 0x2a4   :  { %9888 = vst [vmem:[#allocation241_spill] sm:$0xff] %v6195_v7  ;;  %9890 = vst [vmem:[#allocation242_spill] sm:$0xff] %v6202_v39  ;;  %v6219_v7 = vand.u32 2147483647, %v9895_v56  ;;  %v6224_v39 = vand.u32 2147483647, %v9897_v31  ;;  %v9903_v56 = vsub.f32 %v9833_v34, %v9830_v11  ;;  %v9905_v31 = vsub.f32 %v9833_v34, %v9831_v38 }
 0x2a5   :  { %9886 = vst [vmem:[#allocation240_spill] sm:$0xff] %v6190_v23  ;;  %9892 = vst [vmem:[#allocation243_spill] sm:$0xff] %v6207_v48  ;;  %v6212_v23 = vand.u32 2147483647, %v9893_v22  ;;  %v6229_v48 = vand.u32 2147483647, %v9899_v49  ;;  %v9907_v22 = vsub.f32 %v9833_v34, %v9832_v33 }
 0x2a6   :  { %9896 = vst [vmem:[#allocation245_spill] sm:$0xff] %v6219_v7  ;;  %9898 = vst [vmem:[#allocation246_spill] sm:$0xff] %v6224_v39  ;;  %v6241_v7 = vand.u32 2147483647, %v9903_v56  ;;  %v6246_v39 = vand.u32 2147483647, %v9905_v31 }
 0x2a7   :  { %9894 = vst [vmem:[#allocation244_spill] sm:$0xff] %v6212_v23  ;;  %9900 = vst [vmem:[#allocation247_spill] sm:$0xff] %v6229_v48  ;;  %v6236_v23 = vand.u32 2147483647, %v9901_v21  ;;  %v6253_v48 = vand.u32 2147483647, %v9907_v22 }
 0x2a8   :  { %9904 = vst [vmem:[#allocation249_spill] sm:$0xff] %v6241_v7  ;;  %9906 = vst [vmem:[#allocation250_spill] sm:$0xff] %v6246_v39  ;;  %v9946_v37 = vld [vmem:[#allocation76_spill] sm:$0xff]  ;;  %v9948_v34 = vld [vmem:[#allocation77_spill] sm:$0xff] }
 0x2a9   :  { %9902 = vst [vmem:[#allocation248_spill] sm:$0xff] %v6236_v23  ;;  %9908 = vst [vmem:[#allocation251_spill] sm:$0xff] %v6253_v48  ;;  %v9947_v8 = vsub.f32 1.0, %v9946_v37  ;;  %v9949_v48 = vsub.f32 1.0, %v9948_v34  ;;  %v9950_v23 = vld [vmem:[#allocation78_spill] sm:$0xff]  ;;  %v9952_v56 = vld [vmem:[#allocation79_spill] sm:$0xff] }
 0x2aa   :  { %v9951_v63 = vsub.f32 1.0, %v9950_v23  ;;  %v9953_v25 = vsub.f32 1.0, %v9952_v56  ;;  %v9954_v38 = vld [vmem:[#allocation80_spill] sm:$0xff]  ;;  %v9956_v29 = vld [vmem:[#allocation81_spill] sm:$0xff]  ;;  %v9958_v7 = vld [vmem:[#allocation82_spill] sm:$0xff] }
 0x2ab   :  { %v6294_v31 = vmax.f32 %v9947_v8, 0.0  ;;  %v6298_v49 = vmax.f32 %v9949_v48, 0.0  ;;  %v9955_v39 = vsub.f32 1.0, %v9954_v38  ;;  %v9957_v37 = vsub.f32 1.0, %v9956_v29  ;;  %v9961_v55 = vld [vmem:[#allocation83_spill] sm:$0xff]  ;;  %v9964_v33 = vld [vmem:[#allocation84_spill] sm:$0xff] }
 0x2ac   :  { %v6302_v22 = vmax.f32 %v9951_v63, 0.0  ;;  %v6306_v21 = vmax.f32 %v9953_v25, 0.0  ;;  %v9959_v34 = vsub.f32 1.0, %v9958_v7  ;;  %v9962_v23 = vsub.f32 1.0, %v9961_v55  ;;  %v9967_v24 = vld [vmem:[#allocation85_spill] sm:$0xff]  ;;  %v9970_v41 = vld [vmem:[#allocation86_spill] sm:$0xff] }
 0x2ad   :  { %v6310_v11 = vmax.f32 %v9955_v39, 0.0  ;;  %v6314_v8 = vmax.f32 %v9957_v37, 0.0  ;;  %v9965_v56 = vsub.f32 1.0, %v9964_v33  ;;  %v9968_v38 = vsub.f32 1.0, %v9967_v24  ;;  %v9973_v26 = vld [vmem:[#allocation87_spill] sm:$0xff]  ;;  %v9976_v19 = vld [vmem:[#allocation88_spill] sm:$0xff] }
 0x2ae   :  { %v6318_v48 = vmax.f32 %v9959_v34, 0.0  ;;  %v6322_v63 = vmax.f32 %v9962_v23, 0.0  ;;  %v9971_v29 = vsub.f32 1.0, %v9970_v41  ;;  %v9974_v7 = vsub.f32 1.0, %v9973_v26  ;;  %v10060_v28 = vld [vmem:[#allocation43_spill] sm:$0xff]  ;;  %v10061_v50 = vld [vmem:[#allocation121_spill] sm:$0xff] }
 0x2af   :  { %v6326_v25 = vmax.f32 %v9965_v56, 0.0  ;;  %v6330_v39 = vmax.f32 %v9968_v38, 0.0  ;;  %v9977_v55 = vsub.f32 1.0, %v9976_v19  ;;  %v10392_v16 = vld [vmem:[#allocation231_spill] sm:$0xff] }
 0x2b0   :  { %9960 = vst [vmem:[#allocation76_spill] sm:$0xff] %v6318_v48  ;;  %9963 = vst [vmem:[#allocation77_spill] sm:$0xff] %v6322_v63  ;;  %v6334_v37 = vmax.f32 %v9971_v29, 0.0  ;;  %v6338_v34 = vmax.f32 %v9974_v7, 0.0  ;;  %v9979_v63 = vld [vmem:[#allocation89_spill] sm:$0xff]  ;;  %v10074_v48 = vsub.f32 %v10061_v50, %v9606_v18  ;;  %v10387_v18 = vld [vmem:[#allocation226_spill] sm:$0xff] }
 0x2b1   :  { %9966 = vst [vmem:[#allocation78_spill] sm:$0xff] %v6326_v25  ;;  %9969 = vst [vmem:[#allocation79_spill] sm:$0xff] %v6330_v39  ;;  %v6342_v23 = vmax.f32 %v9977_v55, 0.0  ;;  %v9980_v33 = vsub.f32 1.0, %v9979_v63  ;;  %v9982_v25 = vld [vmem:[#allocation90_spill] sm:$0xff]  ;;  %v9985_v39 = vld [vmem:[#allocation91_spill] sm:$0xff] }
 0x2b2   :  { %9972 = vst [vmem:[#allocation80_spill] sm:$0xff] %v6334_v37  ;;  %9975 = vst [vmem:[#allocation81_spill] sm:$0xff] %v6338_v34  ;;  %v9983_v24 = vsub.f32 1.0, %v9982_v25  ;;  %v9986_v41 = vsub.f32 1.0, %v9985_v39  ;;  %v9988_v37 = vld [vmem:[#allocation92_spill] sm:$0xff]  ;;  %v9991_v34 = vld [vmem:[#allocation93_spill] sm:$0xff] }
 0x2b3   :  { %9978 = vst [vmem:[#allocation82_spill] sm:$0xff] %v6342_v23  ;;  %v6346_v56 = vmax.f32 %v9980_v33, 0.0  ;;  %v9989_v26 = vsub.f32 1.0, %v9988_v37  ;;  %v9992_v19 = vsub.f32 1.0, %v9991_v34  ;;  %v9994_v23 = vld [vmem:[#allocation94_spill] sm:$0xff] }
 0x2b4   :  { %v6350_v38 = vmax.f32 %v9983_v24, 0.0  ;;  %v6354_v29 = vmax.f32 %v9986_v41, 0.0  ;;  %v9995_v63 = vsub.f32 1.0, %v9994_v23 }
 0x2b5   :  { %9981 = vst [vmem:[#allocation83_spill] sm:$0xff] %v6346_v56  ;;  %v6358_v7 = vmax.f32 %v9989_v26, 0.0  ;;  %v6362_v55 = vmax.f32 %v9992_v19, 0.0  ;;  %v9997_v56 = vld [vmem:[#allocation95_spill] sm:$0xff] }
 0x2b6   :  { %9984 = vst [vmem:[#allocation84_spill] sm:$0xff] %v6350_v38  ;;  %9987 = vst [vmem:[#allocation85_spill] sm:$0xff] %v6354_v29  ;;  %v6366_v33 = vmax.f32 %v9995_v63, 0.0  ;;  %v9998_v25 = vsub.f32 1.0, %v9997_v56  ;;  %v10000_v38 = vld [vmem:[#allocation96_spill] sm:$0xff]  ;;  %v10003_v29 = vld [vmem:[#allocation97_spill] sm:$0xff] }
 0x2b7   :  { %9990 = vst [vmem:[#allocation86_spill] sm:$0xff] %v6358_v7  ;;  %9993 = vst [vmem:[#allocation87_spill] sm:$0xff] %v6362_v55  ;;  %v10001_v39 = vsub.f32 1.0, %v10000_v38  ;;  %v10004_v37 = vsub.f32 1.0, %v10003_v29  ;;  %v10006_v7 = vld [vmem:[#allocation98_spill] sm:$0xff]  ;;  %v10009_v55 = vld [vmem:[#allocation99_spill] sm:$0xff] }
 0x2b8   :  { %9996 = vst [vmem:[#allocation88_spill] sm:$0xff] %v6366_v33  ;;  %v6370_v24 = vmax.f32 %v9998_v25, 0.0  ;;  %v10007_v34 = vsub.f32 1.0, %v10006_v7  ;;  %v10010_v23 = vsub.f32 1.0, %v10009_v55  ;;  %v10012_v33 = vld [vmem:[#allocation100_spill] sm:$0xff] }
 0x2b9   :  { %v6374_v41 = vmax.f32 %v10001_v39, 0.0  ;;  %v6378_v26 = vmax.f32 %v10004_v37, 0.0  ;;  %v10013_v56 = vsub.f32 1.0, %v10012_v33 }
 0x2ba   :  { %9999 = vst [vmem:[#allocation89_spill] sm:$0xff] %v6370_v24  ;;  %v6382_v19 = vmax.f32 %v10007_v34, 0.0  ;;  %v6386_v63 = vmax.f32 %v10010_v23, 0.0  ;;  %v10015_v24 = vld [vmem:[#allocation101_spill] sm:$0xff] }
 0x2bb   :  { %10002 = vst [vmem:[#allocation90_spill] sm:$0xff] %v6374_v41  ;;  %10005 = vst [vmem:[#allocation91_spill] sm:$0xff] %v6378_v26  ;;  %v6390_v25 = vmax.f32 %v10013_v56, 0.0  ;;  %v10016_v38 = vsub.f32 1.0, %v10015_v24  ;;  %v10018_v41 = vld [vmem:[#allocation102_spill] sm:$0xff]  ;;  %v10021_v26 = vld [vmem:[#allocation103_spill] sm:$0xff] }
 0x2bc   :  { %10008 = vst [vmem:[#allocation92_spill] sm:$0xff] %v6382_v19  ;;  %10011 = vst [vmem:[#allocation93_spill] sm:$0xff] %v6386_v63  ;;  %v10019_v29 = vsub.f32 1.0, %v10018_v41  ;;  %v10022_v7 = vsub.f32 1.0, %v10021_v26  ;;  %v10024_v19 = vld [vmem:[#allocation104_spill] sm:$0xff]  ;;  %v10027_v63 = vld [vmem:[#allocation105_spill] sm:$0xff] }
 0x2bd   :  { %10014 = vst [vmem:[#allocation94_spill] sm:$0xff] %v6390_v25  ;;  %v6394_v39 = vmax.f32 %v10016_v38, 0.0  ;;  %v10025_v55 = vsub.f32 1.0, %v10024_v19  ;;  %v10028_v33 = vsub.f32 1.0, %v10027_v63  ;;  %v10030_v25 = vld [vmem:[#allocation106_spill] sm:$0xff] }
 0x2be   :  { %v6398_v37 = vmax.f32 %v10019_v29, 0.0  ;;  %v6402_v34 = vmax.f32 %v10022_v7, 0.0  ;;  %v10031_v24 = vsub.f32 1.0, %v10030_v25 }
 0x2bf   :  { %10017 = vst [vmem:[#allocation95_spill] sm:$0xff] %v6394_v39  ;;  %v6406_v23 = vmax.f32 %v10025_v55, 0.0  ;;  %v6410_v56 = vmax.f32 %v10028_v33, 0.0  ;;  %v10033_v39 = vld [vmem:[#allocation107_spill] sm:$0xff] }
 0x2c0   :  { %10020 = vst [vmem:[#allocation96_spill] sm:$0xff] %v6398_v37  ;;  %10023 = vst [vmem:[#allocation97_spill] sm:$0xff] %v6402_v34  ;;  %v6414_v38 = vmax.f32 %v10031_v24, 0.0  ;;  %v10034_v41 = vsub.f32 1.0, %v10033_v39  ;;  %v10036_v37 = vld [vmem:[#allocation108_spill] sm:$0xff]  ;;  %v10039_v34 = vld [vmem:[#allocation109_spill] sm:$0xff] }
 0x2c1   :  { %10026 = vst [vmem:[#allocation98_spill] sm:$0xff] %v6406_v23  ;;  %10029 = vst [vmem:[#allocation99_spill] sm:$0xff] %v6410_v56  ;;  %v10037_v26 = vsub.f32 1.0, %v10036_v37  ;;  %v10040_v19 = vsub.f32 1.0, %v10039_v34  ;;  %v10042_v23 = vld [vmem:[#allocation110_spill] sm:$0xff]  ;;  %v10045_v56 = vld [vmem:[#allocation111_spill] sm:$0xff]  ;;  %v10062_v34 = vsub.f32 %v10061_v50, %v9846_v17  ;;  %v10069_v37 = vsub.f32 %v10061_v50, %v4535_v54 }
 0x2c2   :  { %10032 = vst [vmem:[#allocation100_spill] sm:$0xff] %v6414_v38  ;;  %v6418_v29 = vmax.f32 %v10034_v41, 0.0  ;;  %v10043_v63 = vsub.f32 1.0, %v10042_v23  ;;  %v10046_v25 = vsub.f32 1.0, %v10045_v56  ;;  %v10048_v38 = vld [vmem:[#allocation112_spill] sm:$0xff]  ;;  %v10064_v23 = vsub.f32 %v10061_v50, %v9581_v45  ;;  %v10391_v17 = vld [vmem:[#allocation230_spill] sm:$0xff] }
 0x2c3   :  { %v6422_v7 = vmax.f32 %v10037_v26, 0.0  ;;  %v6426_v55 = vmax.f32 %v10040_v19, 0.0  ;;  %v10049_v39 = vsub.f32 1.0, %v10048_v38  ;;  %v10051_v19 = vld [vmem:[#allocation24_spill] sm:$0xff]  ;;  %v6473_v3 = vand.u32 2147483647, %v10062_v34 }
 0x2c4   :  { %10035 = vst [vmem:[#allocation101_spill] sm:$0xff] %v6418_v29  ;;  %v6430_v33 = vmax.f32 %v10043_v63, 0.0  ;;  %v6434_v24 = vmax.f32 %v10046_v25, 0.0  ;;  %v10052_v63 = vld [vmem:[#allocation27_spill] sm:$0xff]  ;;  %v6478_v26 = vand.u32 2147483647, %v10064_v23  ;;  %v10067_v38 = vsub.f32 %v10061_v50, %v4529_v51 }
 0x2c5   :  { %10038 = vst [vmem:[#allocation102_spill] sm:$0xff] %v6422_v7  ;;  %10041 = vst [vmem:[#allocation103_spill] sm:$0xff] %v6426_v55  ;;  %v6438_v41 = vmax.f32 %v10049_v39, 0.0  ;;  %v10053_v39 = vld [vmem:[#allocation28_spill] sm:$0xff]  ;;  %v10054_v29 = vld [vmem:[#allocation31_spill] sm:$0xff]  ;;  %v10071_v34 = vsub.f32 %v10061_v50, %v9470_v42 }
 0x2c6   :  { %10044 = vst [vmem:[#allocation104_spill] sm:$0xff] %v6430_v33  ;;  %10047 = vst [vmem:[#allocation105_spill] sm:$0xff] %v6434_v24  ;;  %v10056_v24 = vld [vmem:[#allocation35_spill] sm:$0xff]  ;;  %v10057_v33 = vld [vmem:[#allocation36_spill] sm:$0xff]  ;;  %v6485_v25 = vand.u32 2147483647, %v10067_v38  ;;  %v10076_v38 = vsub.f32 %v10061_v50, %v4545_v59 }
 0x2c7   :  { %10050 = vst [vmem:[#allocation106_spill] sm:$0xff] %v6438_v41  ;;  %v10055_v41 = vld [vmem:[#allocation32_spill] sm:$0xff]  ;;  %v10058_v55 = vld [vmem:[#allocation39_spill] sm:$0xff]  ;;  %10063 = vst [vmem:[#allocation107_spill] sm:$0xff] %v6473_v3  ;;  %v6490_v36 = vand.u32 2147483647, %v10069_v37  ;;  %v10078_v37 = vsub.f32 %v10061_v50, %v4551_v62 }
 0x2c8   :  { %v10059_v7 = vld [vmem:[#allocation40_spill] sm:$0xff]  ;;  %10065 = vst [vmem:[#allocation108_spill] sm:$0xff] %v6478_v26  ;;  %10068 = vst [vmem:[#allocation109_spill] sm:$0xff] %v6485_v25  ;;  %v6495_v3 = vand.u32 2147483647, %v10071_v34  ;;  %v10073_v23 = vld [vmem:[#allocation47_spill] sm:$0xff]  ;;  %v10081_v26 = vsub.f32 %v10061_v50, %v9429_v40 }
 0x2c9   :  { %v10066_v56 = vld [vmem:[#allocation44_spill] sm:$0xff]  ;;  %10070 = vst [vmem:[#allocation110_spill] sm:$0xff] %v6490_v36  ;;  %v6502_v45 = vand.u32 2147483647, %v10074_v48  ;;  %v6507_v25 = vand.u32 2147483647, %v10076_v38  ;;  %v10083_v48 = vsub.f32 %v10061_v50, %v9436_v32  ;;  %v10085_v38 = vsub.f32 %v10061_v50, %v9443_v44 }
 0x2ca   :  { %10072 = vst [vmem:[#allocation111_spill] sm:$0xff] %v6495_v3  ;;  %v6512_v36 = vand.u32 2147483647, %v10078_v37  ;;  %v10080_v34 = vld [vmem:[#allocation48_spill] sm:$0xff]  ;;  %v6519_v42 = vand.u32 2147483647, %v10081_v26  ;;  %v10088_v3 = vsub.f32 %v10061_v50, %v9444_v12  ;;  %v10090_v26 = vsub.f32 %v10061_v50, %v9445_v20 }
 0x2cb   :  { %10075 = vst [vmem:[#allocation112_spill] sm:$0xff] %v6502_v45  ;;  %10077 = vst [vmem:[#allocation121_spill] sm:$0xff] %v6507_v25  ;;  %v6524_v45 = vand.u32 2147483647, %v10083_v48  ;;  %v6529_v25 = vand.u32 2147483647, %v10085_v38  ;;  %v10092_v48 = vsub.f32 %v10061_v50, %v9446_v6 }
 0x2cc   :  { %10079 = vst [vmem:[#allocation252_spill] sm:$0xff] %v6512_v36  ;;  %10082 = vst [vmem:[#allocation253_spill] sm:$0xff] %v6519_v42  ;;  %v10087_v37 = vld [vmem:[#allocation51_spill] sm:$0xff]  ;;  %v6536_v62 = vand.u32 2147483647, %v10088_v3  ;;  %v10094_v38 = vld [vmem:[#allocation52_spill] sm:$0xff]  ;;  %v10095_v36 = vsub.f32 %v10061_v50, %v9447_v15  ;;  %v10097_v3 = vsub.f32 %v10061_v50, %v9448_v35 }
 0x2cd   :  { %10084 = vst [vmem:[#allocation254_spill] sm:$0xff] %v6524_v45  ;;  %10086 = vst [vmem:[#allocation255_spill] sm:$0xff] %v6529_v25  ;;  %v6541_v42 = vand.u32 2147483647, %v10090_v26  ;;  %v6546_v45 = vand.u32 2147483647, %v10092_v48  ;;  %v10099_v26 = vsub.f32 %v10061_v50, %v10051_v19  ;;  %v10102_v25 = vsub.f32 %v10061_v50, %v10052_v63 }
 0x2ce   :  { %10089 = vst [vmem:[#allocation256_spill] sm:$0xff] %v6536_v62  ;;  %v6553_v44 = vand.u32 2147483647, %v10095_v36  ;;  %v6558_v62 = vand.u32 2147483647, %v10097_v3  ;;  %v10101_v48 = vld [vmem:[#allocation58_spill] sm:$0xff]  ;;  %v10104_v36 = vsub.f32 %v10061_v50, %v10053_v39  ;;  %v10106_v3 = vsub.f32 %v10061_v50, %v10054_v29 }
 0x2cf   :  { %10091 = vst [vmem:[#allocation257_spill] sm:$0xff] %v6541_v42  ;;  %10093 = vst [vmem:[#allocation258_spill] sm:$0xff] %v6546_v45  ;;  %v6563_v42 = vand.u32 2147483647, %v10099_v26  ;;  %v6570_v6 = vand.u32 2147483647, %v10102_v25  ;;  %v10109_v45 = vsub.f32 %v10061_v50, %v10055_v41  ;;  %v10111_v25 = vsub.f32 %v10061_v50, %v10056_v24 }
 0x2d0   :  { %10096 = vst [vmem:[#allocation259_spill] sm:$0xff] %v6553_v44  ;;  %10098 = vst [vmem:[#allocation260_spill] sm:$0xff] %v6558_v62  ;;  %v6575_v44 = vand.u32 2147483647, %v10104_v36  ;;  %v6580_v62 = vand.u32 2147483647, %v10106_v3  ;;  %v10113_v36 = vsub.f32 %v10061_v50, %v10057_v33 }
 0x2d1   :  { %10100 = vst [vmem:[#allocation261_spill] sm:$0xff] %v6563_v42  ;;  %10103 = vst [vmem:[#allocation262_spill] sm:$0xff] %v6570_v6  ;;  %v10108_v26 = vld [vmem:[#allocation60_spill] sm:$0xff]  ;;  %v6587_v19 = vand.u32 2147483647, %v10109_v45  ;;  %v10115_v3 = vld [vmem:[#allocation67_spill] sm:$0xff]  ;;  %v10116_v42 = vsub.f32 %v10061_v50, %v10058_v55  ;;  %v10118_v45 = vsub.f32 %v10061_v50, %v10059_v7 }
 0x2d2   :  { %10105 = vst [vmem:[#allocation263_spill] sm:$0xff] %v6575_v44  ;;  %10107 = vst [vmem:[#allocation264_spill] sm:$0xff] %v6580_v62  ;;  %v6592_v6 = vand.u32 2147483647, %v10111_v25  ;;  %v6597_v44 = vand.u32 2147483647, %v10113_v36  ;;  %v10120_v25 = vsub.f32 %v10061_v50, %v10060_v28  ;;  %v10123_v62 = vsub.f32 %v10061_v50, %v10066_v56 }
 0x2d3   :  { %10110 = vst [vmem:[#allocation265_spill] sm:$0xff] %v6587_v19  ;;  %v6604_v29 = vand.u32 2147483647, %v10116_v42  ;;  %v6609_v19 = vand.u32 2147483647, %v10118_v45  ;;  %v10122_v36 = vld [vmem:[#allocation71_spill] sm:$0xff]  ;;  %v10125_v42 = vsub.f32 %v10061_v50, %v10073_v23  ;;  %v10127_v45 = vsub.f32 %v10061_v50, %v10080_v34 }
 0x2d4   :  { %10112 = vst [vmem:[#allocation266_spill] sm:$0xff] %v6592_v6  ;;  %10114 = vst [vmem:[#allocation267_spill] sm:$0xff] %v6597_v44  ;;  %v6614_v6 = vand.u32 2147483647, %v10120_v25  ;;  %v6621_v33 = vand.u32 2147483647, %v10123_v62  ;;  %v10130_v44 = vsub.f32 %v10061_v50, %v10087_v37  ;;  %v10132_v62 = vsub.f32 %v10061_v50, %v10094_v38 }
 0x2d5   :  { %10117 = vst [vmem:[#allocation268_spill] sm:$0xff] %v6604_v29  ;;  %10119 = vst [vmem:[#allocation269_spill] sm:$0xff] %v6609_v19  ;;  %v6626_v29 = vand.u32 2147483647, %v10125_v42  ;;  %v6631_v19 = vand.u32 2147483647, %v10127_v45  ;;  %v10134_v42 = vsub.f32 %v10061_v50, %v10101_v48 }
 0x2d6   :  { %10121 = vst [vmem:[#allocation270_spill] sm:$0xff] %v6614_v6  ;;  %10124 = vst [vmem:[#allocation271_spill] sm:$0xff] %v6621_v33  ;;  %v10129_v25 = vld [vmem:[#allocation74_spill] sm:$0xff]  ;;  %v6638_v28 = vand.u32 2147483647, %v10130_v44  ;;  %v10136_v45 = vld [vmem:[#allocation75_spill] sm:$0xff]  ;;  %v10137_v6 = vsub.f32 %v10061_v50, %v10108_v26  ;;  %v10139_v44 = vsub.f32 %v10061_v50, %v10115_v3 }
 0x2d7   :  { %10126 = vst [vmem:[#allocation272_spill] sm:$0xff] %v6626_v29  ;;  %10128 = vst [vmem:[#allocation273_spill] sm:$0xff] %v6631_v19  ;;  %v6643_v33 = vand.u32 2147483647, %v10132_v62  ;;  %v6648_v29 = vand.u32 2147483647, %v10134_v42  ;;  %v10141_v62 = vsub.f32 %v10061_v50, %v10122_v36  ;;  %v10143_v42 = vsub.f32 %v10061_v50, %v10129_v25 }
 0x2d8   :  { %10131 = vst [vmem:[#allocation274_spill] sm:$0xff] %v6638_v28  ;;  %v6655_v34 = vand.u32 2147483647, %v10137_v6  ;;  %v6660_v28 = vand.u32 2147483647, %v10139_v44  ;;  %v10145_v19 = vsub.f32 %v10061_v50, %v10136_v45  ;;  %v10186_v50 = vld [vmem:[#allocation113_spill] sm:$0xff] }
 0x2d9   :  { %10133 = vst [vmem:[#allocation275_spill] sm:$0xff] %v6643_v33  ;;  %10135 = vst [vmem:[#allocation276_spill] sm:$0xff] %v6648_v29  ;;  %v6665_v33 = vand.u32 2147483647, %v10141_v62  ;;  %v6670_v29 = vand.u32 2147483647, %v10143_v42 }
 0x2da   :  { %10138 = vst [vmem:[#allocation277_spill] sm:$0xff] %v6655_v34  ;;  %10140 = vst [vmem:[#allocation278_spill] sm:$0xff] %v6660_v28  ;;  %v6675_v6 = vand.u32 2147483647, %v10145_v19  ;;  %v10184_v62 = vld [vmem:[#allocation66_spill] sm:$0xff]  ;;  %v10187_v25 = vsub.f32 1.0, %v10186_v50 }
 0x2db   :  { %10142 = vst [vmem:[#allocation279_spill] sm:$0xff] %v6665_v33  ;;  %10144 = vst [vmem:[#allocation280_spill] sm:$0xff] %v6670_v29  ;;  %v10185_v56 = vsub.f32 1.0, %v10184_v62  ;;  %v10188_v29 = vld [vmem:[#allocation114_spill] sm:$0xff]  ;;  %v10190_v44 = vld [vmem:[#allocation115_spill] sm:$0xff] }
 0x2dc   :  { %10146 = vst [vmem:[#allocation281_spill] sm:$0xff] %v6675_v6  ;;  %v2518_v6 = vmax.f32 %v10187_v25, 0.0  ;;  %v10189_v26 = vsub.f32 1.0, %v10188_v29  ;;  %v10191_v19 = vsub.f32 1.0, %v10190_v44  ;;  %v10192_v45 = vld [vmem:[#allocation116_spill] sm:$0xff]  ;;  %v10194_v33 = vld [vmem:[#allocation117_spill] sm:$0xff] }
 0x2dd   :  { %v2514_v37 = vmax.f32 %v10185_v56, 0.0  ;;  %v10193_v36 = vsub.f32 1.0, %v10192_v45  ;;  %v10195_v3 = vsub.f32 1.0, %v10194_v33  ;;  %v10196_v28 = vld [vmem:[#allocation118_spill] sm:$0xff]  ;;  %v10198_v62 = vld [vmem:[#allocation119_spill] sm:$0xff]  ;;  %v10200_v50 = vld [vmem:[#allocation120_spill] sm:$0xff] }
 0x2de   :  { %v2522_v7 = vmax.f32 %v10189_v26, 0.0  ;;  %v2526_v48 = vmax.f32 %v10191_v19, 0.0  ;;  %v10197_v42 = vsub.f32 1.0, %v10196_v28  ;;  %v10199_v56 = vsub.f32 1.0, %v10198_v62  ;;  %v10202_v29 = vld [vmem:[#allocation122_spill] sm:$0xff]  ;;  %v10204_v19 = vld [vmem:[#allocation123_spill] sm:$0xff] }
 0x2df   :  { %v2530_v34 = vmax.f32 %v10193_v36, 0.0  ;;  %v2534_v23 = vmax.f32 %v10195_v3, 0.0  ;;  %v10201_v25 = vsub.f32 1.0, %v10200_v50  ;;  %v10203_v26 = vsub.f32 1.0, %v10202_v29  ;;  %v10206_v33 = vld [vmem:[#allocation124_spill] sm:$0xff]  ;;  %v10208_v28 = vld [vmem:[#allocation125_spill] sm:$0xff] }
 0x2e0   :  { %v2538_v38 = vmax.f32 %v10197_v42, 0.0  ;;  %v2542_v55 = vmax.f32 %v10199_v56, 0.0  ;;  %v10205_v45 = vsub.f32 1.0, %v10204_v19  ;;  %v10207_v3 = vsub.f32 1.0, %v10206_v33  ;;  %v10211_v56 = vld [vmem:[#allocation126_spill] sm:$0xff]  ;;  %v10214_v39 = vld [vmem:[#allocation127_spill] sm:$0xff] }
 0x2e1   :  { %v6732_v24 = vmax.f32 %v10201_v25, 0.0  ;;  %v6736_v44 = vmax.f32 %v10203_v26, 0.0  ;;  %v10209_v42 = vsub.f32 1.0, %v10208_v28  ;;  %v10212_v50 = vsub.f32 1.0, %v10211_v56  ;;  %v10217_v63 = vld [vmem:[#allocation128_spill] sm:$0xff]  ;;  %v10220_v35 = vld [vmem:[#allocation129_spill] sm:$0xff] }
 0x2e2   :  { %v6740_v36 = vmax.f32 %v10205_v45, 0.0  ;;  %v6744_v41 = vmax.f32 %v10207_v3, 0.0  ;;  %v10215_v29 = vsub.f32 1.0, %v10214_v39  ;;  %v10218_v19 = vsub.f32 1.0, %v10217_v63  ;;  %v10223_v15 = vld [vmem:[#allocation130_spill] sm:$0xff]  ;;  %v10226_v20 = vld [vmem:[#allocation131_spill] sm:$0xff] }
 0x2e3   :  { %v6748_v62 = vmax.f32 %v10209_v42, 0.0  ;;  %v6752_v25 = vmax.f32 %v10212_v50, 0.0  ;;  %v10221_v33 = vsub.f32 1.0, %v10220_v35  ;;  %v10224_v28 = vsub.f32 1.0, %v10223_v15  ;;  %v10229_v12 = vld [vmem:[#allocation132_spill] sm:$0xff]  ;;  %v10383_v32 = vld [vmem:[#allocation222_spill] sm:$0xff] }
 0x2e4   :  { %v6756_v26 = vmax.f32 %v10215_v29, 0.0  ;;  %v6760_v45 = vmax.f32 %v10218_v19, 0.0  ;;  %v10227_v56 = vsub.f32 1.0, %v10226_v20  ;;  %v10230_v39 = vsub.f32 1.0, %v10229_v12  ;;  %v10384_v40 = vld [vmem:[#allocation223_spill] sm:$0xff]  ;;  %v10386_v59 = vld [vmem:[#allocation225_spill] sm:$0xff] }
 0x2e5   :  { %10210 = vst [vmem:[#allocation66_spill] sm:$0xff] %v6748_v62  ;;  %10213 = vst [vmem:[#allocation113_spill] sm:$0xff] %v6752_v25  ;;  %v6764_v3 = vmax.f32 %v10221_v33, 0.0  ;;  %v6768_v42 = vmax.f32 %v10224_v28, 0.0  ;;  %v10385_v25 = vld [vmem:[#allocation224_spill] sm:$0xff]  ;;  %v10388_v62 = vld [vmem:[#allocation227_spill] sm:$0xff] }
 0x2e6   :  { %10216 = vst [vmem:[#allocation114_spill] sm:$0xff] %v6756_v26  ;;  %10219 = vst [vmem:[#allocation115_spill] sm:$0xff] %v6760_v45  ;;  %v6772_v50 = vmax.f32 %v10227_v56, 0.0  ;;  %v6776_v29 = vmax.f32 %v10230_v39, 0.0  ;;  %v10232_v26 = vld [vmem:[#allocation133_spill] sm:$0xff]  ;;  %v10235_v45 = vld [vmem:[#allocation134_spill] sm:$0xff] }
 0x2e7   :  { %10222 = vst [vmem:[#allocation116_spill] sm:$0xff] %v6764_v3  ;;  %10225 = vst [vmem:[#allocation117_spill] sm:$0xff] %v6768_v42  ;;  %v10233_v63 = vsub.f32 1.0, %v10232_v26  ;;  %v10236_v35 = vsub.f32 1.0, %v10235_v45  ;;  %v10238_v3 = vld [vmem:[#allocation135_spill] sm:$0xff]  ;;  %v10241_v42 = vld [vmem:[#allocation136_spill] sm:$0xff] }
 0x2e8   :  { %10228 = vst [vmem:[#allocation118_spill] sm:$0xff] %v6772_v50  ;;  %10231 = vst [vmem:[#allocation119_spill] sm:$0xff] %v6776_v29  ;;  %v10239_v15 = vsub.f32 1.0, %v10238_v3  ;;  %v10242_v20 = vsub.f32 1.0, %v10241_v42  ;;  %v10244_v50 = vld [vmem:[#allocation137_spill] sm:$0xff]  ;;  %v10247_v29 = vld [vmem:[#allocation138_spill] sm:$0xff] }
 0x2e9   :  { %v6780_v19 = vmax.f32 %v10233_v63, 0.0  ;;  %v6784_v33 = vmax.f32 %v10236_v35, 0.0  ;;  %v10245_v12 = vsub.f32 1.0, %v10244_v50  ;;  %v10248_v26 = vsub.f32 1.0, %v10247_v29  ;;  %v10389_v54 = vld [vmem:[#allocation228_spill] sm:$0xff]  ;;  %v10390_v51 = vld [vmem:[#allocation229_spill] sm:$0xff] }
 0x2ea   :  { %v6788_v28 = vmax.f32 %v10239_v15, 0.0  ;;  %v6792_v56 = vmax.f32 %v10242_v20, 0.0 }
 0x2eb   :  { %10234 = vst [vmem:[#allocation120_spill] sm:$0xff] %v6780_v19  ;;  %10237 = vst [vmem:[#allocation122_spill] sm:$0xff] %v6784_v33  ;;  %v6796_v39 = vmax.f32 %v10245_v12, 0.0  ;;  %v6800_v63 = vmax.f32 %v10248_v26, 0.0  ;;  %v10250_v19 = vld [vmem:[#allocation139_spill] sm:$0xff]  ;;  %v10253_v33 = vld [vmem:[#allocation140_spill] sm:$0xff] }
 0x2ec   :  { %10240 = vst [vmem:[#allocation123_spill] sm:$0xff] %v6788_v28  ;;  %10243 = vst [vmem:[#allocation124_spill] sm:$0xff] %v6792_v56  ;;  %v10251_v45 = vsub.f32 1.0, %v10250_v19  ;;  %v10254_v3 = vsub.f32 1.0, %v10253_v33  ;;  %v10256_v28 = vld [vmem:[#allocation141_spill] sm:$0xff]  ;;  %v10259_v56 = vld [vmem:[#allocation142_spill] sm:$0xff] }
 0x2ed   :  { %10246 = vst [vmem:[#allocation125_spill] sm:$0xff] %v6796_v39  ;;  %10249 = vst [vmem:[#allocation126_spill] sm:$0xff] %v6800_v63  ;;  %v10257_v42 = vsub.f32 1.0, %v10256_v28  ;;  %v10260_v50 = vsub.f32 1.0, %v10259_v56  ;;  %v10262_v39 = vld [vmem:[#allocation143_spill] sm:$0xff]  ;;  %v10265_v63 = vld [vmem:[#allocation144_spill] sm:$0xff] }
 0x2ee   :  { %v6804_v35 = vmax.f32 %v10251_v45, 0.0  ;;  %v6808_v15 = vmax.f32 %v10254_v3, 0.0  ;;  %v10263_v29 = vsub.f32 1.0, %v10262_v39  ;;  %v10266_v19 = vsub.f32 1.0, %v10265_v63 }
 0x2ef   :  { %v6812_v20 = vmax.f32 %v10257_v42, 0.0  ;;  %v6816_v12 = vmax.f32 %v10260_v50, 0.0 }
 0x2f0   :  { %10252 = vst [vmem:[#allocation127_spill] sm:$0xff] %v6804_v35  ;;  %10255 = vst [vmem:[#allocation128_spill] sm:$0xff] %v6808_v15  ;;  %v6820_v26 = vmax.f32 %v10263_v29, 0.0  ;;  %v6824_v45 = vmax.f32 %v10266_v19, 0.0  ;;  %v10268_v35 = vld [vmem:[#allocation145_spill] sm:$0xff]  ;;  %v10271_v15 = vld [vmem:[#allocation146_spill] sm:$0xff] }
 0x2f1   :  { %10258 = vst [vmem:[#allocation129_spill] sm:$0xff] %v6812_v20  ;;  %10261 = vst [vmem:[#allocation130_spill] sm:$0xff] %v6816_v12  ;;  %v10269_v33 = vsub.f32 1.0, %v10268_v35  ;;  %v10272_v28 = vsub.f32 1.0, %v10271_v15  ;;  %v10274_v20 = vld [vmem:[#allocation147_spill] sm:$0xff]  ;;  %v10277_v12 = vld [vmem:[#allocation148_spill] sm:$0xff]  ;;  %v10283_v35 = vsub.f32 %v5747_v27, %v4519_v46  ;;  %v10284_v15 = vsub.f32 %v5747_v27, %v4521_v47 }
 0x2f2   :  { %10264 = vst [vmem:[#allocation131_spill] sm:$0xff] %v6820_v26  ;;  %10267 = vst [vmem:[#allocation132_spill] sm:$0xff] %v6824_v45  ;;  %v10275_v56 = vsub.f32 1.0, %v10274_v20  ;;  %v10278_v39 = vsub.f32 1.0, %v10277_v12  ;;  %v10280_v26 = vld [vmem:[#allocation149_spill] sm:$0xff]  ;;  %v10285_v20 = vld [vmem:[#allocation6_spill] sm:$0xff]  ;;  %v10289_v46 = vsub.f32 %v5747_v27, %v4533_v53  ;;  %v10290_v47 = vsub.f32 %v5747_v27, %v9756_v14 }
 0x2f3   :  { %v6828_v3 = vmax.f32 %v10269_v33, 0.0  ;;  %v6832_v42 = vmax.f32 %v10272_v28, 0.0  ;;  %v10281_v63 = vsub.f32 1.0, %v10280_v26  ;;  %v6849_v33 = vand.u32 2147483647, %v10283_v35 }
 0x2f4   :  { %v6836_v50 = vmax.f32 %v10275_v56, 0.0  ;;  %v6840_v29 = vmax.f32 %v10278_v39, 0.0  ;;  %v6854_v28 = vand.u32 2147483647, %v10284_v15  ;;  %v10286_v56 = vsub.f32 %v5747_v27, %v10285_v20 }
 0x2f5   :  { %10270 = vst [vmem:[#allocation133_spill] sm:$0xff] %v6828_v3  ;;  %10273 = vst [vmem:[#allocation134_spill] sm:$0xff] %v6832_v42  ;;  %v6844_v19 = vmax.f32 %v10281_v63, 0.0  ;;  %v6862_v39 = vmul.f32 %v2514_v37, %v6294_v31  ;;  %v10288_v26 = vsub.f32 %v5747_v27, %v4531_v52  ;;  %v6872_v35 = vand.u32 2147483647, %v10289_v46  ;;  %v10379_v42 = vld [vmem:[#allocation29_spill] sm:$0xff] }
 0x2f6   :  { %10276 = vst [vmem:[#allocation135_spill] sm:$0xff] %v6836_v50  ;;  %10279 = vst [vmem:[#allocation136_spill] sm:$0xff] %v6840_v29  ;;  %v6859_v12 = vand.u32 2147483647, %v10286_v56  ;;  %v6877_v15 = vand.u32 2147483647, %v10290_v47  ;;  %v6880_v20 = vmul.f32 %v2518_v6, %v6298_v49  ;;  %v10292_v31 = vsub.f32 %v5747_v27, %v4541_v57 }
 0x2f7   :  { %10282 = vst [vmem:[#allocation137_spill] sm:$0xff] %v6844_v19  ;;  %10287 = vst [vmem:[#allocation138_spill] sm:$0xff] %v6862_v39  ;;  %v6867_v63 = vand.u32 2147483647, %v10288_v26  ;;  %v10293_v52 = vsub.f32 %v5747_v27, %v4547_v60  ;;  %v10294_v53 = vsub.f32 %v5747_v27, %v4549_v61  ;;  %v6898_v14 = vmul.f32 %v2522_v7, %v6302_v22  ;;  %v10382_v3 = vld [vmem:[#allocation221_spill] sm:$0xff]  ;;  %v10415_v50 = vld [vmem:[#allocation59_spill] sm:$0xff] }
 0x2f8   :  { %10291 = vst [vmem:[#allocation139_spill] sm:$0xff] %v6880_v20  ;;  %v6885_v37 = vand.u32 2147483647, %v10292_v31  ;;  %v10296_v49 = vsub.f32 %v5747_v27, %v4555_v0  ;;  %v10297_v57 = vsub.f32 %v5747_v27, %v4557_v1  ;;  %v10298_v60 = vsub.f32 %v5747_v27, %v4563_v4  ;;  %v10429_v29 = vld [vmem:[#allocation151_spill] sm:$0xff] }
 0x2f9   :  { %v6890_v56 = vand.u32 2147483647, %v10293_v52  ;;  %v6895_v26 = vand.u32 2147483647, %v10294_v53  ;;  %10295 = vst [vmem:[#allocation140_spill] sm:$0xff] %v6898_v14  ;;  %v6916_v61 = vmul.f32 %v2526_v48, %v6306_v21  ;;  %v10301_v22 = vsub.f32 %v5747_v27, %v4565_v5 }
 0x2fa   :  { %v6903_v6 = vand.u32 2147483647, %v10296_v49  ;;  %v6908_v46 = vand.u32 2147483647, %v10297_v57  ;;  %v6913_v47 = vand.u32 2147483647, %v10298_v60  ;;  %v10303_v0 = vsub.f32 %v5747_v27, %v4571_v9 }
 0x2fb   :  { %10300 = vst [vmem:[#allocation142_spill] sm:$0xff] %v6916_v61  ;;  %v6921_v7 = vand.u32 2147483647, %v10301_v22  ;;  %v10305_v1 = vsub.f32 %v5747_v27, %v4573_v10  ;;  %v6934_v4 = vmul.f32 %v2530_v34, %v6310_v11  ;;  %v10308_v21 = vsub.f32 %v5747_v27, %v4579_v13 }
 0x2fc   :  { %10299 = vst [vmem:[#allocation141_spill] sm:$0xff] %v6913_v47  ;;  %v6926_v31 = vand.u32 2147483647, %v10303_v0  ;;  %v10310_v5 = vsub.f32 %v5747_v27, %v9812_v58  ;;  %v10312_v9 = vsub.f32 %v5747_v27, %v9813_v2  ;;  %v6952_v10 = vmul.f32 %v2534_v23, %v6314_v8  ;;  %v10319_v58 = vld [vmem:[#allocation30_spill] sm:$0xff]  ;;  %v10322_v2 = vld [vmem:[#allocation76_spill] sm:$0xff]  ;;  %v10324_v8 = vld [vmem:[#allocation33_spill] sm:$0xff] }
 0x2fd   :  { %10302 = vst [vmem:[#allocation143_spill] sm:$0xff] %v6921_v7  ;;  %v6931_v52 = vand.u32 2147483647, %v10305_v1  ;;  %10307 = vst [vmem:[#allocation146_spill] sm:$0xff] %v6934_v4  ;;  %v6939_v48 = vand.u32 2147483647, %v10308_v21  ;;  %v10315_v11 = vsub.f32 %v5747_v27, %v9814_v30  ;;  %v10317_v13 = vsub.f32 %v5747_v27, %v9815_v43 }
 0x2fe   :  { %10304 = vst [vmem:[#allocation144_spill] sm:$0xff] %v6926_v31  ;;  %v6944_v53 = vand.u32 2147483647, %v10310_v5  ;;  %v6949_v49 = vand.u32 2147483647, %v10312_v9  ;;  %10314 = vst [vmem:[#allocation6_spill] sm:$0xff] %v6952_v10  ;;  %v10320_v60 = vsub.f32 %v5747_v27, %v10319_v58  ;;  %v6970_v0 = vmul.f32 %v2538_v38, %v10322_v2 }
 0x2ff   :  { %10306 = vst [vmem:[#allocation145_spill] sm:$0xff] %v6931_v52  ;;  %10309 = vst [vmem:[#allocation147_spill] sm:$0xff] %v6939_v48  ;;  %v6957_v34 = vand.u32 2147483647, %v10315_v11  ;;  %v6962_v57 = vand.u32 2147483647, %v10317_v13  ;;  %v10325_v23 = vsub.f32 %v5747_v27, %v10324_v8 }
 0x300   :  { %10311 = vst [vmem:[#allocation148_spill] sm:$0xff] %v6944_v53  ;;  %10313 = vst [vmem:[#allocation149_spill] sm:$0xff] %v6949_v49  ;;  %v6967_v22 = vand.u32 2147483647, %v10320_v60  ;;  %v10327_v30 = vld [vmem:[#allocation34_spill] sm:$0xff]  ;;  %v10330_v43 = vld [vmem:[#allocation37_spill] sm:$0xff] }
 0x301   :  { %10316 = vst [vmem:[#allocation282_spill] sm:$0xff] %v6957_v34  ;;  %10318 = vst [vmem:[#allocation283_spill] sm:$0xff] %v6962_v57  ;;  %v6975_v1 = vand.u32 2147483647, %v10325_v23  ;;  %v10328_v21 = vsub.f32 %v5747_v27, %v10327_v30  ;;  %v10331_v9 = vsub.f32 %v5747_v27, %v10330_v43  ;;  %v10333_v13 = vld [vmem:[#allocation77_spill] sm:$0xff]  ;;  %v10335_v38 = vld [vmem:[#allocation38_spill] sm:$0xff] }
 0x302   :  { %10321 = vst [vmem:[#allocation30_spill] sm:$0xff] %v6967_v22  ;;  %10323 = vst [vmem:[#allocation76_spill] sm:$0xff] %v6970_v0  ;;  %v6988_v58 = vmul.f32 %v2542_v55, %v10333_v13  ;;  %v10336_v60 = vsub.f32 %v5747_v27, %v10335_v38  ;;  %v10338_v8 = vld [vmem:[#allocation41_spill] sm:$0xff]  ;;  %v10341_v30 = vld [vmem:[#allocation42_spill] sm:$0xff] }
 0x303   :  { %10326 = vst [vmem:[#allocation33_spill] sm:$0xff] %v6975_v1  ;;  %v6980_v5 = vand.u32 2147483647, %v10328_v21  ;;  %v6985_v11 = vand.u32 2147483647, %v10331_v9  ;;  %v10339_v23 = vsub.f32 %v5747_v27, %v10338_v8  ;;  %v10342_v21 = vsub.f32 %v5747_v27, %v10341_v30  ;;  %v10344_v43 = vld [vmem:[#allocation78_spill] sm:$0xff] }
 0x304   :  { %10334 = vst [vmem:[#allocation77_spill] sm:$0xff] %v6988_v58  ;;  %v6993_v2 = vand.u32 2147483647, %v10336_v60  ;;  %v7007_v9 = vmul.f32 %v6732_v24, %v10344_v43  ;;  %v10346_v55 = vld [vmem:[#allocation45_spill] sm:$0xff]  ;;  %v10349_v60 = vld [vmem:[#allocation46_spill] sm:$0xff]  ;;  %v10393_v47 = vld [vmem:[#allocation232_spill] sm:$0xff] }
 0x305   :  { %10329 = vst [vmem:[#allocation34_spill] sm:$0xff] %v6980_v5  ;;  %10332 = vst [vmem:[#allocation37_spill] sm:$0xff] %v6985_v11  ;;  %v6998_v45 = vand.u32 2147483647, %v10339_v23  ;;  %v7003_v0 = vand.u32 2147483647, %v10342_v21  ;;  %v10347_v13 = vsub.f32 %v5747_v27, %v10346_v55  ;;  %v10350_v58 = vsub.f32 %v5747_v27, %v10349_v60 }
 0x306   :  { %10337 = vst [vmem:[#allocation38_spill] sm:$0xff] %v6993_v2  ;;  %10345 = vst [vmem:[#allocation78_spill] sm:$0xff] %v7007_v9  ;;  %v10352_v23 = vld [vmem:[#allocation49_spill] sm:$0xff]  ;;  %v10355_v21 = vld [vmem:[#allocation79_spill] sm:$0xff] }
 0x307   :  { %10340 = vst [vmem:[#allocation41_spill] sm:$0xff] %v6998_v45  ;;  %10343 = vst [vmem:[#allocation42_spill] sm:$0xff] %v7003_v0  ;;  %v7012_v38 = vand.u32 2147483647, %v10347_v13  ;;  %v7017_v8 = vand.u32 2147483647, %v10350_v58  ;;  %v10353_v10 = vsub.f32 %v5747_v27, %v10352_v23  ;;  %v7026_v4 = vmul.f32 %v6736_v44, %v10355_v21 }
 0x308   :  { %v10357_v24 = vld [vmem:[#allocation50_spill] sm:$0xff]  ;;  %v10362_v58 = vld [vmem:[#allocation57_spill] sm:$0xff]  ;;  %v10396_v52 = vld [vmem:[#allocation235_spill] sm:$0xff] }
 0x309   :  { %10348 = vst [vmem:[#allocation45_spill] sm:$0xff] %v7012_v38  ;;  %10351 = vst [vmem:[#allocation46_spill] sm:$0xff] %v7017_v8  ;;  %v7022_v30 = vand.u32 2147483647, %v10353_v10  ;;  %v10358_v43 = vsub.f32 %v5747_v27, %v10357_v24  ;;  %v10360_v13 = vld [vmem:[#allocation54_spill] sm:$0xff]  ;;  %v10363_v61 = vsub.f32 %v5747_v27, %v10362_v58  ;;  %v10364_v10 = vld [vmem:[#allocation80_spill] sm:$0xff] }
 0x30a   :  { %10356 = vst [vmem:[#allocation79_spill] sm:$0xff] %v7026_v4  ;;  %v10361_v9 = vsub.f32 %v5747_v27, %v10360_v13  ;;  %v7045_v14 = vmul.f32 %v6740_v36, %v10364_v10  ;;  %v10366_v44 = vld [vmem:[#allocation62_spill] sm:$0xff]  ;;  %v10374_v36 = vld [vmem:[#allocation73_spill] sm:$0xff]  ;;  %v10397_v48 = vld [vmem:[#allocation236_spill] sm:$0xff] }
 0x30b   :  { %10354 = vst [vmem:[#allocation49_spill] sm:$0xff] %v7022_v30  ;;  %v7031_v55 = vand.u32 2147483647, %v10358_v43  ;;  %v7041_v23 = vand.u32 2147483647, %v10363_v61  ;;  %v10367_v21 = vsub.f32 %v5747_v27, %v10366_v44  ;;  %v10368_v43 = vld [vmem:[#allocation65_spill] sm:$0xff]  ;;  %v10375_v10 = vsub.f32 %v5747_v27, %v10374_v36 }
 0x30c   :  { %v7036_v60 = vand.u32 2147483647, %v10361_v9  ;;  %10365 = vst [vmem:[#allocation54_spill] sm:$0xff] %v7045_v14  ;;  %v10369_v4 = vsub.f32 %v5747_v27, %v10368_v43  ;;  %v10370_v9 = vld [vmem:[#allocation72_spill] sm:$0xff]  ;;  %v10372_v61 = vld [vmem:[#allocation81_spill] sm:$0xff]  ;;  %v10395_v31 = vld [vmem:[#allocation234_spill] sm:$0xff] }
 0x30d   :  { %10359 = vst [vmem:[#allocation50_spill] sm:$0xff] %v7031_v55  ;;  %v7050_v24 = vand.u32 2147483647, %v10367_v21  ;;  %v10371_v20 = vsub.f32 %v5747_v27, %v10370_v9  ;;  %v7064_v39 = vmul.f32 %v6744_v41, %v10372_v61  ;;  %v7069_v44 = vand.u32 2147483647, %v10375_v10  ;;  %v10376_v21 = vld [vmem:[#allocation22_spill] sm:$0xff] }
 0x30e   :  { %v7055_v13 = vand.u32 2147483647, %v10369_v4  ;;  %v10377_v4 = vld [vmem:[#allocation25_spill] sm:$0xff]  ;;  %v10378_v9 = vld [vmem:[#allocation26_spill] sm:$0xff]  ;;  %v10381_v10 = vld [vmem:[#allocation220_spill] sm:$0xff]  ;;  %v10416_v41 = vsub.f32 1.0, %v10415_v50 }
 0x30f   :  { %v7060_v58 = vand.u32 2147483647, %v10371_v20  ;;  %10373 = vst [vmem:[#allocation57_spill] sm:$0xff] %v7064_v39  ;;  %v10380_v39 = vld [vmem:[#allocation69_spill] sm:$0xff]  ;;  %v10399_v49 = vld [vmem:[#allocation238_spill] sm:$0xff]  ;;  %v10400_v34 = vld [vmem:[#allocation239_spill] sm:$0xff] }
 0x310   :  { %v10394_v7 = vld [vmem:[#allocation233_spill] sm:$0xff]  ;;  %v10401_v57 = vld [vmem:[#allocation240_spill] sm:$0xff]  ;;  %v10403_v1 = vld [vmem:[#allocation242_spill] sm:$0xff]  ;;  %v10413_v20 = vsub.f32 1.0, %v10376_v21  ;;  %v7151_v38 = vmax.f32 %v10416_v41, 0.0  ;;  %v10418_v27 = vsub.f32 1.0, %v6849_v33 }
 0x311   :  { %v10398_v53 = vld [vmem:[#allocation237_spill] sm:$0xff]  ;;  %v10404_v5 = vld [vmem:[#allocation243_spill] sm:$0xff]  ;;  %v10405_v11 = vld [vmem:[#allocation244_spill] sm:$0xff]  ;;  %v10420_v14 = vsub.f32 1.0, %v10377_v4  ;;  %v10425_v21 = vsub.f32 1.0, %v6854_v28  ;;  %v10427_v50 = vsub.f32 1.0, %v10378_v9 }
 0x312   :  { %v10402_v22 = vld [vmem:[#allocation241_spill] sm:$0xff]  ;;  %v10407_v45 = vld [vmem:[#allocation246_spill] sm:$0xff]  ;;  %v7147_v0 = vmax.f32 %v10413_v20, 0.0  ;;  %10417 = vst [vmem:[#allocation62_spill] sm:$0xff] %v7151_v38  ;;  %v7155_v61 = vmax.f32 %v10418_v27, 0.0  ;;  %v10430_v33 = vsub.f32 1.0, %v10429_v29 }
 0x313   :  { %v10406_v2 = vld [vmem:[#allocation245_spill] sm:$0xff]  ;;  %v10411_v30 = vld [vmem:[#allocation250_spill] sm:$0xff]  ;;  %v7159_v36 = vmax.f32 %v10420_v14, 0.0  ;;  %v7167_v20 = vmax.f32 %v10425_v21, 0.0  ;;  %v7171_v41 = vmax.f32 %v10427_v50, 0.0  ;;  %v10432_v4 = vsub.f32 1.0, %v6859_v12 }
 0x314   :  { %v10410_v8 = vld [vmem:[#allocation249_spill] sm:$0xff]  ;;  %10414 = vst [vmem:[#allocation80_spill] sm:$0xff] %v7147_v0  ;;  %10419 = vst [vmem:[#allocation65_spill] sm:$0xff] %v7155_v61  ;;  %v10422_v43 = vld [vmem:[#allocation150_spill] sm:$0xff]  ;;  %v7175_v27 = vmax.f32 %v10430_v33, 0.0  ;;  %v10439_v9 = vsub.f32 1.0, %v6867_v63 }
 0x315   :  { %10421 = vst [vmem:[#allocation72_spill] sm:$0xff] %v7159_v36  ;;  %v10423_v19 = vsub.f32 1.0, %v10422_v43  ;;  %10426 = vst [vmem:[#allocation73_spill] sm:$0xff] %v7167_v20  ;;  %v7179_v14 = vmax.f32 %v10432_v4, 0.0  ;;  %v10434_v43 = vsub.f32 1.0, %v10379_v42  ;;  %v10436_v61 = vld [vmem:[#allocation152_spill] sm:$0xff] }
 0x316   :  { %10428 = vst [vmem:[#allocation22_spill] sm:$0xff] %v7171_v41  ;;  %10431 = vst [vmem:[#allocation25_spill] sm:$0xff] %v7175_v27  ;;  %v10437_v28 = vsub.f32 1.0, %v10436_v61  ;;  %v7191_v50 = vmax.f32 %v10439_v9, 0.0  ;;  %v10441_v29 = vsub.f32 1.0, %v10380_v39  ;;  %v10443_v27 = vld [vmem:[#allocation153_spill] sm:$0xff] }
 0x317   :  { %v7163_v55 = vmax.f32 %v10423_v19, 0.0  ;;  %10433 = vst [vmem:[#allocation26_spill] sm:$0xff] %v7179_v14  ;;  %v7183_v19 = vmax.f32 %v10434_v43, 0.0  ;;  %v10444_v12 = vsub.f32 1.0, %v10443_v27  ;;  %v10445_v42 = vsub.f32 1.0, %v6872_v35  ;;  %v10839_v38 = vld [vmem:[#allocation255_spill] sm:$0xff] }
 0x318   :  { %v7187_v21 = vmax.f32 %v10437_v28, 0.0  ;;  %10440 = vst [vmem:[#allocation220_spill] sm:$0xff] %v7191_v50  ;;  %v7195_v33 = vmax.f32 %v10441_v29, 0.0  ;;  %v10447_v61 = vsub.f32 1.0, %v10381_v10  ;;  %v10451_v39 = vsub.f32 1.0, %v6877_v15  ;;  %v10821_v50 = vld [vmem:[#allocation123_spill] sm:$0xff] }
 0x319   :  { %10424 = vst [vmem:[#allocation81_spill] sm:$0xff] %v7163_v55  ;;  %10435 = vst [vmem:[#allocation29_spill] sm:$0xff] %v7183_v19  ;;  %v7199_v4 = vmax.f32 %v10444_v12, 0.0  ;;  %v7203_v43 = vmax.f32 %v10445_v42, 0.0  ;;  %v10453_v27 = vsub.f32 1.0, %v10382_v3  ;;  %v10457_v10 = vsub.f32 1.0, %v6885_v37 }
 0x31a   :  { %10438 = vst [vmem:[#allocation69_spill] sm:$0xff] %v7187_v21  ;;  %10442 = vst [vmem:[#allocation221_spill] sm:$0xff] %v7195_v33  ;;  %v7207_v28 = vmax.f32 %v10447_v61, 0.0  ;;  %v10449_v21 = vld [vmem:[#allocation154_spill] sm:$0xff]  ;;  %v7215_v29 = vmax.f32 %v10451_v39, 0.0  ;;  %v10455_v33 = vld [vmem:[#allocation155_spill] sm:$0xff] }
 0x31b   :  { %10446 = vst [vmem:[#allocation222_spill] sm:$0xff] %v7203_v43  ;;  %v10450_v63 = vsub.f32 1.0, %v10449_v21  ;;  %v7219_v12 = vmax.f32 %v10453_v27, 0.0  ;;  %v10456_v35 = vsub.f32 1.0, %v10455_v33  ;;  %v7227_v61 = vmax.f32 %v10457_v10, 0.0  ;;  %v10461_v43 = vld [vmem:[#allocation156_spill] sm:$0xff] }
 0x31c   :  { %10448 = vst [vmem:[#allocation223_spill] sm:$0xff] %v7207_v28  ;;  %10452 = vst [vmem:[#allocation224_spill] sm:$0xff] %v7215_v29  ;;  %v10459_v21 = vsub.f32 1.0, %v10383_v32  ;;  %v10462_v15 = vsub.f32 1.0, %v10461_v43  ;;  %v10463_v3 = vsub.f32 1.0, %v6890_v56  ;;  %v10465_v33 = vsub.f32 1.0, %v10384_v40 }
 0x31d   :  { %v7211_v9 = vmax.f32 %v10450_v63, 0.0  ;;  %10454 = vst [vmem:[#allocation225_spill] sm:$0xff] %v7219_v12  ;;  %v7223_v42 = vmax.f32 %v10456_v35, 0.0  ;;  %10458 = vst [vmem:[#allocation226_spill] sm:$0xff] %v7227_v61  ;;  %v10467_v12 = vld [vmem:[#allocation157_spill] sm:$0xff]  ;;  %v10470_v32 = vsub.f32 1.0, %v6895_v26 }
 0x31e   :  { %v7231_v63 = vmax.f32 %v10459_v21, 0.0  ;;  %v7235_v39 = vmax.f32 %v10462_v15, 0.0  ;;  %v7239_v27 = vmax.f32 %v10463_v3, 0.0  ;;  %v7243_v35 = vmax.f32 %v10465_v33, 0.0  ;;  %v10474_v61 = vld [vmem:[#allocation158_spill] sm:$0xff]  ;;  %v10840_v36 = vld [vmem:[#allocation256_spill] sm:$0xff] }
 0x31f   :  { %v10468_v37 = vsub.f32 1.0, %v10467_v12  ;;  %v7251_v21 = vmax.f32 %v10470_v32, 0.0  ;;  %v10472_v43 = vsub.f32 1.0, %v10385_v25  ;;  %v10475_v56 = vsub.f32 1.0, %v10474_v61  ;;  %v10838_v55 = vld [vmem:[#allocation254_spill] sm:$0xff]  ;;  %v10841_v0 = vld [vmem:[#allocation257_spill] sm:$0xff] }
 0x320   :  { %10460 = vst [vmem:[#allocation227_spill] sm:$0xff] %v7231_v63  ;;  %10464 = vst [vmem:[#allocation228_spill] sm:$0xff] %v7239_v27  ;;  %v10477_v40 = vsub.f32 1.0, %v6903_v6  ;;  %v10479_v12 = vsub.f32 1.0, %v10386_v59  ;;  %v10484_v25 = vsub.f32 1.0, %v6908_v46  ;;  %v10486_v61 = vsub.f32 1.0, %v10387_v18 }
 0x321   :  { %10466 = vst [vmem:[#allocation229_spill] sm:$0xff] %v7243_v35  ;;  %v7247_v10 = vmax.f32 %v10468_v37, 0.0  ;;  %10471 = vst [vmem:[#allocation231_spill] sm:$0xff] %v7251_v21  ;;  %v7255_v15 = vmax.f32 %v10472_v43, 0.0  ;;  %v7259_v3 = vmax.f32 %v10475_v56, 0.0  ;;  %v10809_v63 = vld [vmem:[#allocation122_spill] sm:$0xff] }
 0x322   :  { %v7263_v33 = vmax.f32 %v10477_v40, 0.0  ;;  %v7267_v37 = vmax.f32 %v10479_v12, 0.0  ;;  %v7275_v43 = vmax.f32 %v10484_v25, 0.0  ;;  %v7279_v56 = vmax.f32 %v10486_v61, 0.0 }
 0x323   :  { %10469 = vst [vmem:[#allocation230_spill] sm:$0xff] %v7247_v10  ;;  %10473 = vst [vmem:[#allocation232_spill] sm:$0xff] %v7255_v15  ;;  %v10481_v10 = vld [vmem:[#allocation159_spill] sm:$0xff]  ;;  %v10797_v15 = vld [vmem:[#allocation120_spill] sm:$0xff] }
 0x324   :  { %10476 = vst [vmem:[#allocation233_spill] sm:$0xff] %v7259_v3  ;;  %10478 = vst [vmem:[#allocation234_spill] sm:$0xff] %v7263_v33  ;;  %v10482_v26 = vsub.f32 1.0, %v10481_v10  ;;  %v10488_v3 = vld [vmem:[#allocation160_spill] sm:$0xff]  ;;  %v10491_v33 = vld [vmem:[#allocation141_spill] sm:$0xff]  ;;  %v10494_v10 = vsub.f32 1.0, %v10388_v62 }
 0x325   :  { %10480 = vst [vmem:[#allocation235_spill] sm:$0xff] %v7267_v37  ;;  %10485 = vst [vmem:[#allocation237_spill] sm:$0xff] %v7275_v43  ;;  %v10489_v6 = vsub.f32 1.0, %v10488_v3  ;;  %v10492_v59 = vsub.f32 1.0, %v10491_v33  ;;  %v10499_v43 = vld [vmem:[#allocation143_spill] sm:$0xff]  ;;  %v10502_v3 = vsub.f32 1.0, %v10389_v54 }
 0x326   :  { %v7271_v32 = vmax.f32 %v10482_v26, 0.0  ;;  %10487 = vst [vmem:[#allocation238_spill] sm:$0xff] %v7279_v56  ;;  %v7291_v26 = vmax.f32 %v10494_v10, 0.0  ;;  %v10500_v18 = vsub.f32 1.0, %v10499_v43  ;;  %v10785_v56 = vld [vmem:[#allocation119_spill] sm:$0xff] }
 0x327   :  { %v7283_v40 = vmax.f32 %v10489_v6, 0.0  ;;  %v7287_v12 = vmax.f32 %v10492_v59, 0.0  ;;  %v7303_v6 = vmax.f32 %v10502_v3, 0.0 }
 0x328   :  { %10483 = vst [vmem:[#allocation236_spill] sm:$0xff] %v7271_v32  ;;  %10495 = vst [vmem:[#allocation241_spill] sm:$0xff] %v7291_v26  ;;  %v10496_v32 = vld [vmem:[#allocation161_spill] sm:$0xff]  ;;  %v7299_v61 = vmax.f32 %v10500_v18, 0.0 }
 0x329   :  { %10490 = vst [vmem:[#allocation239_spill] sm:$0xff] %v7283_v40  ;;  %10493 = vst [vmem:[#allocation240_spill] sm:$0xff] %v7287_v12  ;;  %v10497_v46 = vsub.f32 1.0, %v10496_v32  ;;  %v10504_v40 = vld [vmem:[#allocation162_spill] sm:$0xff]  ;;  %v10507_v12 = vld [vmem:[#allocation144_spill] sm:$0xff]  ;;  %v10510_v32 = vsub.f32 1.0, %v10390_v51 }
 0x32a   :  { %10501 = vst [vmem:[#allocation243_spill] sm:$0xff] %v7299_v61  ;;  %10503 = vst [vmem:[#allocation244_spill] sm:$0xff] %v7303_v6  ;;  %v10505_v33 = vsub.f32 1.0, %v10504_v40  ;;  %v10508_v62 = vsub.f32 1.0, %v10507_v12  ;;  %v10515_v61 = vld [vmem:[#allocation145_spill] sm:$0xff]  ;;  %v10518_v40 = vsub.f32 1.0, %v10391_v17 }
 0x32b   :  { %v7295_v25 = vmax.f32 %v10497_v46, 0.0  ;;  %v7315_v46 = vmax.f32 %v10510_v32, 0.0  ;;  %v10516_v54 = vsub.f32 1.0, %v10515_v61 }
 0x32c   :  { %v7307_v59 = vmax.f32 %v10505_v33, 0.0  ;;  %v7311_v10 = vmax.f32 %v10508_v62, 0.0  ;;  %v7327_v33 = vmax.f32 %v10518_v40, 0.0 }
 0x32d   :  { %10498 = vst [vmem:[#allocation242_spill] sm:$0xff] %v7295_v25  ;;  %10511 = vst [vmem:[#allocation249_spill] sm:$0xff] %v7315_v46  ;;  %v10512_v25 = vld [vmem:[#allocation163_spill] sm:$0xff]  ;;  %v7323_v3 = vmax.f32 %v10516_v54, 0.0  ;;  %v10773_v46 = vld [vmem:[#allocation118_spill] sm:$0xff] }
 0x32e   :  { %10506 = vst [vmem:[#allocation245_spill] sm:$0xff] %v7307_v59  ;;  %10509 = vst [vmem:[#allocation246_spill] sm:$0xff] %v7311_v10  ;;  %v10513_v43 = vsub.f32 1.0, %v10512_v25  ;;  %v10520_v59 = vld [vmem:[#allocation164_spill] sm:$0xff]  ;;  %v10523_v10 = vld [vmem:[#allocation147_spill] sm:$0xff]  ;;  %v10526_v25 = vsub.f32 1.0, %v10392_v16 }
 0x32f   :  { %10517 = vst [vmem:[#allocation59_spill] sm:$0xff] %v7323_v3  ;;  %10519 = vst [vmem:[#allocation150_spill] sm:$0xff] %v7327_v33  ;;  %v10521_v12 = vsub.f32 1.0, %v10520_v59  ;;  %v10524_v51 = vsub.f32 1.0, %v10523_v10  ;;  %v10531_v3 = vld [vmem:[#allocation148_spill] sm:$0xff]  ;;  %v10534_v59 = vsub.f32 1.0, %v10393_v47 }
 0x330   :  { %v7319_v18 = vmax.f32 %v10513_v43, 0.0  ;;  %v7339_v43 = vmax.f32 %v10526_v25, 0.0  ;;  %v10532_v17 = vsub.f32 1.0, %v10531_v3 }
 0x331   :  { %v7331_v62 = vmax.f32 %v10521_v12, 0.0  ;;  %v7335_v32 = vmax.f32 %v10524_v51, 0.0  ;;  %v7351_v12 = vmax.f32 %v10534_v59, 0.0 }
 0x332   :  { %10514 = vst [vmem:[#allocation250_spill] sm:$0xff] %v7319_v18  ;;  %10527 = vst [vmem:[#allocation153_spill] sm:$0xff] %v7339_v43  ;;  %v10528_v18 = vld [vmem:[#allocation165_spill] sm:$0xff]  ;;  %v7347_v40 = vmax.f32 %v10532_v17, 0.0  ;;  %v10544_v43 = vld [vmem:[#allocation167_spill] sm:$0xff] }
 0x333   :  { %10522 = vst [vmem:[#allocation151_spill] sm:$0xff] %v7331_v62  ;;  %10525 = vst [vmem:[#allocation152_spill] sm:$0xff] %v7335_v32  ;;  %v10529_v61 = vsub.f32 1.0, %v10528_v18  ;;  %v10536_v62 = vld [vmem:[#allocation166_spill] sm:$0xff]  ;;  %v10539_v32 = vld [vmem:[#allocation149_spill] sm:$0xff]  ;;  %v10542_v18 = vsub.f32 1.0, %v10394_v7 }
 0x334   :  { %10533 = vst [vmem:[#allocation155_spill] sm:$0xff] %v7347_v40  ;;  %10535 = vst [vmem:[#allocation156_spill] sm:$0xff] %v7351_v12  ;;  %v10537_v10 = vsub.f32 1.0, %v10536_v62  ;;  %v10540_v16 = vsub.f32 1.0, %v10539_v32  ;;  %v10545_v3 = vsub.f32 1.0, %v10544_v43  ;;  %v10547_v40 = vld [vmem:[#allocation282_spill] sm:$0xff] }
 0x335   :  { %v7343_v54 = vmax.f32 %v10529_v61, 0.0  ;;  %v7363_v61 = vmax.f32 %v10542_v18, 0.0  ;;  %v10548_v47 = vsub.f32 1.0, %v10547_v40  ;;  %v10550_v62 = vsub.f32 1.0, %v10395_v31 }
 0x336   :  { %v7355_v51 = vmax.f32 %v10537_v10, 0.0  ;;  %v7359_v25 = vmax.f32 %v10540_v16, 0.0  ;;  %v7367_v17 = vmax.f32 %v10545_v3, 0.0  ;;  %v10558_v43 = vsub.f32 1.0, %v10396_v52  ;;  %v2811_v52 = vld [vmem:[%s8764_s3 + $0x8] sm:$0xff] }
 0x337   :  { %10530 = vst [vmem:[#allocation154_spill] sm:$0xff] %v7343_v54  ;;  %10543 = vst [vmem:[#allocation159_spill] sm:$0xff] %v7363_v61  ;;  %v7371_v59 = vmax.f32 %v10548_v47, 0.0  ;;  %v7375_v10 = vmax.f32 %v10550_v62, 0.0  ;;  %2942 = vmatprep.mubr.f32.mxu0 %v2811_v52  ;;  %3180 = vmatprep.mubr.f32.mxu1 %v2811_v52  ;;  %v10595_v52 = vld [vmem:[#allocation38_spill] sm:$0xff]  ;;  %v10749_v61 = vld [vmem:[#allocation116_spill] sm:$0xff] }
 0x338   :  { %10538 = vst [vmem:[#allocation157_spill] sm:$0xff] %v7355_v51  ;;  %10541 = vst [vmem:[#allocation158_spill] sm:$0xff] %v7359_v25  ;;  %v10552_v51 = vld [vmem:[#allocation168_spill] sm:$0xff]  ;;  %v10555_v25 = vld [vmem:[#allocation283_spill] sm:$0xff]  ;;  %v7387_v3 = vmax.f32 %v10558_v43, 0.0 }
 0x339   :  { %10546 = vst [vmem:[#allocation160_spill] sm:$0xff] %v7367_v17  ;;  %10549 = vst [vmem:[#allocation141_spill] sm:$0xff] %v7371_v59  ;;  %v10553_v32 = vsub.f32 1.0, %v10552_v51  ;;  %v10556_v7 = vsub.f32 1.0, %v10555_v25  ;;  %v10560_v17 = vld [vmem:[#allocation169_spill] sm:$0xff]  ;;  %v10563_v59 = vld [vmem:[#allocation30_spill] sm:$0xff] }
 0x33a   :  { %10551 = vst [vmem:[#allocation161_spill] sm:$0xff] %v7375_v10  ;;  %10559 = vst [vmem:[#allocation144_spill] sm:$0xff] %v7387_v3  ;;  %v10561_v40 = vsub.f32 1.0, %v10560_v17  ;;  %v10564_v31 = vsub.f32 1.0, %v10563_v59  ;;  %v10566_v51 = vsub.f32 1.0, %v10397_v48  ;;  %v10571_v43 = vld [vmem:[#allocation33_spill] sm:$0xff] }
 0x33b   :  { %v7379_v16 = vmax.f32 %v10553_v32, 0.0  ;;  %v7383_v18 = vmax.f32 %v10556_v7, 0.0  ;;  %v10572_v17 = vsub.f32 1.0, %v10571_v43  ;;  %v10574_v59 = vsub.f32 1.0, %v10398_v53  ;;  %v10584_v43 = vld [vmem:[#allocation172_spill] sm:$0xff]  ;;  %v10587_v53 = vld [vmem:[#allocation37_spill] sm:$0xff] }
 0x33c   :  { %v7391_v47 = vmax.f32 %v10561_v40, 0.0  ;;  %v7395_v62 = vmax.f32 %v10564_v31, 0.0  ;;  %v7399_v32 = vmax.f32 %v10566_v51, 0.0  ;;  %v10737_v3 = vld [vmem:[#allocation115_spill] sm:$0xff] }
 0x33d   :  { %10554 = vst [vmem:[#allocation143_spill] sm:$0xff] %v7379_v16  ;;  %10557 = vst [vmem:[#allocation162_spill] sm:$0xff] %v7383_v18  ;;  %v10568_v16 = vld [vmem:[#allocation170_spill] sm:$0xff]  ;;  %v7410_v40 = vmax.f32 %v10572_v17, 0.0  ;;  %v7414_v31 = vmax.f32 %v10574_v59, 0.0  ;;  %v10585_v17 = vsub.f32 1.0, %v10584_v43 }
 0x33e   :  { %10562 = vst [vmem:[#allocation163_spill] sm:$0xff] %v7391_v47  ;;  %10565 = vst [vmem:[#allocation145_spill] sm:$0xff] %v7395_v62  ;;  %v10569_v25 = vsub.f32 1.0, %v10568_v16  ;;  %v10576_v47 = vld [vmem:[#allocation171_spill] sm:$0xff]  ;;  %v10579_v62 = vld [vmem:[#allocation34_spill] sm:$0xff]  ;;  %v10588_v59 = vsub.f32 1.0, %v10587_v53 }
 0x33f   :  { %10567 = vst [vmem:[#allocation164_spill] sm:$0xff] %v7399_v32  ;;  %10573 = vst [vmem:[#allocation165_spill] sm:$0xff] %v7410_v40  ;;  %v10577_v48 = vsub.f32 1.0, %v10576_v47  ;;  %v10580_v16 = vsub.f32 1.0, %v10579_v62  ;;  %v7430_v40 = vmax.f32 %v10585_v17, 0.0  ;;  %v10590_v47 = vsub.f32 1.0, %v10400_v34 }
 0x340   :  { %v7403_v7 = vmax.f32 %v10569_v25, 0.0  ;;  %10575 = vst [vmem:[#allocation148_spill] sm:$0xff] %v7414_v31  ;;  %v7434_v31 = vmax.f32 %v10588_v59, 0.0  ;;  %v10592_v62 = vld [vmem:[#allocation173_spill] sm:$0xff]  ;;  %v10598_v43 = vsub.f32 1.0, %v10401_v57 }
 0x341   :  { %v7418_v51 = vmax.f32 %v10577_v48, 0.0  ;;  %v7422_v25 = vmax.f32 %v10580_v16, 0.0  ;;  %10586 = vst [vmem:[#allocation282_spill] sm:$0xff] %v7430_v40  ;;  %v7438_v48 = vmax.f32 %v10590_v47, 0.0  ;;  %v10593_v16 = vsub.f32 1.0, %v10592_v62  ;;  %v10600_v40 = vld [vmem:[#allocation174_spill] sm:$0xff] }
 0x342   :  { %10570 = vst [vmem:[#allocation147_spill] sm:$0xff] %v7403_v7  ;;  %v10582_v7 = vsub.f32 1.0, %v10399_v49  ;;  %10589 = vst [vmem:[#allocation168_spill] sm:$0xff] %v7434_v31  ;;  %v10596_v49 = vsub.f32 1.0, %v10595_v52  ;;  %v7450_v17 = vmax.f32 %v10598_v43, 0.0  ;;  %v10601_v53 = vsub.f32 1.0, %v10600_v40 }
 0x343   :  { %10578 = vst [vmem:[#allocation166_spill] sm:$0xff] %v7418_v51  ;;  %10581 = vst [vmem:[#allocation149_spill] sm:$0xff] %v7422_v25  ;;  %v7442_v51 = vmax.f32 %v10593_v16, 0.0  ;;  %v10603_v31 = vld [vmem:[#allocation41_spill] sm:$0xff]  ;;  %v10606_v62 = vsub.f32 1.0, %v10402_v22  ;;  %v10614_v40 = vsub.f32 1.0, %v10403_v1 }
 0x344   :  { %v7426_v32 = vmax.f32 %v10582_v7, 0.0  ;;  %10591 = vst [vmem:[#allocation283_spill] sm:$0xff] %v7438_v48  ;;  %v7446_v7 = vmax.f32 %v10596_v49, 0.0  ;;  %10599 = vst [vmem:[#allocation170_spill] sm:$0xff] %v7450_v17  ;;  %v7454_v59 = vmax.f32 %v10601_v53, 0.0  ;;  %v10604_v34 = vsub.f32 1.0, %v10603_v31 }
 0x345   :  { %10594 = vst [vmem:[#allocation169_spill] sm:$0xff] %v7442_v51  ;;  %v7462_v16 = vmax.f32 %v10606_v62, 0.0  ;;  %v10608_v51 = vld [vmem:[#allocation175_spill] sm:$0xff]  ;;  %v7474_v53 = vmax.f32 %v10614_v40, 0.0  ;;  %v10713_v25 = vld [vmem:[#allocation113_spill] sm:$0xff] }
 0x346   :  { %10583 = vst [vmem:[#allocation167_spill] sm:$0xff] %v7426_v32  ;;  %10597 = vst [vmem:[#allocation30_spill] sm:$0xff] %v7446_v7  ;;  %v7458_v47 = vmax.f32 %v10604_v34, 0.0  ;;  %v10609_v52 = vsub.f32 1.0, %v10608_v51  ;;  %v10611_v7 = vld [vmem:[#allocation42_spill] sm:$0xff]  ;;  %v10622_v51 = vsub.f32 1.0, %v10404_v5 }
 0x347   :  { %10602 = vst [vmem:[#allocation33_spill] sm:$0xff] %v7454_v59  ;;  %10607 = vst [vmem:[#allocation34_spill] sm:$0xff] %v7462_v16  ;;  %v10612_v57 = vsub.f32 1.0, %v10611_v7  ;;  %v10616_v59 = vld [vmem:[#allocation176_spill] sm:$0xff] }
 0x348   :  { %10605 = vst [vmem:[#allocation171_spill] sm:$0xff] %v7458_v47  ;;  %v7466_v49 = vmax.f32 %v10609_v52, 0.0  ;;  %10615 = vst [vmem:[#allocation173_spill] sm:$0xff] %v7474_v53  ;;  %v10617_v31 = vsub.f32 1.0, %v10616_v59  ;;  %v10619_v47 = vld [vmem:[#allocation45_spill] sm:$0xff]  ;;  %v7486_v52 = vmax.f32 %v10622_v51, 0.0 }
 0x349   :  { %v7470_v43 = vmax.f32 %v10612_v57, 0.0  ;;  %v10620_v22 = vsub.f32 1.0, %v10619_v47  ;;  %v10630_v59 = vsub.f32 1.0, %v10405_v11  ;;  %v10703_v53 = vld [vmem:[#allocation66_spill] sm:$0xff] }
 0x34a   :  { %10610 = vst [vmem:[#allocation172_spill] sm:$0xff] %v7466_v49  ;;  %v7478_v34 = vmax.f32 %v10617_v31, 0.0  ;;  %10623 = vst [vmem:[#allocation41_spill] sm:$0xff] %v7486_v52  ;;  %v10624_v49 = vld [vmem:[#allocation177_spill] sm:$0xff]  ;;  %v10702_v52 = vld [vmem:[#allocation82_spill] sm:$0xff] }
 0x34b   :  { %10613 = vst [vmem:[#allocation37_spill] sm:$0xff] %v7470_v43  ;;  %v7482_v62 = vmax.f32 %v10620_v22, 0.0  ;;  %v10625_v7 = vsub.f32 1.0, %v10624_v49  ;;  %v10627_v43 = vld [vmem:[#allocation46_spill] sm:$0xff]  ;;  %v7498_v31 = vmax.f32 %v10630_v59, 0.0  ;;  %v10638_v49 = vsub.f32 1.0, %v10406_v2 }
 0x34c   :  { %10618 = vst [vmem:[#allocation38_spill] sm:$0xff] %v7478_v34  ;;  %v10628_v1 = vsub.f32 1.0, %v10627_v43  ;;  %v10632_v34 = vld [vmem:[#allocation178_spill] sm:$0xff]  ;;  %v10651_v2 = vsub.f32 1.0, %v7036_v60 }
 0x34d   :  { %10621 = vst [vmem:[#allocation174_spill] sm:$0xff] %v7482_v62  ;;  %v7490_v57 = vmax.f32 %v10625_v7, 0.0  ;;  %10631 = vst [vmem:[#allocation176_spill] sm:$0xff] %v7498_v31  ;;  %v10633_v47 = vsub.f32 1.0, %v10632_v34  ;;  %v10635_v62 = vld [vmem:[#allocation49_spill] sm:$0xff]  ;;  %v7510_v7 = vmax.f32 %v10638_v49, 0.0 }
 0x34e   :  { %v7494_v40 = vmax.f32 %v10628_v1, 0.0  ;;  %v10636_v5 = vsub.f32 1.0, %v10635_v62  ;;  %v10646_v34 = vsub.f32 1.0, %v10407_v45  ;;  %v7530_v49 = vmax.f32 %v10651_v2, 0.0  ;;  %v10700_v31 = vld [vmem:[#allocation10_spill] sm:$0xff] }
 0x34f   :  { %10626 = vst [vmem:[#allocation175_spill] sm:$0xff] %v7490_v57  ;;  %v7502_v22 = vmax.f32 %v10633_v47, 0.0  ;;  %10639 = vst [vmem:[#allocation46_spill] sm:$0xff] %v7510_v7  ;;  %v10640_v57 = vld [vmem:[#allocation179_spill] sm:$0xff]  ;;  %v10659_v45 = vsub.f32 1.0, %v7041_v23 }
 0x350   :  { %10629 = vst [vmem:[#allocation42_spill] sm:$0xff] %v7494_v40  ;;  %v7506_v51 = vmax.f32 %v10636_v5, 0.0  ;;  %v10641_v43 = vsub.f32 1.0, %v10640_v57  ;;  %v10643_v40 = vld [vmem:[#allocation50_spill] sm:$0xff]  ;;  %v7522_v47 = vmax.f32 %v10646_v34, 0.0  ;;  %v10653_v7 = vld [vmem:[#allocation247_spill] sm:$0xff] }
 0x351   :  { %10634 = vst [vmem:[#allocation45_spill] sm:$0xff] %v7502_v22  ;;  %v10644_v11 = vsub.f32 1.0, %v10643_v40  ;;  %v10648_v22 = vld [vmem:[#allocation180_spill] sm:$0xff]  ;;  %v10654_v57 = vsub.f32 1.0, %v10653_v7  ;;  %v7542_v34 = vmax.f32 %v10659_v45, 0.0  ;;  %v10667_v7 = vsub.f32 1.0, %v7050_v24 }
 0x352   :  { %10637 = vst [vmem:[#allocation177_spill] sm:$0xff] %v7506_v51  ;;  %v7514_v1 = vmax.f32 %v10641_v43, 0.0  ;;  %10647 = vst [vmem:[#allocation179_spill] sm:$0xff] %v7522_v47  ;;  %v10649_v62 = vsub.f32 1.0, %v10648_v22 }
 0x353   :  { %v7518_v59 = vmax.f32 %v10644_v11, 0.0  ;;  %10652 = vst [vmem:[#allocation180_spill] sm:$0xff] %v7530_v49  ;;  %v7534_v43 = vmax.f32 %v10654_v57, 0.0  ;;  %10660 = vst [vmem:[#allocation284_spill] sm:$0xff] %v7542_v34  ;;  %v7554_v57 = vmax.f32 %v10667_v7, 0.0  ;;  %v10678_v34 = vld [vmem:[#allocation184_spill] sm:$0xff] }
 0x354   :  { %10642 = vst [vmem:[#allocation178_spill] sm:$0xff] %v7514_v1  ;;  %v7526_v5 = vmax.f32 %v10649_v62, 0.0  ;;  %v10656_v1 = vld [vmem:[#allocation181_spill] sm:$0xff]  ;;  %v10679_v24 = vsub.f32 1.0, %v10678_v34  ;;  %v10691_v49 = vld [vmem:[#allocation63_spill] sm:$0xff] }
 0x355   :  { %10645 = vst [vmem:[#allocation49_spill] sm:$0xff] %v7518_v59  ;;  %10655 = vst [vmem:[#allocation247_spill] sm:$0xff] %v7534_v43  ;;  %v10657_v40 = vsub.f32 1.0, %v10656_v1  ;;  %v10661_v59 = vld [vmem:[#allocation248_spill] sm:$0xff]  ;;  %v10669_v1 = vsub.f32 1.0, %v10410_v8  ;;  %v10671_v43 = vld [vmem:[#allocation183_spill] sm:$0xff] }
 0x356   :  { %10650 = vst [vmem:[#allocation50_spill] sm:$0xff] %v7526_v5  ;;  %v10662_v22 = vsub.f32 1.0, %v10661_v59  ;;  %v10664_v5 = vld [vmem:[#allocation182_spill] sm:$0xff]  ;;  %10668 = vst [vmem:[#allocation285_spill] sm:$0xff] %v7554_v57  ;;  %v10672_v23 = vsub.f32 1.0, %v10671_v43  ;;  %v10674_v59 = vsub.f32 1.0, %v7055_v13 }
 0x357   :  { %v7538_v11 = vmax.f32 %v10657_v40, 0.0  ;;  %v10665_v60 = vsub.f32 1.0, %v10664_v5  ;;  %v7558_v40 = vmax.f32 %v10669_v1, 0.0  ;;  %v10676_v5 = vsub.f32 1.0, %v10411_v30  ;;  %v10683_v57 = vld [vmem:[#allocation251_spill] sm:$0xff]  ;;  %v10692_v34 = vld [vmem:[#allocation5_spill] sm:$0xff] }
 0x358   :  { %v7546_v62 = vmax.f32 %v10662_v22, 0.0  ;;  %v7562_v45 = vmax.f32 %v10672_v23, 0.0  ;;  %v7566_v22 = vmax.f32 %v10674_v59, 0.0  ;;  %v7574_v7 = vmax.f32 %v10679_v24, 0.0 }
 0x359   :  { %10658 = vst [vmem:[#allocation181_spill] sm:$0xff] %v7538_v11  ;;  %v7550_v2 = vmax.f32 %v10665_v60, 0.0  ;;  %10670 = vst [vmem:[#allocation286_spill] sm:$0xff] %v7558_v40  ;;  %v7570_v60 = vmax.f32 %v10676_v5, 0.0  ;;  %v10681_v8 = vsub.f32 1.0, %v7060_v58  ;;  %v10684_v43 = vsub.f32 1.0, %v10683_v57 }
 0x35a   :  { %10663 = vst [vmem:[#allocation248_spill] sm:$0xff] %v7546_v62  ;;  %10673 = vst [vmem:[#allocation183_spill] sm:$0xff] %v7562_v45  ;;  %v10686_v62 = vld [vmem:[#allocation185_spill] sm:$0xff]  ;;  %v10689_v30 = vsub.f32 1.0, %v7069_v44  ;;  %v10693_v24 = vsub.f32 %v10691_v49, %v10692_v34  ;;  %v10694_v58 = vld [vmem:[#allocation7_spill] sm:$0xff]  ;;  %v10701_v34 = vsub.f32 %v10691_v49, %v10700_v31 }
 0x35b   :  { %10666 = vst [vmem:[#allocation182_spill] sm:$0xff] %v7550_v2  ;;  %10675 = vst [vmem:[#allocation287_spill] sm:$0xff] %v7566_v22  ;;  %v7578_v1 = vmax.f32 %v10681_v8, 0.0  ;;  %v7582_v23 = vmax.f32 %v10684_v43, 0.0  ;;  %v10687_v13 = vsub.f32 1.0, %v10686_v62  ;;  %v10695_v8 = vsub.f32 %v10691_v49, %v10694_v58  ;;  %v10696_v57 = vld [vmem:[#allocation8_spill] sm:$0xff] }
 0x35c   :  { %10677 = vst [vmem:[#allocation288_spill] sm:$0xff] %v7570_v60  ;;  %10680 = vst [vmem:[#allocation184_spill] sm:$0xff] %v7574_v7  ;;  %v7590_v5 = vmax.f32 %v10689_v30, 0.0  ;;  %v7595_v47 = vand.u32 2147483647, %v10693_v24  ;;  %v10697_v43 = vsub.f32 %v10691_v49, %v10696_v57  ;;  %v7619_v58 = vmul.f32 %v10703_v53, %v10702_v52  ;;  %v10715_v53 = vld [vmem:[#allocation15_spill] sm:$0xff] }
 0x35d   :  { %10682 = vst [vmem:[#allocation289_spill] sm:$0xff] %v7578_v1  ;;  %10685 = vst [vmem:[#allocation251_spill] sm:$0xff] %v7582_v23  ;;  %v7586_v59 = vmax.f32 %v10687_v13, 0.0  ;;  %v7600_v51 = vand.u32 2147483647, %v10695_v8  ;;  %v10698_v13 = vld [vmem:[#allocation9_spill] sm:$0xff]  ;;  %v10716_v52 = vsub.f32 %v10691_v49, %v10715_v53 }
 0x35e   :  { %10690 = vst [vmem:[#allocation290_spill] sm:$0xff] %v7590_v5  ;;  %v7605_v62 = vand.u32 2147483647, %v10697_v43  ;;  %v10699_v44 = vsub.f32 %v10691_v49, %v10698_v13  ;;  %v7615_v24 = vand.u32 2147483647, %v10701_v34  ;;  %10704 = vst [vmem:[#allocation63_spill] sm:$0xff] %v7619_v58 }
 0x35f   :  { %10688 = vst [vmem:[#allocation185_spill] sm:$0xff] %v7586_v59  ;;  %v10705_v8 = vld [vmem:[#allocation12_spill] sm:$0xff]  ;;  %v10707_v43 = vld [vmem:[#allocation13_spill] sm:$0xff]  ;;  %v10712_v34 = vld [vmem:[#allocation83_spill] sm:$0xff] }
 0x360   :  { %v7610_v30 = vand.u32 2147483647, %v10699_v44  ;;  %v10706_v16 = vsub.f32 %v10691_v49, %v10705_v8  ;;  %v10708_v17 = vsub.f32 %v10691_v49, %v10707_v43  ;;  %v10709_v44 = vld [vmem:[#allocation14_spill] sm:$0xff]  ;;  %v7638_v32 = vmul.f32 %v10713_v25, %v10712_v34  ;;  %v10833_v7 = vld [vmem:[#allocation111_spill] sm:$0xff]  ;;  %v10835_v45 = vld [vmem:[#allocation121_spill] sm:$0xff] }
 0x361   :  { %v10710_v48 = vsub.f32 %v10691_v49, %v10709_v44  ;;  %v7643_v8 = vand.u32 2147483647, %v10716_v52  ;;  %v10725_v1 = vld [vmem:[#allocation114_spill] sm:$0xff]  ;;  %v10730_v52 = vld [vmem:[#allocation19_spill] sm:$0xff]  ;;  %v10836_v2 = vld [vmem:[#allocation252_spill] sm:$0xff] }
 0x362   :  { %v7624_v57 = vand.u32 2147483647, %v10706_v16  ;;  %v7629_v13 = vand.u32 2147483647, %v10708_v17  ;;  %10714 = vst [vmem:[#allocation7_spill] sm:$0xff] %v7638_v32  ;;  %v10718_v16 = vld [vmem:[#allocation16_spill] sm:$0xff]  ;;  %v10731_v60 = vsub.f32 %v10691_v49, %v10730_v52 }
 0x363   :  { %v7634_v31 = vand.u32 2147483647, %v10710_v48  ;;  %10717 = vst [vmem:[#allocation8_spill] sm:$0xff] %v7643_v8  ;;  %v10719_v5 = vsub.f32 %v10691_v49, %v10718_v16  ;;  %v10721_v17 = vld [vmem:[#allocation17_spill] sm:$0xff]  ;;  %v10724_v48 = vld [vmem:[#allocation84_spill] sm:$0xff]  ;;  %v10727_v25 = vld [vmem:[#allocation18_spill] sm:$0xff] }
 0x364   :  { %v10722_v23 = vsub.f32 %v10691_v49, %v10721_v17  ;;  %v7657_v22 = vmul.f32 %v10725_v1, %v10724_v48  ;;  %v10728_v34 = vsub.f32 %v10691_v49, %v10727_v25  ;;  %v7667_v16 = vand.u32 2147483647, %v10731_v60  ;;  %v10739_v1 = vld [vmem:[#allocation21_spill] sm:$0xff]  ;;  %v10745_v60 = vld [vmem:[#allocation24_spill] sm:$0xff]  ;;  %v10843_v8 = vld [vmem:[#allocation259_spill] sm:$0xff] }
 0x365   :  { %10711 = vst [vmem:[#allocation5_spill] sm:$0xff] %v7634_v31  ;;  %v7648_v43 = vand.u32 2147483647, %v10719_v5  ;;  %v10733_v5 = vld [vmem:[#allocation20_spill] sm:$0xff]  ;;  %v10740_v48 = vsub.f32 %v10691_v49, %v10739_v1  ;;  %v10746_v10 = vsub.f32 %v10691_v49, %v10745_v60  ;;  %v10761_v32 = vld [vmem:[#allocation117_spill] sm:$0xff]  ;;  %v10842_v31 = vld [vmem:[#allocation258_spill] sm:$0xff] }
 0x366   :  { %v7653_v44 = vand.u32 2147483647, %v10722_v23  ;;  %10726 = vst [vmem:[#allocation82_spill] sm:$0xff] %v7657_v22  ;;  %v7662_v53 = vand.u32 2147483647, %v10728_v34  ;;  %10732 = vst [vmem:[#allocation12_spill] sm:$0xff] %v7667_v16  ;;  %v10734_v40 = vsub.f32 %v10691_v49, %v10733_v5 }
 0x367   :  { %10720 = vst [vmem:[#allocation9_spill] sm:$0xff] %v7648_v43  ;;  %v10736_v23 = vld [vmem:[#allocation85_spill] sm:$0xff]  ;;  %v7681_v25 = vand.u32 2147483647, %v10740_v48  ;;  %v10742_v34 = vld [vmem:[#allocation23_spill] sm:$0xff]  ;;  %v10754_v48 = vld [vmem:[#allocation28_spill] sm:$0xff] }
 0x368   :  { %10723 = vst [vmem:[#allocation10_spill] sm:$0xff] %v7653_v44  ;;  %10729 = vst [vmem:[#allocation66_spill] sm:$0xff] %v7662_v53  ;;  %v7672_v17 = vand.u32 2147483647, %v10734_v40  ;;  %v7676_v18 = vmul.f32 %v10737_v3, %v10736_v23  ;;  %v10743_v22 = vsub.f32 %v10691_v49, %v10742_v34  ;;  %v7691_v5 = vand.u32 2147483647, %v10746_v10 }
 0x369   :  { %10741 = vst [vmem:[#allocation83_spill] sm:$0xff] %v7681_v25  ;;  %v10748_v40 = vld [vmem:[#allocation86_spill] sm:$0xff]  ;;  %v10751_v3 = vld [vmem:[#allocation27_spill] sm:$0xff]  ;;  %v10837_v11 = vld [vmem:[#allocation253_spill] sm:$0xff] }
 0x36a   :  { %10735 = vst [vmem:[#allocation13_spill] sm:$0xff] %v7672_v17  ;;  %10738 = vst [vmem:[#allocation14_spill] sm:$0xff] %v7676_v18  ;;  %v7686_v52 = vand.u32 2147483647, %v10743_v22  ;;  %v7695_v12 = vmul.f32 %v10749_v61, %v10748_v40  ;;  %v10752_v23 = vsub.f32 %v10691_v49, %v10751_v3  ;;  %v10755_v18 = vsub.f32 %v10691_v49, %v10754_v48  ;;  %v10757_v22 = vld [vmem:[#allocation31_spill] sm:$0xff]  ;;  %v10763_v61 = vld [vmem:[#allocation32_spill] sm:$0xff] }
 0x36b   :  { %10747 = vst [vmem:[#allocation15_spill] sm:$0xff] %v7691_v5  ;;  %v10758_v54 = vsub.f32 %v10691_v49, %v10757_v22  ;;  %v10760_v10 = vld [vmem:[#allocation87_spill] sm:$0xff]  ;;  %v10764_v40 = vsub.f32 %v10691_v49, %v10763_v61  ;;  %v10844_v43 = vld [vmem:[#allocation260_spill] sm:$0xff]  ;;  %v10845_v44 = vld [vmem:[#allocation261_spill] sm:$0xff] }
 0x36c   :  { %10744 = vst [vmem:[#allocation113_spill] sm:$0xff] %v7686_v52  ;;  %10750 = vst [vmem:[#allocation16_spill] sm:$0xff] %v7695_v12  ;;  %v7700_v1 = vand.u32 2147483647, %v10752_v23  ;;  %v7705_v34 = vand.u32 2147483647, %v10755_v18  ;;  %v7714_v58 = vmul.f32 %v10761_v32, %v10760_v10 }
 0x36d   :  { %v7710_v60 = vand.u32 2147483647, %v10758_v54  ;;  %v7719_v3 = vand.u32 2147483647, %v10764_v40  ;;  %v10766_v23 = vld [vmem:[#allocation35_spill] sm:$0xff]  ;;  %v10769_v18 = vld [vmem:[#allocation36_spill] sm:$0xff] }
 0x36e   :  { %10753 = vst [vmem:[#allocation17_spill] sm:$0xff] %v7700_v1  ;;  %10756 = vst [vmem:[#allocation84_spill] sm:$0xff] %v7705_v34  ;;  %v10767_v12 = vsub.f32 %v10691_v49, %v10766_v23  ;;  %v10770_v33 = vsub.f32 %v10691_v49, %v10769_v18  ;;  %v10772_v54 = vld [vmem:[#allocation88_spill] sm:$0xff]  ;;  %v10775_v32 = vld [vmem:[#allocation39_spill] sm:$0xff] }
 0x36f   :  { %10759 = vst [vmem:[#allocation114_spill] sm:$0xff] %v7710_v60  ;;  %10762 = vst [vmem:[#allocation18_spill] sm:$0xff] %v7714_v58  ;;  %v7733_v6 = vmul.f32 %v10773_v46, %v10772_v54  ;;  %v10776_v10 = vsub.f32 %v10691_v49, %v10775_v32  ;;  %v10778_v40 = vld [vmem:[#allocation40_spill] sm:$0xff]  ;;  %v10846_v53 = vld [vmem:[#allocation262_spill] sm:$0xff] }
 0x370   :  { %10765 = vst [vmem:[#allocation19_spill] sm:$0xff] %v7719_v3  ;;  %v7724_v48 = vand.u32 2147483647, %v10767_v12  ;;  %v7729_v22 = vand.u32 2147483647, %v10770_v33  ;;  %v10779_v58 = vsub.f32 %v10691_v49, %v10778_v40  ;;  %v10781_v12 = vld [vmem:[#allocation43_spill] sm:$0xff] }
 0x371   :  { %10774 = vst [vmem:[#allocation115_spill] sm:$0xff] %v7733_v6  ;;  %v7738_v61 = vand.u32 2147483647, %v10776_v10  ;;  %v10782_v26 = vsub.f32 %v10691_v49, %v10781_v12  ;;  %v10784_v33 = vld [vmem:[#allocation89_spill] sm:$0xff]  ;;  %v10787_v46 = vld [vmem:[#allocation44_spill] sm:$0xff]  ;;  %v10790_v10 = vld [vmem:[#allocation47_spill] sm:$0xff] }
 0x372   :  { %10768 = vst [vmem:[#allocation20_spill] sm:$0xff] %v7724_v48  ;;  %10771 = vst [vmem:[#allocation85_spill] sm:$0xff] %v7729_v22  ;;  %v7743_v23 = vand.u32 2147483647, %v10779_v58  ;;  %v7752_v37 = vmul.f32 %v10785_v56, %v10784_v33  ;;  %v10788_v54 = vsub.f32 %v10691_v49, %v10787_v46  ;;  %v10791_v6 = vsub.f32 %v10691_v49, %v10790_v10  ;;  %v10793_v58 = vld [vmem:[#allocation48_spill] sm:$0xff]  ;;  %v10799_v56 = vld [vmem:[#allocation51_spill] sm:$0xff] }
 0x373   :  { %10777 = vst [vmem:[#allocation21_spill] sm:$0xff] %v7738_v61  ;;  %v7748_v18 = vand.u32 2147483647, %v10782_v26  ;;  %v10794_v21 = vsub.f32 %v10691_v49, %v10793_v58  ;;  %v10796_v26 = vld [vmem:[#allocation90_spill] sm:$0xff]  ;;  %v10800_v33 = vsub.f32 %v10691_v49, %v10799_v56  ;;  %v10847_v16 = vld [vmem:[#allocation263_spill] sm:$0xff]  ;;  %v10848_v17 = vld [vmem:[#allocation264_spill] sm:$0xff] }
 0x374   :  { %10780 = vst [vmem:[#allocation23_spill] sm:$0xff] %v7743_v23  ;;  %10786 = vst [vmem:[#allocation86_spill] sm:$0xff] %v7752_v37  ;;  %v7757_v32 = vand.u32 2147483647, %v10788_v54  ;;  %v7762_v40 = vand.u32 2147483647, %v10791_v6  ;;  %v7771_v35 = vmul.f32 %v10797_v15, %v10796_v26 }
 0x375   :  { %10783 = vst [vmem:[#allocation24_spill] sm:$0xff] %v7748_v18  ;;  %v7767_v12 = vand.u32 2147483647, %v10794_v21  ;;  %v7776_v46 = vand.u32 2147483647, %v10800_v33  ;;  %v10802_v54 = vld [vmem:[#allocation52_spill] sm:$0xff] }
 0x376   :  { %10789 = vst [vmem:[#allocation116_spill] sm:$0xff] %v7757_v32  ;;  %10792 = vst [vmem:[#allocation27_spill] sm:$0xff] %v7762_v40  ;;  %v10803_v37 = vsub.f32 %v10691_v49, %v10802_v54  ;;  %v10805_v6 = vld [vmem:[#allocation58_spill] sm:$0xff]  ;;  %v10808_v21 = vld [vmem:[#allocation91_spill] sm:$0xff] }
 0x377   :  { %10795 = vst [vmem:[#allocation28_spill] sm:$0xff] %v7767_v12  ;;  %10798 = vst [vmem:[#allocation31_spill] sm:$0xff] %v7771_v35  ;;  %v10806_v27 = vsub.f32 %v10691_v49, %v10805_v6  ;;  %v7790_v29 = vmul.f32 %v10809_v63, %v10808_v21  ;;  %v10811_v15 = vld [vmem:[#allocation60_spill] sm:$0xff]  ;;  %v10814_v33 = vld [vmem:[#allocation67_spill] sm:$0xff] }
 0x378   :  { %10801 = vst [vmem:[#allocation87_spill] sm:$0xff] %v7776_v46  ;;  %v7781_v10 = vand.u32 2147483647, %v10803_v37  ;;  %v10812_v26 = vsub.f32 %v10691_v49, %v10811_v15  ;;  %v10815_v35 = vsub.f32 %v10691_v49, %v10814_v33  ;;  %v10817_v37 = vld [vmem:[#allocation71_spill] sm:$0xff]  ;;  %v10823_v63 = vld [vmem:[#allocation74_spill] sm:$0xff]  ;;  %v10849_v25 = vld [vmem:[#allocation265_spill] sm:$0xff] }
 0x379   :  { %v7786_v58 = vand.u32 2147483647, %v10806_v27  ;;  %10810 = vst [vmem:[#allocation35_spill] sm:$0xff] %v7790_v29  ;;  %v10818_v28 = vsub.f32 %v10691_v49, %v10817_v37  ;;  %v10820_v27 = vld [vmem:[#allocation92_spill] sm:$0xff]  ;;  %v10824_v21 = vsub.f32 %v10691_v49, %v10823_v63  ;;  %v10832_v63 = vld [vmem:[#allocation110_spill] sm:$0xff]  ;;  %v10869_v40 = vld [vmem:[#allocation189_spill] sm:$0xff] }
 0x37a   :  { %10804 = vst [vmem:[#allocation117_spill] sm:$0xff] %v7781_v10  ;;  %v7795_v56 = vand.u32 2147483647, %v10812_v26  ;;  %v7800_v54 = vand.u32 2147483647, %v10815_v35  ;;  %v7809_v14 = vmul.f32 %v10821_v50, %v10820_v27  ;;  %v10826_v26 = vld [vmem:[#allocation75_spill] sm:$0xff] }
 0x37b   :  { %10807 = vst [vmem:[#allocation32_spill] sm:$0xff] %v7786_v58  ;;  %v7805_v6 = vand.u32 2147483647, %v10818_v28  ;;  %v7814_v15 = vand.u32 2147483647, %v10824_v21  ;;  %v10827_v29 = vsub.f32 %v10691_v49, %v10826_v26  ;;  %v10829_v35 = vld [vmem:[#allocation107_spill] sm:$0xff] }
 0x37c   :  { %10813 = vst [vmem:[#allocation36_spill] sm:$0xff] %v7795_v56  ;;  %10816 = vst [vmem:[#allocation88_spill] sm:$0xff] %v7800_v54  ;;  %v10830_v28 = vld [vmem:[#allocation108_spill] sm:$0xff]  ;;  %v10831_v50 = vld [vmem:[#allocation109_spill] sm:$0xff]  ;;  %v10866_v27 = vsub.f32 1.0, %v10829_v35  ;;  %v10870_v59 = vsub.f32 1.0, %v10869_v40 }
 0x37d   :  { %10819 = vst [vmem:[#allocation118_spill] sm:$0xff] %v7805_v6  ;;  %10822 = vst [vmem:[#allocation39_spill] sm:$0xff] %v7809_v14  ;;  %v7819_v33 = vand.u32 2147483647, %v10827_v29  ;;  %v10834_v26 = vld [vmem:[#allocation112_spill] sm:$0xff]  ;;  %v10850_v52 = vld [vmem:[#allocation266_spill] sm:$0xff] }
 0x37e   :  { %10825 = vst [vmem:[#allocation40_spill] sm:$0xff] %v7814_v15  ;;  %v2515_v32 = vmax.f32 %v10866_v27, 0.0  ;;  %v10867_v14 = vld [vmem:[#allocation188_spill] sm:$0xff]  ;;  %v2536_v54 = vmax.f32 %v10870_v59, 0.0  ;;  %v10871_v49 = vld [vmem:[#allocation190_spill] sm:$0xff]  ;;  %v10875_v37 = vsub.f32 1.0, %v7595_v47 }
 0x37f   :  { %10828 = vst [vmem:[#allocation43_spill] sm:$0xff] %v7819_v33  ;;  %v10868_v56 = vsub.f32 1.0, %v10867_v14  ;;  %v10872_v58 = vsub.f32 1.0, %v10871_v49  ;;  %v10873_v18 = vld [vmem:[#allocation68_spill] sm:$0xff]  ;;  %v10876_v20 = vsub.f32 1.0, %v10830_v28  ;;  %v10877_v35 = vld [vmem:[#allocation191_spill] sm:$0xff] }
 0x380   :  { %v10874_v19 = vsub.f32 1.0, %v10873_v18  ;;  %v2517_v41 = vmax.f32 %v10875_v37, 0.0  ;;  %v10878_v27 = vsub.f32 1.0, %v10877_v35  ;;  %v10879_v14 = vld [vmem:[#allocation55_spill] sm:$0xff]  ;;  %v10881_v59 = vsub.f32 1.0, %v7600_v51  ;;  %v10883_v18 = vld [vmem:[#allocation186_spill] sm:$0xff] }
 0x381   :  { %v2532_v21 = vmax.f32 %v10868_v56, 0.0  ;;  %v2540_v29 = vmax.f32 %v10872_v58, 0.0  ;;  %v2519_v61 = vmax.f32 %v10876_v20, 0.0  ;;  %v10880_v56 = vsub.f32 1.0, %v10879_v14  ;;  %v10887_v35 = vld [vmem:[#allocation187_spill] sm:$0xff]  ;;  %v10921_v15 = vld [vmem:[#allocation66_spill] sm:$0xff] }
 0x382   :  { %v2516_v23 = vmax.f32 %v10874_v19, 0.0  ;;  %v2544_v22 = vmax.f32 %v10878_v27, 0.0  ;;  %v2521_v40 = vmax.f32 %v10881_v59, 0.0  ;;  %v10882_v58 = vsub.f32 1.0, %v10831_v50  ;;  %v10919_v10 = vld [vmem:[#allocation215_spill] sm:$0xff]  ;;  %v10948_v5 = vld [vmem:[#allocation81_spill] sm:$0xff] }
 0x383   :  { %v2520_v48 = vmax.f32 %v10880_v56, 0.0  ;;  %v10884_v19 = vsub.f32 1.0, %v10883_v18  ;;  %v10885_v47 = vsub.f32 1.0, %v7605_v62  ;;  %v10886_v20 = vsub.f32 1.0, %v10832_v63 }
 0x384   :  { %v2523_v49 = vmax.f32 %v10882_v58, 0.0  ;;  %v10888_v27 = vsub.f32 1.0, %v10887_v35  ;;  %v10889_v14 = vsub.f32 1.0, %v7610_v30  ;;  %v10890_v51 = vsub.f32 1.0, %v10833_v7 }
 0x385   :  { %v2524_v3 = vmax.f32 %v10884_v19, 0.0  ;;  %v2525_v37 = vmax.f32 %v10885_v47, 0.0  ;;  %v2527_v28 = vmax.f32 %v10886_v20, 0.0  ;;  %v7932_v50 = vmul.f32 %v2532_v21, %v7199_v4 }
 0x386   :  { %v2528_v33 = vmax.f32 %v10888_v27, 0.0  ;;  %v2529_v56 = vmax.f32 %v10889_v14, 0.0  ;;  %v7929_v59 = vmax.f32 %v10890_v51, 0.0  ;;  %v7935_v58 = vmul.f32 %v2536_v54, %v7211_v9  ;;  %v10902_v14 = vld [vmem:[#allocation8_spill] sm:$0xff] }
 0x387   :  { %v7938_v62 = vmul.f32 %v2540_v29, %v7223_v42  ;;  %v10891_v63 = vsub.f32 1.0, %v7615_v24  ;;  %v10892_v30 = vsub.f32 1.0, %v10834_v26  ;;  %v10893_v7 = vsub.f32 1.0, %v7624_v57  ;;  %v10897_v26 = vld [vmem:[#allocation5_spill] sm:$0xff] }
 0x388   :  { %v7951_v4 = vmul.f32 %v2544_v22, %v7235_v39  ;;  %v10894_v9 = vsub.f32 1.0, %v10835_v45  ;;  %v10895_v42 = vsub.f32 1.0, %v7629_v13  ;;  %v10896_v24 = vsub.f32 1.0, %v10836_v2  ;;  %v10900_v22 = vld [vmem:[#allocation192_spill] sm:$0xff] }
 0x389   :  { %v7942_v18 = vmax.f32 %v10891_v63, 0.0  ;;  %v2535_v19 = vmax.f32 %v10892_v30, 0.0  ;;  %v7948_v47 = vmax.f32 %v10893_v7, 0.0  ;;  %v10898_v20 = vsub.f32 1.0, %v10897_v26  ;;  %v10905_v30 = vld [vmem:[#allocation193_spill] sm:$0xff] }
 0x38a   :  { %v7955_v54 = vmax.f32 %v10894_v9, 0.0  ;;  %v7959_v21 = vmax.f32 %v10895_v42, 0.0  ;;  %v7963_v29 = vmax.f32 %v10896_v24, 0.0  ;;  %v10899_v35 = vsub.f32 1.0, %v10837_v11  ;;  %v10907_v42 = vld [vmem:[#allocation9_spill] sm:$0xff] }
 0x38b   :  { %v7967_v57 = vmax.f32 %v10898_v20, 0.0  ;;  %v10901_v45 = vsub.f32 1.0, %v10900_v22  ;;  %v10903_v13 = vsub.f32 1.0, %v10902_v14  ;;  %v10904_v2 = vsub.f32 1.0, %v10838_v55  ;;  %v10913_v14 = vld [vmem:[#allocation10_spill] sm:$0xff] }
 0x38c   :  { %v7971_v39 = vmax.f32 %v10899_v35, 0.0  ;;  %v10906_v7 = vsub.f32 1.0, %v10905_v30  ;;  %v10908_v11 = vsub.f32 1.0, %v10907_v42  ;;  %v10909_v26 = vsub.f32 1.0, %v10839_v38  ;;  %v10910_v35 = vld [vmem:[#allocation194_spill] sm:$0xff] }
 0x38d   :  { %v7975_v27 = vmax.f32 %v10901_v45, 0.0  ;;  %v7979_v51 = vmax.f32 %v10903_v13, 0.0  ;;  %v7983_v63 = vmax.f32 %v10904_v2, 0.0  ;;  %v10911_v22 = vsub.f32 1.0, %v10910_v35 }
 0x38e   :  { %v7987_v9 = vmax.f32 %v10906_v7, 0.0  ;;  %v7991_v24 = vmax.f32 %v10908_v11, 0.0  ;;  %v7995_v20 = vmax.f32 %v10909_v26, 0.0  ;;  %v10914_v55 = vsub.f32 1.0, %v10913_v14  ;;  %v10916_v7 = vld [vmem:[#allocation195_spill] sm:$0xff] }
 0x38f   :  { %v7999_v45 = vmax.f32 %v10911_v22, 0.0  ;;  %v10915_v2 = vsub.f32 1.0, %v10840_v36  ;;  %v10917_v42 = vsub.f32 1.0, %v10916_v7  ;;  %v10920_v38 = vsub.f32 1.0, %v10919_v10  ;;  %v10930_v7 = vld [vmem:[#allocation196_spill] sm:$0xff] }
 0x390   :  { %v8003_v13 = vmax.f32 %v10914_v55, 0.0  ;;  %v10922_v46 = vsub.f32 1.0, %v10921_v15  ;;  %v10924_v22 = vsub.f32 1.0, %v10841_v0  ;;  %v10926_v55 = vld [vmem:[#allocation216_spill] sm:$0xff]  ;;  %v10938_v0 = vld [vmem:[#allocation219_spill] sm:$0xff] }
 0x391   :  { %10912 = vst [vmem:[#allocation89_spill] sm:$0xff] %v7999_v45  ;;  %v8007_v30 = vmax.f32 %v10915_v2, 0.0  ;;  %v8011_v11 = vmax.f32 %v10917_v42, 0.0  ;;  %v2644_v26 = vmax.f32 %v10920_v38, 0.0  ;;  %v10927_v6 = vsub.f32 1.0, %v10926_v55  ;;  %v10928_v2 = vld [vmem:[#allocation217_spill] sm:$0xff] }
 0x392   :  { %v8017_v35 = vmax.f32 %v10922_v46, 0.0  ;;  %v8021_v14 = vmax.f32 %v10924_v22, 0.0  ;;  %v10929_v12 = vsub.f32 1.0, %v10928_v2  ;;  %v10931_v42 = vsub.f32 1.0, %v10930_v7  ;;  %v10933_v10 = vld [vmem:[#allocation12_spill] sm:$0xff]  ;;  %v10936_v46 = vld [vmem:[#allocation218_spill] sm:$0xff] }
 0x393   :  { %10918 = vst [vmem:[#allocation119_spill] sm:$0xff] %v8011_v11  ;;  %v2648_v36 = vmax.f32 %v10927_v6, 0.0  ;;  %v10934_v38 = vsub.f32 1.0, %v10933_v10  ;;  %v10937_v15 = vsub.f32 1.0, %v10936_v46  ;;  %v10939_v22 = vsub.f32 1.0, %v10938_v0  ;;  %v10942_v2 = vld [vmem:[#allocation197_spill] sm:$0xff] }
 0x394   :  { %10923 = vst [vmem:[#allocation44_spill] sm:$0xff] %v8017_v35  ;;  %10925 = vst [vmem:[#allocation47_spill] sm:$0xff] %v8021_v14  ;;  %v2652_v60 = vmax.f32 %v10929_v12, 0.0  ;;  %v8029_v34 = vmax.f32 %v10931_v42, 0.0  ;;  %v10940_v55 = vsub.f32 1.0, %v10842_v31  ;;  %v10943_v12 = vsub.f32 1.0, %v10942_v2 }
 0x395   :  { %v8033_v11 = vmax.f32 %v10934_v38, 0.0  ;;  %v2656_v45 = vmax.f32 %v10937_v15, 0.0  ;;  %v2660_v1 = vmax.f32 %v10939_v22, 0.0  ;;  %v10945_v7 = vld [vmem:[#allocation80_spill] sm:$0xff]  ;;  %v10947_v38 = vld [vmem:[#allocation62_spill] sm:$0xff]  ;;  %v2668_v46 = vmul.f32 %v2520_v48, %v10948_v5  ;;  %v10950_v35 = vld [vmem:[#allocation133_spill] sm:$0xff] }
 0x396   :  { %10932 = vst [vmem:[#allocation48_spill] sm:$0xff] %v8029_v34  ;;  %v8041_v6 = vmax.f32 %v10940_v55, 0.0  ;;  %v8045_v14 = vmax.f32 %v10943_v12, 0.0  ;;  %v2663_v42 = vmul.f32 %v2515_v32, %v10945_v7  ;;  %v10946_v34 = vld [vmem:[#allocation72_spill] sm:$0xff]  ;;  %v10949_v15 = vld [vmem:[#allocation102_spill] sm:$0xff]  ;;  %v10951_v22 = vld [vmem:[#allocation181_spill] sm:$0xff] }
 0x397   :  { %10935 = vst [vmem:[#allocation90_spill] sm:$0xff] %v8033_v11  ;;  %v2667_v10 = vmul.f32 %v2519_v61, %v10946_v34  ;;  %v2664_v11 = vmul.f32 %v2516_v23, %v10947_v38  ;;  %v8053_v0 = vmul.f32 %v10950_v35, %v10949_v15  ;;  %v8056_v31 = vmul.f32 %v2644_v26, %v10951_v22  ;;  %v10952_v55 = vld [vmem:[#allocation103_spill] sm:$0xff]  ;;  %v10954_v12 = vld [vmem:[#allocation182_spill] sm:$0xff]  ;;  %v10956_v32 = vld [vmem:[#allocation104_spill] sm:$0xff] }
 0x398   :  { %10941 = vst [vmem:[#allocation120_spill] sm:$0xff] %v8041_v6  ;;  %10944 = vst [vmem:[#allocation51_spill] sm:$0xff] %v8045_v14  ;;  %v10953_v6 = vld [vmem:[#allocation134_spill] sm:$0xff]  ;;  %v8063_v14 = vmul.f32 %v2648_v36, %v10954_v12  ;;  %v10957_v34 = vld [vmem:[#allocation135_spill] sm:$0xff] }
 0x399   :  { %v8060_v2 = vmul.f32 %v10953_v6, %v10952_v55  ;;  %v8067_v61 = vmul.f32 %v10957_v34, %v10956_v32  ;;  %v10959_v23 = vld [vmem:[#allocation183_spill] sm:$0xff]  ;;  %v10961_v48 = vld [vmem:[#allocation105_spill] sm:$0xff]  ;;  %v10962_v35 = vld [vmem:[#allocation136_spill] sm:$0xff] }
 0x39a   :  { %10955 = vst [vmem:[#allocation52_spill] sm:$0xff] %v8063_v14  ;;  %v8070_v5 = vmul.f32 %v2652_v60, %v10959_v23  ;;  %v8074_v7 = vmul.f32 %v10962_v35, %v10961_v48  ;;  %v10964_v26 = vld [vmem:[#allocation184_spill] sm:$0xff]  ;;  %v10966_v15 = vld [vmem:[#allocation106_spill] sm:$0xff]  ;;  %v10967_v6 = vld [vmem:[#allocation137_spill] sm:$0xff]  ;;  %v3846_v60 = vpack.c.bf16 %v2667_v10, %v2663_v42 }
 0x39b   :  { %10958 = vst [vmem:[#allocation58_spill] sm:$0xff] %v8067_v61  ;;  %v8077_v38 = vmul.f32 %v2656_v45, %v10964_v26  ;;  %v8081_v22 = vmul.f32 %v10967_v6, %v10966_v15  ;;  %v10969_v36 = vld [vmem:[#allocation185_spill] sm:$0xff]  ;;  %v10975_v35 = vld [vmem:[#allocation138_spill] sm:$0xff]  ;;  %v10982_v42 = vld [vmem:[#allocation220_spill] sm:$0xff] }
 0x39c   :  { %10960 = vst [vmem:[#allocation91_spill] sm:$0xff] %v8070_v5  ;;  %10963 = vst [vmem:[#allocation122_spill] sm:$0xff] %v8074_v7  ;;  %v8084_v55 = vmul.f32 %v2660_v1, %v10969_v36  ;;  %v10971_v12 = vld [vmem:[#allocation13_spill] sm:$0xff]  ;;  %v10976_v7 = vld [vmem:[#allocation139_spill] sm:$0xff]  ;;  %3847 = vmatprep.subr.bf16.mxu0 %v3846_v60  ;;  %v2677_v10 = vmul.f32 %v2529_v56, %v10982_v42  ;;  %v10987_v56 = vsub.f32 1.0, %v10843_v8 }
 0x39d   :  { %10965 = vst [vmem:[#allocation60_spill] sm:$0xff] %v8077_v38  ;;  %10968 = vst [vmem:[#allocation67_spill] sm:$0xff] %v8081_v22  ;;  %v10972_v32 = vsub.f32 1.0, %v10971_v12  ;;  %v10973_v23 = vld [vmem:[#allocation65_spill] sm:$0xff]  ;;  %v3848_v45 = vpack.c.bf16 %v10976_v7, %v10975_v35  ;;  %v10977_v26 = vld [vmem:[#allocation22_spill] sm:$0xff] }
 0x39e   :  { %10970 = vst [vmem:[#allocation71_spill] sm:$0xff] %v8084_v55  ;;  %v2665_v5 = vmul.f32 %v2517_v41, %v10973_v23  ;;  %v10974_v61 = vld [vmem:[#allocation73_spill] sm:$0xff]  ;;  %v2671_v38 = vmul.f32 %v2523_v49, %v10977_v26  ;;  %v10979_v6 = vld [vmem:[#allocation26_spill] sm:$0xff]  ;;  %v3920_v41 = vpack.c.bf16 %v2668_v46, %v2664_v11  ;;  %v10984_v23 = vld [vmem:[#allocation223_spill] sm:$0xff]  ;;  %v8111_v11 = vmax.f32 %v10987_v56, 0.0 }
 0x39f   :  { %v8088_v34 = vmax.f32 %v10972_v32, 0.0  ;;  %v2669_v48 = vmul.f32 %v2521_v40, %v10974_v61  ;;  %v10978_v14 = vld [vmem:[#allocation29_spill] sm:$0xff]  ;;  %v2673_v22 = vmul.f32 %v2525_v37, %v10979_v6  ;;  %3849 = vmatpush1.bf16.msra.mxu0 %v3848_v45  ;;  %v2683_v49 = vmul.f32 %v2535_v19, %v10984_v23  ;;  %v10988_v46 = vld [vmem:[#allocation198_spill] sm:$0xff]  ;;  %v10990_v19 = vld [vmem:[#allocation83_spill] sm:$0xff] }
 0x3a0   :  { %v2675_v15 = vmul.f32 %v2527_v28, %v10978_v14  ;;  %v10980_v1 = vld [vmem:[#allocation25_spill] sm:$0xff]  ;;  %v10985_v14 = vld [vmem:[#allocation222_spill] sm:$0xff]  ;;  %v10996_v45 = vld [vmem:[#allocation227_spill] sm:$0xff] }
 0x3a1   :  { %v2672_v36 = vmul.f32 %v2524_v3, %v10980_v1  ;;  %v10981_v55 = vld [vmem:[#allocation69_spill] sm:$0xff]  ;;  %v3918_v32 = vpack.c.bf16 %v2669_v48, %v2665_v5  ;;  %v3922_v28 = vpack.c.bf16 %v2677_v10, %v2673_v22  ;;  %v2681_v37 = vmul.f32 %v7942_v18, %v10985_v14  ;;  %v10986_v3 = vld [vmem:[#allocation224_spill] sm:$0xff]  ;;  %v10993_v60 = vld [vmem:[#allocation142_spill] sm:$0xff] }
 0x3a2   :  { %v2676_v12 = vmul.f32 %v2528_v33, %v10981_v55  ;;  %v3850_v40 = vpack.c.bf16 %v2675_v15, %v2671_v38  ;;  %v10983_v61 = vld [vmem:[#allocation221_spill] sm:$0xff]  ;;  %v2685_v33 = vmul.f32 %v7948_v47, %v10986_v3  ;;  %v3928_v5 = vpack.c.bf16 %v7935_v58, %v7932_v50  ;;  %v10992_v18 = vld [vmem:[#allocation140_spill] sm:$0xff]  ;;  %v10997_v15 = vld [vmem:[#allocation199_spill] sm:$0xff] }
 0x3a3   :  { %v2679_v7 = vmul.f32 %v7929_v59, %v10983_v61  ;;  %3919 = vmatprep.subr.bf16.mxu1 %v3918_v32  ;;  %v10989_v38 = vsub.f32 1.0, %v10988_v46  ;;  %v10991_v55 = vsub.f32 1.0, %v10990_v19  ;;  %v3852_v47 = vpack.c.bf16 %v10993_v60, %v10992_v18  ;;  %v10995_v58 = vld [vmem:[#allocation225_spill] sm:$0xff]  ;;  %v11003_v23 = vld [vmem:[#allocation228_spill] sm:$0xff] }
 0x3a4   :  { %3921 = vmatpush1.bf16.msra.mxu1 %v3920_v41  ;;  %3851 = vmatprep.subr.bf16.mxu0 %v3850_v40  ;;  %v10994_v48 = vsub.f32 1.0, %v10844_v43  ;;  %v2687_v35 = vmul.f32 %v7955_v54, %v10995_v58  ;;  %v2691_v26 = vmul.f32 %v7963_v29, %v10996_v45  ;;  %v10998_v6 = vsub.f32 1.0, %v10997_v15  ;;  %v10999_v32 = vld [vmem:[#allocation113_spill] sm:$0xff]  ;;  %v11002_v29 = vld [vmem:[#allocation226_spill] sm:$0xff]  ;;  %v11014_v18 = vld [vmem:[#allocation232_spill] sm:$0xff] }
 0x3a5   :  { %v8115_v59 = vmax.f32 %v10989_v38, 0.0  ;;  %v8119_v22 = vmax.f32 %v10991_v55, 0.0  ;;  %3923 = vmatprep.subr.bf16.mxu1 %v3922_v28  ;;  %v3854_v8 = vpack.c.bf16 %v2683_v49, %v2679_v7  ;;  %v11000_v42 = vsub.f32 1.0, %v10999_v32  ;;  %3853 = vmatpush1.bf16.msra.mxu0 %v3852_v47  ;;  %v11004_v28 = vld [vmem:[#allocation200_spill] sm:$0xff]  ;;  %v11013_v19 = vld [vmem:[#allocation229_spill] sm:$0xff]  ;;  %v11018_v45 = vld [vmem:[#allocation202_spill] sm:$0xff] }
 0x3a6   :  { %v8125_v50 = vmax.f32 %v10994_v48, 0.0  ;;  %v8133_v1 = vmax.f32 %v10998_v6, 0.0  ;;  %v3924_v43 = vpack.c.bf16 %v2676_v12, %v2672_v36  ;;  %v3932_v41 = vpack.c.bf16 %v7951_v4, %v7938_v62  ;;  %v11006_v36 = vld [vmem:[#allocation15_spill] sm:$0xff]  ;;  %v11009_v4 = vld [vmem:[#allocation146_spill] sm:$0xff]  ;;  %v11015_v47 = vld [vmem:[#allocation17_spill] sm:$0xff] }
 0x3a7   :  { %v8137_v10 = vmax.f32 %v11000_v42, 0.0  ;;  %v11001_v40 = vsub.f32 1.0, %v10845_v44  ;;  %3855 = vmatprep.subr.bf16.mxu0 %v3854_v8  ;;  %v3926_v54 = vpack.c.bf16 %v2685_v33, %v2681_v37  ;;  %v2689_v7 = vmul.f32 %v7959_v21, %v11002_v29  ;;  %v11010_v37 = vld [vmem:[#allocation6_spill] sm:$0xff]  ;;  %v11011_v21 = vld [vmem:[#allocation201_spill] sm:$0xff]  ;;  %v11020_v32 = vld [vmem:[#allocation84_spill] sm:$0xff] }
 0x3a8   :  { %v2693_v49 = vmul.f32 %v7967_v57, %v11003_v23  ;;  %v11005_v14 = vsub.f32 1.0, %v11004_v28  ;;  %v11007_v12 = vsub.f32 1.0, %v11006_v36  ;;  %v11008_v44 = vsub.f32 1.0, %v10846_v53  ;;  %3925 = vmatpush1.bf16.msra.mxu1 %v3924_v43  ;;  %v11023_v43 = vld [vmem:[#allocation231_spill] sm:$0xff] }
 0x3a9   :  { %v8143_v61 = vmax.f32 %v11001_v40, 0.0  ;;  %v3856_v33 = vpack.c.bf16 %v11010_v37, %v11009_v4  ;;  %v11012_v46 = vsub.f32 1.0, %v11011_v21  ;;  %3927 = vmatprep.subr.bf16.mxu1 %v3926_v54  ;;  %v3858_v57 = vpack.c.bf16 %v2691_v26, %v2687_v35  ;;  %v11024_v40 = vld [vmem:[#allocation234_spill] sm:$0xff]  ;;  %v11025_v29 = vld [vmem:[#allocation203_spill] sm:$0xff] }
 0x3aa   :  { %v8151_v3 = vmax.f32 %v11005_v14, 0.0  ;;  %v8155_v56 = vmax.f32 %v11007_v12, 0.0  ;;  %v8159_v62 = vmax.f32 %v11008_v44, 0.0  ;;  %v2695_v55 = vmul.f32 %v7971_v39, %v11013_v19  ;;  %v11027_v14 = vld [vmem:[#allocation114_spill] sm:$0xff]  ;;  %v11034_v21 = vld [vmem:[#allocation235_spill] sm:$0xff] }
 0x3ab   :  { %v8165_v38 = vmax.f32 %v11012_v46, 0.0  ;;  %v2699_v60 = vmul.f32 %v7983_v63, %v11014_v18  ;;  %v11016_v53 = vsub.f32 1.0, %v11015_v47  ;;  %v11017_v8 = vsub.f32 1.0, %v10847_v16  ;;  %3857 = vmatpush1.bf16.msra.mxu0 %v3856_v33  ;;  %v11036_v18 = vld [vmem:[#allocation19_spill] sm:$0xff] }
 0x3ac   :  { %v11019_v15 = vsub.f32 1.0, %v11018_v45  ;;  %v11021_v35 = vsub.f32 1.0, %v11020_v32  ;;  %v11022_v39 = vsub.f32 1.0, %v10848_v17  ;;  %3859 = vmatprep.subr.bf16.mxu0 %v3858_v57  ;;  %v3930_v42 = vpack.c.bf16 %v2693_v49, %v2689_v7  ;;  %3929 = vmatpush1.bf16.msra.mxu1 %v3928_v5  ;;  %v11030_v7 = vld [vmem:[#allocation76_spill] sm:$0xff]  ;;  %v11031_v49 = vld [vmem:[#allocation77_spill] sm:$0xff]  ;;  %v11035_v57 = vld [vmem:[#allocation238_spill] sm:$0xff] }
 0x3ad   :  { %v8173_v48 = vmax.f32 %v11016_v53, 0.0  ;;  %v8177_v58 = vmax.f32 %v11017_v8, 0.0  ;;  %v2697_v16 = vmul.f32 %v7979_v51, %v11023_v43  ;;  %v2701_v54 = vmul.f32 %v7991_v24, %v11024_v40  ;;  %v11032_v51 = vld [vmem:[#allocation204_spill] sm:$0xff]  ;;  %v11039_v8 = vld [vmem:[#allocation230_spill] sm:$0xff] }
 0x3ae   :  { %v8181_v6 = vmax.f32 %v11019_v15, 0.0  ;;  %v8185_v26 = vmax.f32 %v11021_v35, 0.0  ;;  %v8189_v63 = vmax.f32 %v11022_v39, 0.0  ;;  %v11026_v23 = vsub.f32 1.0, %v11025_v29  ;;  %3931 = vmatprep.subr.bf16.mxu1 %v3930_v42  ;;  %v11040_v15 = vld [vmem:[#allocation233_spill] sm:$0xff]  ;;  %v11044_v42 = vld [vmem:[#allocation240_spill] sm:$0xff] }
 0x3af   :  { %v11028_v36 = vsub.f32 1.0, %v11027_v14  ;;  %v11029_v17 = vsub.f32 1.0, %v10849_v25  ;;  %v3860_v4 = vpack.c.bf16 %v11031_v49, %v11030_v7  ;;  %v11033_v37 = vsub.f32 1.0, %v11032_v51  ;;  %v11043_v35 = vld [vmem:[#allocation237_spill] sm:$0xff]  ;;  %v11046_v40 = vld [vmem:[#allocation20_spill] sm:$0xff] }
 0x3b0   :  { %v8197_v28 = vmax.f32 %v11026_v23, 0.0  ;;  %v3862_v24 = vpack.c.bf16 %v2699_v60, %v2695_v55  ;;  %v2703_v46 = vmul.f32 %v7995_v20, %v11034_v21  ;;  %v2707_v19 = vmul.f32 %v8007_v30, %v11035_v57  ;;  %v11041_v60 = vld [vmem:[#allocation205_spill] sm:$0xff]  ;;  %3933 = vmatpush1.bf16.msra.mxu1 %v3932_v41  ;;  %v11057_v21 = vld [vmem:[#allocation47_spill] sm:$0xff]  ;;  %v11062_v41 = vld [vmem:[#allocation236_spill] sm:$0xff] }
 0x3b1   :  { %v8201_v12 = vmax.f32 %v11028_v36, 0.0  ;;  %v8205_v44 = vmax.f32 %v11029_v17, 0.0  ;;  %v8211_v33 = vmax.f32 %v11033_v37, 0.0  ;;  %v11037_v25 = vsub.f32 1.0, %v11036_v18  ;;  %3861 = vmatpush1.bf16.msra.mxu0 %v3860_v4  ;;  %v11050_v36 = vld [vmem:[#allocation206_spill] sm:$0xff]  ;;  %v11058_v18 = vld [vmem:[#allocation244_spill] sm:$0xff] }
 0x3b2   :  { %v11038_v5 = vsub.f32 1.0, %v10850_v52  ;;  %v2696_v45 = vmul.f32 %v7975_v27, %v11039_v8  ;;  %v2700_v55 = vmul.f32 %v7987_v9, %v11040_v15  ;;  %v11042_v20 = vsub.f32 1.0, %v11041_v60  ;;  %3863 = vmatprep.subr.bf16.mxu0 %v3862_v24  ;;  %v11045_v52 = vld [vmem:[#allocation44_spill] sm:$0xff]  ;;  %v11048_v27 = vld [vmem:[#allocation267_spill] sm:$0xff]  ;;  %v11056_v24 = vld [vmem:[#allocation241_spill] sm:$0xff] }
 0x3b3   :  { %v8219_v47 = vmax.f32 %v11037_v25, 0.0  ;;  %v3934_v30 = vpack.c.bf16 %v2701_v54, %v2697_v16  ;;  %v2705_v39 = vmul.f32 %v8003_v13, %v11043_v35  ;;  %v2709_v43 = vmul.f32 %v11045_v52, %v11044_v42  ;;  %v11052_v16 = vld [vmem:[#allocation78_spill] sm:$0xff]  ;;  %v11053_v54 = vld [vmem:[#allocation79_spill] sm:$0xff]  ;;  %v11054_v13 = vld [vmem:[#allocation85_spill] sm:$0xff] }
 0x3b4   :  { %v8223_v53 = vmax.f32 %v11038_v5, 0.0  ;;  %v8231_v32 = vmax.f32 %v11042_v20, 0.0  ;;  %v11047_v29 = vsub.f32 1.0, %v11046_v40  ;;  %v11049_v14 = vsub.f32 1.0, %v11048_v27  ;;  %v11059_v25 = vld [vmem:[#allocation120_spill] sm:$0xff]  ;;  %v11063_v20 = vld [vmem:[#allocation89_spill] sm:$0xff] }
 0x3b5   :  { %v11051_v17 = vsub.f32 1.0, %v11050_v36  ;;  %v3864_v49 = vpack.c.bf16 %v11053_v54, %v11052_v16  ;;  %v11055_v4 = vsub.f32 1.0, %v11054_v13  ;;  %3935 = vmatprep.subr.bf16.mxu1 %v3934_v30  ;;  %v3866_v37 = vpack.c.bf16 %v2707_v19, %v2703_v46  ;;  %v11060_v8 = vld [vmem:[#allocation268_spill] sm:$0xff]  ;;  %v11064_v42 = vld [vmem:[#allocation239_spill] sm:$0xff]  ;;  %v11069_v36 = vld [vmem:[#allocation90_spill] sm:$0xff] }
 0x3b6   :  { %v8239_v23 = vmax.f32 %v11047_v29, 0.0  ;;  %v8243_v9 = vmax.f32 %v11049_v14, 0.0  ;;  %v2711_v57 = vmul.f32 %v11057_v21, %v11056_v24  ;;  %v2715_v5 = vmul.f32 %v11059_v25, %v11058_v18  ;;  %v11065_v52 = vld [vmem:[#allocation119_spill] sm:$0xff]  ;;  %v11070_v16 = vld [vmem:[#allocation246_spill] sm:$0xff]  ;;  %v11071_v13 = vld [vmem:[#allocation21_spill] sm:$0xff] }
 0x3b7   :  { %v8247_v7 = vmax.f32 %v11051_v17, 0.0  ;;  %v8253_v51 = vmax.f32 %v11055_v4, 0.0  ;;  %v11061_v15 = vsub.f32 1.0, %v11060_v8  ;;  %v2704_v35 = vmul.f32 %v11063_v20, %v11062_v41  ;;  %3865 = vmatpush1.bf16.msra.mxu0 %v3864_v49  ;;  %v11066_v30 = vld [vmem:[#allocation207_spill] sm:$0xff]  ;;  %v11073_v21 = vld [vmem:[#allocation269_spill] sm:$0xff] }
 0x3b8   :  { %v2708_v40 = vmul.f32 %v11065_v52, %v11064_v42  ;;  %v3936_v29 = vpack.c.bf16 %v2700_v55, %v2696_v45  ;;  %v11067_v46 = vsub.f32 1.0, %v11066_v30  ;;  %3867 = vmatprep.subr.bf16.mxu0 %v3866_v37  ;;  %v3938_v27 = vpack.c.bf16 %v2709_v43, %v2705_v39  ;;  %v11068_v14 = vld [vmem:[#allocation243_spill] sm:$0xff]  ;;  %v11075_v45 = vld [vmem:[#allocation208_spill] sm:$0xff]  ;;  %v11077_v39 = vld [vmem:[#allocation54_spill] sm:$0xff] }
 0x3b9   :  { %v8261_v60 = vmax.f32 %v11061_v15, 0.0  ;;  %v2713_v17 = vmul.f32 %v11069_v36, %v11068_v14  ;;  %v2717_v54 = vmul.f32 %v8088_v34, %v11070_v16  ;;  %v11072_v4 = vsub.f32 1.0, %v11071_v13  ;;  %v11078_v43 = vld [vmem:[#allocation57_spill] sm:$0xff]  ;;  %v11079_v8 = vld [vmem:[#allocation23_spill] sm:$0xff]  ;;  %v11082_v52 = vld [vmem:[#allocation150_spill] sm:$0xff] }
 0x3ba   :  { %v8269_v19 = vmax.f32 %v11067_v46, 0.0  ;;  %v11074_v18 = vsub.f32 1.0, %v11073_v21  ;;  %v11076_v55 = vsub.f32 1.0, %v11075_v45  ;;  %3937 = vmatpush1.bf16.msra.mxu1 %v3936_v29  ;;  %v3868_v37 = vpack.c.bf16 %v11078_v43, %v11077_v39  ;;  %v11081_v20 = vld [vmem:[#allocation249_spill] sm:$0xff]  ;;  %v11083_v46 = vld [vmem:[#allocation270_spill] sm:$0xff]  ;;  %v11086_v16 = vld [vmem:[#allocation48_spill] sm:$0xff] }
 0x3bb   :  { %v8277_v24 = vmax.f32 %v11072_v4, 0.0  ;;  %v11080_v15 = vsub.f32 1.0, %v11079_v8  ;;  %3939 = vmatprep.subr.bf16.mxu1 %v3938_v27  ;;  %v3870_v34 = vpack.c.bf16 %v2715_v5, %v2711_v57  ;;  %v2719_v42 = vmul.f32 %v8111_v11, %v11081_v20  ;;  %v11085_v29 = vld [vmem:[#allocation242_spill] sm:$0xff]  ;;  %v11087_v4 = vld [vmem:[#allocation245_spill] sm:$0xff]  ;;  %v11088_v21 = vld [vmem:[#allocation51_spill] sm:$0xff] }
 0x3bc   :  { %v8281_v49 = vmax.f32 %v11074_v18, 0.0  ;;  %v8285_v25 = vmax.f32 %v11076_v55, 0.0  ;;  %v2723_v30 = vmul.f32 %v8125_v50, %v11082_v52  ;;  %v11084_v14 = vsub.f32 1.0, %v11083_v46  ;;  %3869 = vmatpush1.bf16.msra.mxu0 %v3868_v37  ;;  %v11089_v27 = vld [vmem:[#allocation209_spill] sm:$0xff]  ;;  %v11091_v55 = vld [vmem:[#allocation59_spill] sm:$0xff]  ;;  %v11092_v39 = vld [vmem:[#allocation152_spill] sm:$0xff] }
 0x3bd   :  { %v8291_v41 = vmax.f32 %v11080_v15, 0.0  ;;  %v2712_v13 = vmul.f32 %v11086_v16, %v11085_v29  ;;  %v2716_v18 = vmul.f32 %v11088_v21, %v11087_v4  ;;  %v3940_v45 = vpack.c.bf16 %v2708_v40, %v2704_v35  ;;  %3871 = vmatprep.subr.bf16.mxu0 %v3870_v34  ;;  %v11093_v8 = vld [vmem:[#allocation279_spill] sm:$0xff]  ;;  %v11095_v52 = vld [vmem:[#allocation250_spill] sm:$0xff]  ;;  %v11100_v29 = vld [vmem:[#allocation153_spill] sm:$0xff] }
 0x3be   :  { %v8299_v36 = vmax.f32 %v11084_v14, 0.0  ;;  %v11090_v57 = vsub.f32 1.0, %v11089_v27  ;;  %v3942_v11 = vpack.c.bf16 %v2717_v54, %v2713_v17  ;;  %v2721_v50 = vmul.f32 %v8119_v22, %v11091_v55  ;;  %v11096_v37 = vld [vmem:[#allocation151_spill] sm:$0xff]  ;;  %v11099_v17 = vld [vmem:[#allocation154_spill] sm:$0xff]  ;;  %v11101_v16 = vld [vmem:[#allocation156_spill] sm:$0xff] }
 0x3bf   :  { %v2725_v43 = vmul.f32 %v8137_v10, %v11092_v39  ;;  %v11094_v15 = vsub.f32 1.0, %v11093_v8  ;;  %v2720_v46 = vmul.f32 %v8115_v59, %v11095_v52  ;;  %v2724_v35 = vmul.f32 %v8133_v1, %v11096_v37  ;;  %3941 = vmatpush1.bf16.msra.mxu1 %v3940_v45  ;;  %v11097_v40 = vld [vmem:[#allocation63_spill] sm:$0xff]  ;;  %v11102_v21 = vld [vmem:[#allocation157_spill] sm:$0xff] }
 0x3c0   :  { %v8307_v5 = vmax.f32 %v11090_v57, 0.0  ;;  %v11098_v14 = vld [vmem:[#allocation7_spill] sm:$0xff]  ;;  %v2728_v54 = vmul.f32 %v8151_v3, %v11099_v17  ;;  %3943 = vmatprep.subr.bf16.mxu1 %v3942_v11  ;;  %v3874_v22 = vpack.c.bf16 %v2723_v30, %v2719_v42  ;;  %v2727_v10 = vmul.f32 %v8143_v61, %v11100_v29  ;;  %v11104_v57 = vld [vmem:[#allocation158_spill] sm:$0xff]  ;;  %v11113_v37 = vld [vmem:[#allocation281_spill] sm:$0xff] }
 0x3c1   :  { %v2651_v20 = vmax.f32 %v11094_v15, 0.0  ;;  %v3872_v34 = vpack.c.bf16 %v11098_v14, %v11097_v40  ;;  %v2731_v4 = vmul.f32 %v8159_v62, %v11101_v16  ;;  %v2732_v59 = vmul.f32 %v8165_v38, %v11102_v21  ;;  %v11103_v45 = vld [vmem:[#allocation155_spill] sm:$0xff]  ;;  %v11105_v3 = vld [vmem:[#allocation118_spill] sm:$0xff]  ;;  %v11108_v62 = vld [vmem:[#allocation161_spill] sm:$0xff] }
 0x3c2   :  { %v3944_v1 = vpack.c.bf16 %v2716_v18, %v2712_v13  ;;  %v2729_v27 = vmul.f32 %v8155_v56, %v11103_v45  ;;  %v2733_v55 = vmul.f32 %v8173_v48, %v11104_v57  ;;  %v11106_v11 = vsub.f32 1.0, %v11105_v3  ;;  %v11107_v61 = vld [vmem:[#allocation159_spill] sm:$0xff]  ;;  %v11109_v38 = vld [vmem:[#allocation280_spill] sm:$0xff]  ;;  %v11115_v14 = vld [vmem:[#allocation82_spill] sm:$0xff] }
 0x3c3   :  { %3873 = vmatpush1.bf16.msra.mxu0 %v3872_v34  ;;  %v3946_v30 = vpack.c.bf16 %v2725_v43, %v2721_v50  ;;  %v2735_v39 = vmul.f32 %v8177_v58, %v11107_v61  ;;  %v2739_v8 = vmul.f32 %v8189_v63, %v11108_v62  ;;  %v11110_v15 = vsub.f32 1.0, %v11109_v38  ;;  %v11111_v18 = vld [vmem:[#allocation40_spill] sm:$0xff]  ;;  %v11116_v34 = vld [vmem:[#allocation14_spill] sm:$0xff]  ;;  %v11117_v50 = vld [vmem:[#allocation43_spill] sm:$0xff] }
 0x3c4   :  { %v2653_v42 = vmax.f32 %v11106_v11, 0.0  ;;  %3875 = vmatprep.subr.bf16.mxu0 %v3874_v22  ;;  %v11112_v52 = vsub.f32 1.0, %v11111_v18  ;;  %v11114_v40 = vsub.f32 1.0, %v11113_v37  ;;  %3945 = vmatpush1.bf16.msra.mxu1 %v3944_v1  ;;  %v3876_v17 = vpack.c.bf16 %v11116_v34, %v11115_v14  ;;  %v11119_v58 = vld [vmem:[#allocation160_spill] sm:$0xff]  ;;  %v11120_v63 = vld [vmem:[#allocation143_spill] sm:$0xff]  ;;  %v11122_v11 = vld [vmem:[#allocation18_spill] sm:$0xff] }
 0x3c5   :  { %v2655_v13 = vmax.f32 %v11110_v15, 0.0  ;;  %v11118_v43 = vsub.f32 1.0, %v11117_v50  ;;  %v2736_v29 = vmul.f32 %v8181_v6, %v11119_v58  ;;  %v2740_v16 = vmul.f32 %v8197_v28, %v11120_v63  ;;  %3947 = vmatprep.subr.bf16.mxu1 %v3946_v30  ;;  %v11121_v3 = vld [vmem:[#allocation16_spill] sm:$0xff]  ;;  %v11123_v38 = vld [vmem:[#allocation141_spill] sm:$0xff]  ;;  %v11124_v18 = vld [vmem:[#allocation162_spill] sm:$0xff] }
 0x3c6   :  { %v2657_v56 = vmax.f32 %v11112_v52, 0.0  ;;  %v2659_v48 = vmax.f32 %v11114_v40, 0.0  ;;  %v3878_v21 = vpack.c.bf16 %v2731_v4, %v2727_v10  ;;  %v3948_v45 = vpack.c.bf16 %v2724_v35, %v2720_v46  ;;  %v11125_v10 = vld [vmem:[#allocation144_spill] sm:$0xff]  ;;  %v11130_v30 = vld [vmem:[#allocation287_spill] sm:$0xff]  ;;  %v11133_v37 = vld [vmem:[#allocation122_spill] sm:$0xff] }
 0x3c7   :  { %v2661_v22 = vmax.f32 %v11118_v43, 0.0  ;;  %3877 = vmatpush1.bf16.msra.mxu0 %v3876_v17  ;;  %v3950_v57 = vpack.c.bf16 %v2733_v55, %v2729_v27  ;;  %v3880_v1 = vpack.c.bf16 %v11122_v11, %v11121_v3  ;;  %v3952_v61 = vpack.c.bf16 %v2732_v59, %v2728_v54  ;;  %v11126_v35 = vld [vmem:[#allocation52_spill] sm:$0xff]  ;;  %v11127_v27 = vld [vmem:[#allocation286_spill] sm:$0xff]  ;;  %v11134_v14 = vld [vmem:[#allocation91_spill] sm:$0xff] }
 0x3c8   :  { %3879 = vmatprep.subr.bf16.mxu0 %v3878_v21  ;;  %v3882_v62 = vpack.c.bf16 %v2739_v8, %v2735_v39  ;;  %v2737_v15 = vmul.f32 %v8185_v26, %v11123_v38  ;;  %v2741_v6 = vmul.f32 %v8201_v12, %v11124_v18  ;;  %v3912_v28 = vpack.c.bf16 %v8060_v2, %v8053_v0  ;;  %v11128_v59 = vld [vmem:[#allocation288_spill] sm:$0xff]  ;;  %v11131_v8 = vld [vmem:[#allocation289_spill] sm:$0xff]  ;;  %v11136_v17 = vld [vmem:[#allocation251_spill] sm:$0xff] }
 0x3c9   :  { %3949 = vmatpush1.bf16.msra.mxu1 %v3948_v45  ;;  %v2743_v46 = vmul.f32 %v8205_v44, %v11125_v10  ;;  %v3984_v4 = vpack.c.bf16 %v11126_v35, %v8056_v31  ;;  %v8366_v54 = vmul.f32 %v2651_v20, %v11127_v27  ;;  %v8369_v55 = vmul.f32 %v2655_v13, %v11128_v59  ;;  %v11129_v26 = vld [vmem:[#allocation164_spill] sm:$0xff]  ;;  %v11132_v44 = vld [vmem:[#allocation58_spill] sm:$0xff]  ;;  %v11139_v63 = vld [vmem:[#allocation165_spill] sm:$0xff] }
 0x3ca   :  { %3951 = vmatprep.subr.bf16.mxu1 %v3950_v57  ;;  %v2747_v12 = vmul.f32 %v8223_v53, %v11129_v26  ;;  %v8374_v39 = vmul.f32 %v2653_v42, %v11130_v30  ;;  %v8377_v52 = vmul.f32 %v2657_v56, %v11131_v8  ;;  %v3916_v40 = vpack.c.bf16 %v11133_v37, %v11132_v44  ;;  %v11135_v13 = vld [vmem:[#allocation60_spill] sm:$0xff]  ;;  %v11137_v53 = vld [vmem:[#allocation290_spill] sm:$0xff]  ;;  %v11138_v56 = vld [vmem:[#allocation145_spill] sm:$0xff] }
 0x3cb   :  { %3881 = vmatpush1.bf16.msra.mxu0 %v3880_v1  ;;  %v3914_v20 = vpack.c.bf16 %v8369_v55, %v8366_v54  ;;  %v3988_v34 = vpack.c.bf16 %v11135_v13, %v11134_v14  ;;  %v8386_v50 = vmul.f32 %v2659_v48, %v11136_v17  ;;  %v8389_v43 = vmul.f32 %v2661_v22, %v11137_v53  ;;  %v11140_v57 = vld [vmem:[#allocation24_spill] sm:$0xff]  ;;  %v11142_v1 = vld [vmem:[#allocation271_spill] sm:$0xff]  ;;  %v11144_v18 = vld [vmem:[#allocation210_spill] sm:$0xff] }
 0x3cc   :  { %3883 = vmatprep.subr.bf16.mxu0 %v3882_v62  ;;  %v3954_v42 = vpack.c.bf16 %v2741_v6, %v2737_v15  ;;  %v2745_v58 = vmul.f32 %v8219_v47, %v11138_v56  ;;  %v2749_v21 = vmul.f32 %v8239_v23, %v11139_v63  ;;  %v3986_v45 = vpack.c.bf16 %v8377_v52, %v8374_v39  ;;  %v11146_v62 = vld [vmem:[#allocation115_spill] sm:$0xff]  ;;  %v11147_v15 = vld [vmem:[#allocation86_spill] sm:$0xff]  ;;  %v11148_v6 = vld [vmem:[#allocation116_spill] sm:$0xff] }
 0x3cd   :  { %v11141_v3 = vsub.f32 1.0, %v11140_v57  ;;  %v11143_v48 = vsub.f32 1.0, %v11142_v1  ;;  %v11145_v22 = vsub.f32 1.0, %v11144_v18  ;;  %3953 = vmatpush1.bf16.msra.mxu1 %v3952_v61  ;;  %v3884_v47 = vpack.c.bf16 %v11147_v15, %v11146_v62  ;;  %v11150_v26 = vld [vmem:[#allocation148_spill] sm:$0xff]  ;;  %v11151_v8 = vld [vmem:[#allocation167_spill] sm:$0xff]  ;;  %v2816_v0 = vld [vmem:[%s8764_s3 + $0x30] sm:$0xff] }
 0x3ce   :  { %v11149_v27 = vsub.f32 1.0, %v11148_v6  ;;  %3955 = vmatprep.subr.bf16.mxu1 %v3954_v42  ;;  %v3886_v59 = vpack.c.bf16 %v2747_v12, %v2743_v46  ;;  %v2751_v30 = vmul.f32 %v8243_v9, %v11150_v26  ;;  %v2755_v17 = vmul.f32 %v8261_v60, %v11151_v8  ;;  %v11152_v53 = vld [vmem:[#allocation272_spill] sm:$0xff]  ;;  %v11154_v57 = vld [vmem:[#allocation163_spill] sm:$0xff]  ;;  %v11158_v9 = vld [vmem:[#allocation149_spill] sm:$0xff] }
 0x3cf   :  { %v2617_v11 = vmax.f32 %v11141_v3, 0.0  ;;  %v2619_v38 = vmax.f32 %v11143_v48, 0.0  ;;  %v8403_v10 = vmax.f32 %v11145_v22, 0.0  ;;  %v11153_v56 = vsub.f32 1.0, %v11152_v53  ;;  %v11155_v3 = vld [vmem:[#allocation147_spill] sm:$0xff]  ;;  %3885 = vmatpush1.bf16.msra.mxu0 %v3884_v47  ;;  %v11159_v60 = vld [vmem:[#allocation168_spill] sm:$0xff] }
 0x3d0   :  { %v2621_v23 = vmax.f32 %v11149_v27, 0.0  ;;  %v2744_v61 = vmul.f32 %v8211_v33, %v11154_v57  ;;  %v2748_v1 = vmul.f32 %v8231_v32, %v11155_v3  ;;  %v3956_v48 = vpack.c.bf16 %v2740_v16, %v2736_v29  ;;  %v11156_v18 = vld [vmem:[#allocation211_spill] sm:$0xff]  ;;  %3887 = vmatprep.subr.bf16.mxu0 %v3886_v59  ;;  %v11162_v33 = vld [vmem:[#allocation273_spill] sm:$0xff]  ;;  %v11165_v47 = vld [vmem:[#allocation124_spill] sm:$0xff] }
 0x3d1   :  { %v2623_v63 = vmax.f32 %v11153_v56, 0.0  ;;  %v11157_v42 = vsub.f32 1.0, %v11156_v18  ;;  %v3958_v12 = vpack.c.bf16 %v2749_v21, %v2745_v58  ;;  %v2753_v22 = vmul.f32 %v8253_v51, %v11158_v9  ;;  %v11160_v15 = vld [vmem:[#allocation27_spill] sm:$0xff]  ;;  %v11164_v32 = vld [vmem:[#allocation93_spill] sm:$0xff]  ;;  %v11171_v3 = vld [vmem:[#allocation170_spill] sm:$0xff] }
 0x3d2   :  { %v2757_v62 = vmul.f32 %v8277_v24, %v11159_v60  ;;  %v11161_v6 = vsub.f32 1.0, %v11160_v15  ;;  %v11163_v26 = vsub.f32 1.0, %v11162_v33  ;;  %v2754_v29 = vmul.f32 %v11165_v47, %v11164_v32  ;;  %3957 = vmatpush1.bf16.msra.mxu1 %v3956_v48  ;;  %v11166_v16 = vld [vmem:[#allocation31_spill] sm:$0xff]  ;;  %v11174_v15 = vld [vmem:[#allocation166_spill] sm:$0xff]  ;;  %v2820_v31 = vld [vmem:[%s8764_s3 + $0x50] sm:$0xff] }
 0x3d3   :  { %v2624_v46 = vmax.f32 %v11157_v42, 0.0  ;;  %v11167_v53 = vld [vmem:[#allocation35_spill] sm:$0xff]  ;;  %3959 = vmatprep.subr.bf16.mxu1 %v3958_v12  ;;  %v3890_v51 = vpack.c.bf16 %v2755_v17, %v2751_v30  ;;  %v2763_v18 = vmul.f32 %v8299_v36, %v11171_v3  ;;  %v11172_v42 = vld [vmem:[#allocation28_spill] sm:$0xff]  ;;  %v2752_v48 = vmul.f32 %v8247_v7, %v11174_v15  ;;  %v11176_v32 = vld [vmem:[#allocation274_spill] sm:$0xff] }
 0x3d4   :  { %v2625_v27 = vmax.f32 %v11161_v6, 0.0  ;;  %v2627_v8 = vmax.f32 %v11163_v26, 0.0  ;;  %v3888_v59 = vpack.c.bf16 %v11167_v53, %v11166_v16  ;;  %v11168_v58 = vld [vmem:[#allocation11_spill] sm:$0xff]  ;;  %v11173_v9 = vsub.f32 1.0, %v11172_v42  ;;  %v11175_v6 = vld [vmem:[#allocation282_spill] sm:$0xff]  ;;  %v11180_v53 = vld [vmem:[#allocation212_spill] sm:$0xff] }
 0x3d5   :  { %v11169_v21 = vsub.f32 1.0, %v11168_v58  ;;  %v11170_v24 = vld [vmem:[#allocation283_spill] sm:$0xff]  ;;  %v2756_v33 = vmul.f32 %v8269_v19, %v11175_v6  ;;  %v3960_v26 = vpack.c.bf16 %v2748_v1, %v2744_v61  ;;  %v11177_v12 = vsub.f32 1.0, %v11176_v32  ;;  %v11183_v7 = vld [vmem:[#allocation125_spill] sm:$0xff]  ;;  %v11185_v19 = vld [vmem:[#allocation126_spill] sm:$0xff] }
 0x3d6   :  { %v2759_v57 = vmul.f32 %v8281_v49, %v11170_v24  ;;  %v2629_v60 = vmax.f32 %v11173_v9, 0.0  ;;  %3889 = vmatpush1.bf16.msra.mxu0 %v3888_v59  ;;  %v3962_v17 = vpack.c.bf16 %v2757_v62, %v2753_v22  ;;  %v11178_v49 = vld [vmem:[#allocation30_spill] sm:$0xff]  ;;  %v11179_v36 = vld [vmem:[#allocation171_spill] sm:$0xff]  ;;  %v11181_v58 = vsub.f32 1.0, %v11180_v53  ;;  %v2823_v35 = vld [vmem:[%s8764_s3 + $0x68] sm:$0xff] }
 0x3d7   :  { %v8435_v56 = vmax.f32 %v11169_v21, 0.0  ;;  %v2631_v30 = vmax.f32 %v11177_v12, 0.0  ;;  %3891 = vmatprep.subr.bf16.mxu0 %v3890_v51  ;;  %v2761_v47 = vmul.f32 %v8291_v41, %v11178_v49  ;;  %v2765_v16 = vmul.f32 %v2617_v11, %v11179_v36  ;;  %v11182_v24 = vld [vmem:[#allocation94_spill] sm:$0xff]  ;;  %v11184_v42 = vld [vmem:[#allocation95_spill] sm:$0xff]  ;;  %3961 = vmatpush1.bf16.msra.mxu1 %v3960_v26  ;;  %v11190_v11 = vld [vmem:[#allocation173_spill] sm:$0xff] }
 0x3d8   :  { %v2632_v21 = vmax.f32 %v11181_v58, 0.0  ;;  %v2758_v3 = vmul.f32 %v11183_v7, %v11182_v24  ;;  %v2762_v59 = vmul.f32 %v11185_v19, %v11184_v42  ;;  %v11186_v61 = vld [vmem:[#allocation39_spill] sm:$0xff]  ;;  %3963 = vmatprep.subr.bf16.mxu1 %v3962_v17  ;;  %v3894_v62 = vpack.c.bf16 %v2763_v18, %v2759_v57  ;;  %v11189_v41 = vld [vmem:[#allocation34_spill] sm:$0xff]  ;;  %v11193_v36 = vld [vmem:[#allocation169_spill] sm:$0xff] }
 0x3d9   :  { %v3892_v1 = vpack.c.bf16 %v2754_v29, %v11186_v61  ;;  %v11187_v9 = vld [vmem:[#allocation87_spill] sm:$0xff]  ;;  %v2767_v15 = vmul.f32 %v2619_v38, %v11189_v41  ;;  %v2771_v6 = vmul.f32 %v2623_v63, %v11190_v11  ;;  %v2760_v53 = vmul.f32 %v8285_v25, %v11193_v36  ;;  %v11194_v58 = vld [vmem:[#allocation33_spill] sm:$0xff]  ;;  %v11198_v17 = vld [vmem:[#allocation174_spill] sm:$0xff] }
 0x3da   :  { %v11188_v51 = vsub.f32 1.0, %v11187_v9  ;;  %v11191_v32 = vld [vmem:[#allocation275_spill] sm:$0xff]  ;;  %v2764_v26 = vmul.f32 %v8307_v5, %v11194_v58  ;;  %v3964_v29 = vpack.c.bf16 %v2756_v33, %v2752_v48  ;;  %v11195_v24 = vld [vmem:[#allocation213_spill] sm:$0xff]  ;;  %v3966_v57 = vpack.c.bf16 %v2765_v16, %v2761_v47  ;;  %v11205_v33 = vld [vmem:[#allocation276_spill] sm:$0xff] }
 0x3db   :  { %v11192_v12 = vsub.f32 1.0, %v11191_v32  ;;  %3893 = vmatpush1.bf16.msra.mxu0 %v3892_v1  ;;  %v11196_v7 = vsub.f32 1.0, %v11195_v24  ;;  %v11197_v18 = vld [vmem:[#allocation37_spill] sm:$0xff]  ;;  %v2773_v63 = vmul.f32 %v2625_v27, %v11198_v17  ;;  %v11202_v41 = vld [vmem:[#allocation127_spill] sm:$0xff]  ;;  %v11204_v32 = vld [vmem:[#allocation128_spill] sm:$0xff]  ;;  %v3896_v48 = vpack.c.bf16 %v2762_v59, %v2758_v3 }
 0x3dc   :  { %v2633_v22 = vmax.f32 %v11188_v51, 0.0  ;;  %3895 = vmatprep.subr.bf16.mxu0 %v3894_v62  ;;  %v2769_v38 = vmul.f32 %v2621_v23, %v11197_v18  ;;  %v11199_v19 = vld [vmem:[#allocation117_spill] sm:$0xff]  ;;  %v11201_v51 = vld [vmem:[#allocation96_spill] sm:$0xff]  ;;  %3965 = vmatpush1.bf16.msra.mxu1 %v3964_v29  ;;  %v11206_v1 = vsub.f32 1.0, %v11205_v33  ;;  %v3898_v47 = vpack.c.bf16 %v2771_v6, %v2767_v15  ;;  %v11209_v36 = vld [vmem:[#allocation214_spill] sm:$0xff] }
 0x3dd   :  { %v2635_v49 = vmax.f32 %v11192_v12, 0.0  ;;  %v2636_v42 = vmax.f32 %v11196_v7, 0.0  ;;  %v11200_v61 = vsub.f32 1.0, %v11199_v19  ;;  %v2766_v25 = vmul.f32 %v11202_v41, %v11201_v51  ;;  %v11203_v11 = vld [vmem:[#allocation97_spill] sm:$0xff]  ;;  %3967 = vmatprep.subr.bf16.mxu1 %v3966_v57  ;;  %v11208_v62 = vld [vmem:[#allocation176_spill] sm:$0xff]  ;;  %v11212_v17 = vld [vmem:[#allocation38_spill] sm:$0xff] }
 0x3de   :  { %v2770_v5 = vmul.f32 %v11204_v32, %v11203_v11  ;;  %v2639_v12 = vmax.f32 %v11206_v1, 0.0  ;;  %v11207_v16 = vld [vmem:[#allocation41_spill] sm:$0xff]  ;;  %v2779_v27 = vmul.f32 %v2631_v30, %v11208_v62  ;;  %v11210_v58 = vsub.f32 1.0, %v11209_v36  ;;  %v11211_v7 = vld [vmem:[#allocation172_spill] sm:$0xff]  ;;  %v11215_v15 = vld [vmem:[#allocation42_spill] sm:$0xff] }
 0x3df   :  { %v2637_v9 = vmax.f32 %v11200_v61, 0.0  ;;  %v2775_v23 = vmul.f32 %v2627_v8, %v11207_v16  ;;  %v2768_v18 = vmul.f32 %v8403_v10, %v11211_v7  ;;  %v2772_v19 = vmul.f32 %v2624_v46, %v11212_v17  ;;  %3897 = vmatpush1.bf16.msra.mxu0 %v3896_v48  ;;  %v11213_v3 = vld [vmem:[#allocation32_spill] sm:$0xff]  ;;  %v11216_v8 = vld [vmem:[#allocation177_spill] sm:$0xff]  ;;  %v11219_v32 = vld [vmem:[#allocation98_spill] sm:$0xff] }
 0x3e0   :  { %v2640_v24 = vmax.f32 %v11210_v58, 0.0  ;;  %v3968_v29 = vpack.c.bf16 %v2764_v26, %v2760_v53  ;;  %v11214_v59 = vsub.f32 1.0, %v11213_v3  ;;  %3899 = vmatprep.subr.bf16.mxu0 %v3898_v47  ;;  %v3970_v57 = vpack.c.bf16 %v2773_v63, %v2769_v38  ;;  %v11217_v30 = vld [vmem:[#allocation277_spill] sm:$0xff]  ;;  %v11221_v10 = vld [vmem:[#allocation99_spill] sm:$0xff]  ;;  %v11222_v16 = vld [vmem:[#allocation130_spill] sm:$0xff] }
 0x3e1   :  { %v2777_v6 = vmul.f32 %v2629_v60, %v11215_v15  ;;  %v2781_v51 = vmul.f32 %v2633_v22, %v11216_v8  ;;  %v11218_v41 = vsub.f32 1.0, %v11217_v30  ;;  %v11220_v33 = vld [vmem:[#allocation129_spill] sm:$0xff]  ;;  %v2778_v46 = vmul.f32 %v11222_v16, %v11221_v10  ;;  %v11223_v26 = vld [vmem:[#allocation278_spill] sm:$0xff]  ;;  %v11226_v47 = vld [vmem:[#allocation179_spill] sm:$0xff] }
 0x3e2   :  { %v2641_v61 = vmax.f32 %v11214_v59, 0.0  ;;  %v2774_v1 = vmul.f32 %v11220_v33, %v11219_v32  ;;  %3969 = vmatpush1.bf16.msra.mxu1 %v3968_v29  ;;  %v3900_v53 = vpack.c.bf16 %v2770_v5, %v2766_v25  ;;  %v11224_v48 = vsub.f32 1.0, %v11223_v26  ;;  %v11225_v63 = vld [vmem:[#allocation46_spill] sm:$0xff]  ;;  %v11227_v36 = vld [vmem:[#allocation36_spill] sm:$0xff]  ;;  %v11229_v17 = vld [vmem:[#allocation175_spill] sm:$0xff] }
 0x3e3   :  { %v2643_v11 = vmax.f32 %v11218_v41, 0.0  ;;  %3971 = vmatprep.subr.bf16.mxu1 %v3970_v57  ;;  %v3902_v38 = vpack.c.bf16 %v2779_v27, %v2775_v23  ;;  %v2783_v60 = vmul.f32 %v2635_v49, %v11225_v63  ;;  %v2787_v22 = vmul.f32 %v2639_v12, %v11226_v47  ;;  %v11230_v59 = vld [vmem:[#allocation45_spill] sm:$0xff]  ;;  %v11231_v25 = vld [vmem:[#allocation88_spill] sm:$0xff]  ;;  %v11236_v41 = vld [vmem:[#allocation131_spill] sm:$0xff] }
 0x3e4   :  { %v2647_v62 = vmax.f32 %v11224_v48, 0.0  ;;  %v11228_v58 = vsub.f32 1.0, %v11227_v36  ;;  %v2776_v3 = vmul.f32 %v8435_v56, %v11229_v17  ;;  %v2780_v15 = vmul.f32 %v2632_v21, %v11230_v59  ;;  %3901 = vmatpush1.bf16.msra.mxu0 %v3900_v53  ;;  %v11233_v23 = vld [vmem:[#allocation49_spill] sm:$0xff]  ;;  %v11234_v49 = vld [vmem:[#allocation180_spill] sm:$0xff]  ;;  %v11241_v48 = vld [vmem:[#allocation178_spill] sm:$0xff] }
 0x3e5   :  { %v3972_v29 = vpack.c.bf16 %v2772_v19, %v2768_v18  ;;  %v11232_v5 = vsub.f32 1.0, %v11231_v25  ;;  %3903 = vmatprep.subr.bf16.mxu0 %v3902_v38  ;;  %v3974_v57 = vpack.c.bf16 %v2781_v51, %v2777_v6  ;;  %v2785_v27 = vmul.f32 %v2637_v9, %v11233_v23  ;;  %v11235_v12 = vld [vmem:[#allocation100_spill] sm:$0xff]  ;;  %v11237_v33 = vld [vmem:[#allocation101_spill] sm:$0xff]  ;;  %v11239_v18 = vld [vmem:[#allocation247_spill] sm:$0xff] }
 0x3e6   :  { %v2645_v7 = vmax.f32 %v11228_v58, 0.0  ;;  %v2789_v30 = vmul.f32 %v2641_v61, %v11234_v49  ;;  %v2782_v32 = vmul.f32 %v11236_v41, %v11235_v12  ;;  %v11238_v10 = vld [vmem:[#allocation132_spill] sm:$0xff]  ;;  %v3904_v56 = vpack.c.bf16 %v2778_v46, %v2774_v1  ;;  %v11242_v51 = vld [vmem:[#allocation50_spill] sm:$0xff]  ;;  %v11244_v36 = vld [vmem:[#allocation285_spill] sm:$0xff] }
 0x3e7   :  { %v2649_v8 = vmax.f32 %v11232_v5, 0.0  ;;  %v2786_v16 = vmul.f32 %v11238_v10, %v11237_v33  ;;  %3973 = vmatpush1.bf16.msra.mxu1 %v3972_v29  ;;  %v3906_v21 = vpack.c.bf16 %v2787_v22, %v2783_v60  ;;  %v2791_v19 = vmul.f32 %v2643_v11, %v11239_v18  ;;  %v11240_v53 = vld [vmem:[#allocation248_spill] sm:$0xff]  ;;  %v2813_v60 = vld [vmem:[%s8764_s3 + $0x18] sm:$0xff]  ;;  %v11245_v2 = vld [vmem:[#allocation67_spill] sm:$0xff] }
 0x3e8   :  { %3975 = vmatprep.subr.bf16.mxu1 %v3974_v57  ;;  %v2795_v26 = vmul.f32 %v2647_v62, %v11240_v53  ;;  %v2784_v6 = vmul.f32 %v2636_v42, %v11241_v48  ;;  %v2788_v9 = vmul.f32 %v2640_v24, %v11242_v51  ;;  %3905 = vmatpush1.bf16.msra.mxu0 %v3904_v56  ;;  %v11243_v63 = vld [vmem:[#allocation284_spill] sm:$0xff]  ;;  %v2810_v42 = vld [vmem:[%s8764_s3] sm:$0xff]  ;;  %v2817_v22 = vld [vmem:[%s8764_s3 + $0x38] sm:$0xff]  ;;  %v11247_v13 = vmov 0.0  }
 0x3e9   :  { %v3976_v61 = vpack.c.bf16 %v2780_v15, %v2776_v3  ;;  %3907 = vmatprep.subr.bf16.mxu0 %v3906_v21  ;;  %v3978_v38 = vpack.c.bf16 %v2789_v30, %v2785_v27  ;;  %v2793_v47 = vmul.f32 %v2645_v7, %v11243_v63  ;;  %v2797_v58 = vmul.f32 %v2649_v8, %v11244_v36  ;;  %v2814_v62 = vld [vmem:[%s8764_s3 + $0x20] sm:$0xff]  ;;  %v2825_v39 = vld [vmem:[%s8764_s3 + $0x78] sm:$0xff]  ;;  %v2828_v44 = vld [vmem:[%s8764_s3 + $0x90] sm:$0xff]  ;;  %v3376_v30 = vpop.permute.xlu0 %3375 }
 0x3ea   :  { %v3908_v1 = vpack.c.bf16 %v2786_v16, %v2782_v32  ;;  %v3910_v46 = vpack.c.bf16 %v2795_v26, %v2791_v19  ;;  %v3980_v11 = vpack.c.bf16 %v2788_v9, %v2784_v6  ;;  %v2822_v54 = vld [vmem:[%s8764_s3 + $0x60] sm:$0xff]  ;;  %v2829_v52 = vld [vmem:[%s8764_s3 + $0x98] sm:$0xff]  ;;  %v2832_v37 = vld [vmem:[%s8764_s3 + $0xb0] sm:$0xff]  ;;  %v3381_v16 = vpop.permute.xlu1 %3380 }
 0x3eb   :  { %3977 = vmatpush1.bf16.msra.mxu1 %v3976_v61  ;;  %v3982_v24 = vpack.c.bf16 %v2797_v58, %v2793_v47  ;;  %v2826_v55 = vld [vmem:[%s8764_s3 + $0x80] sm:$0xff]  ;;  %v2824_v7 = vld [vmem:[%s8764_s3 + $0x70] sm:$0xff]  ;;  %v2827_v17 = vld [vmem:[%s8764_s3 + $0x88] sm:$0xff] }
 0x3ec   :  { %3979 = vmatprep.subr.bf16.mxu1 %v3978_v38  ;;  %3909 = vmatpush1.bf16.msra.mxu0 %v3908_v1  ;;  %v2834_v14 = vld [vmem:[%s8764_s3 + $0xc0] sm:$0xff]  ;;  %v2833_v59 = vld [vmem:[%s8764_s3 + $0xb8] sm:$0xff]  ;;  %v2836_v15 = vld [vmem:[%s8764_s3 + $0xd0] sm:$0xff] }
 0x3ed   :  { %3911 = vmatprep.subr.bf16.mxu0 %v3910_v46  ;;  %v2830_v3 = vld [vmem:[%s8764_s3 + $0xa0] sm:$0xff]  ;;  %v11248_v29 = vld [vmem:[#allocation53_spill] sm:$0xff]  ;;  %v11250_v57 = vld [vmem:[#allocation64_spill] sm:$0xff]  ;;  %v3386_v6 = vpop.permute.xlu0 %3385 }
 0x3ee   :  { %v3359_v25 = vsub.s32 0, %v11248_v29  ;;  %v11249_v5 = vld [vmem:[#allocation61_spill] sm:$0xff]  ;;  %v11251_v27 = vld [vmem:[#allocation56_spill] sm:$0xff]  ;;  %v11252_v12 = vld [vmem:[#allocation70_spill] sm:$0xff] }
 0x3ef   :  { %3981 = vmatpush1.bf16.msra.mxu1 %v3980_v11  ;;  %2943 = vmatmul.mubr.f32.vlgmr.msra.gmra.mrb[50].mxu0 %v2810_v42 }
 0x3f0   :  { %3983 = vmatprep.subr.bf16.mxu1 %v3982_v24  ;;  %3913 = vmatpush1.bf16.msra.mxu0 %v3912_v28  ;;  %v2819_v28 = vld [vmem:[%s8764_s3 + $0x48] sm:$0xff]  ;;  %v3360_v8 = vrot.slane %v11249_v5, %v3359_v25  ;;  %v3364_v23 = vrot.slane %v11250_v57, %v3359_v25  ;;  %v3368_v49 = vrot.slane %v11251_v27, %v3359_v25 }
 0x3f1   :  { %2948 = vmatprep.mubr.f32.mxu0 %v2814_v62  ;;  %3915 = vmatprep.subr.bf16.mxu0 %v3914_v20  ;;  %v2835_v20 = vld [vmem:[%s8764_s3 + $0xc8] sm:$0xff]  ;;  %v3372_v41 = vrot.slane %v11252_v12, %v3359_v25 }
 0x3f2   :  { %3181 = vmatmul.mubr.f32.vlgmr.msra.gmra.mrb[50].mxu1 %v2810_v42  ;;  %v3388_v32 = vsub.f32 %v3360_v8, %v3376_v30  ;;  %v3389_v33 = vsub.f32 %v3364_v23, %v3376_v30  ;;  %v3390_v10 = vsub.f32 %v3368_v49, %v3376_v30  ;;  %v3392_v18 = vsub.f32 %v3360_v8, %v3381_v16 }
 0x3f3   :  { %3985 = vmatpush1.bf16.msra.mxu1 %v3984_v4  ;;  %3186 = vmatprep.mubr.f32.mxu1 %v2814_v62  ;;  %v11246_v4 = vld [vmem:[#allocation71_spill] sm:$0xff]  ;;  %v3391_v56 = vsub.f32 %v3372_v41, %v3376_v30  ;;  %v3393_v53 = vsub.f32 %v3364_v23, %v3381_v16  ;;  %v3394_v48 = vsub.f32 %v3368_v49, %v3381_v16 }
 0x3f4   :  { %3987 = vmatprep.subr.bf16.mxu1 %v3986_v45  ;;  %2949 = vmatmul.mubr.f32.gmra.mrb[52].mxu0 %v2813_v60  ;;  %v2821_v45 = vld [vmem:[%s8764_s3 + $0x58] sm:$0xff]  ;;  %v3400_v21 = vand.u32 2147483647, %v3388_v32  ;;  %v3401_v19 = vand.u32 2147483647, %v3389_v33  ;;  %v3395_v9 = vsub.f32 %v3372_v41, %v3381_v16  ;;  %v3396_v63 = vsub.f32 %v3360_v8, %v3386_v6 }
 0x3f5   :  { %3917 = vmatpush1.bf16.msra.mxu0 %v3916_v40  ;;  %2954 = vmatprep.mubr.f32.mxu0 %v2817_v22  ;;  %v2831_v40 = vld [vmem:[%s8764_s3 + $0xa8] sm:$0xff]  ;;  %v3402_v26 = vand.u32 2147483647, %v3390_v10  ;;  %v3403_v51 = vand.u32 2147483647, %v3391_v56  ;;  %v3397_v58 = vsub.f32 %v3364_v23, %v3386_v6  ;;  %v3398_v11 = vsub.f32 %v3368_v49, %v3386_v6 }
 0x3f6   :  { %3187 = vmatmul.mubr.f32.gmra.mrb[52].mxu1 %v2813_v60  ;;  %3728 = vmatprep.subr.msk.mxu0 %vm2865_vm2, %v8386_v50  ;;  %v2815_v50 = vld [vmem:[%s8764_s3 + $0x28] sm:$0xff]  ;;  %v3412_v61 = vsub.f32 1.0, %v3400_v21  ;;  %v3404_v38 = vand.u32 2147483647, %v3392_v18  ;;  %v3413_v47 = vsub.f32 1.0, %v3401_v19  ;;  %v3399_v62 = vsub.f32 %v3372_v41, %v3386_v6 }
 0x3f7   :  { %3989 = vmatpush1.bf16.msra.mxu1 %v3988_v34  ;;  %3192 = vmatprep.mubr.f32.mxu1 %v2817_v22  ;;  %v2812_v34 = vld [vmem:[%s8764_s3 + $0x10] sm:$0xff]  ;;  %v3405_v36 = vand.u32 2147483647, %v3393_v53  ;;  %v3414_v1 = vsub.f32 1.0, %v3402_v26  ;;  %v3406_v46 = vand.u32 2147483647, %v3394_v48 }
 0x3f8   :  { %3739 = vmatprep.subr.msk.mxu1 %vm2865_vm2, %v8389_v43  ;;  %2955 = vmatmul.mubr.f32.gmra.mrb[54].mxu0 %v2816_v0  ;;  %v2818_v43 = vld [vmem:[%s8764_s3 + $0x40] sm:$0xff]  ;;  %v3415_v42 = vsub.f32 1.0, %v3403_v51  ;;  %v3407_v24 = vand.u32 2147483647, %v3395_v9  ;;  %v8666_v60 = vmax.f32 %v3412_v61, 0.0  ;;  %v3416_v22 = vsub.f32 1.0, %v3404_v38 }
 0x3f9   :  { %3729 = vmatpush1.msk.msra.mxu0 %vm2865_vm2, %v11245_v2  ;;  %2960 = vmatprep.mubr.f32.mxu0 %v2820_v31  ;;  %v8668_v2 = vmax.f32 %v3413_v47, 0.0  ;;  %v4060_v51 = vmov 1966171168   ;;  %s4061_s3 = smov [#allocation2]  }
 0x3fa   :  { %3193 = vmatmul.mubr.f32.gmra.mrb[54].mxu1 %v2816_v0  ;;  %v3408_v0 = vand.u32 2147483647, %v3396_v63  ;;  %v3487_v9 = vunpack.c.l.s4 %v4060_v51  ;;  %s3670_s11 = sshll.u32 %s4061_s3, 4  ;;  %s3671_s11 = int_to_ptr.vmem [resolvable:$true] %s3670_s11 }
 0x3fb   :  { %3740 = vmatpush1.msk.msra.mxu1 %vm2865_vm2, %v11246_v4  ;;  %3198 = vmatprep.mubr.f32.mxu1 %v2820_v31  ;;  %s4034_s12 = scalar_lea.vmem %s3671_s11, 256  ;;  %p4039_p1 = scmp.lt.s32.totalorder %s3671_s11, %s3671_s11 }
 0x3fc   :  { %2961 = vmatmul.mubr.f32.gmra.mrb[56].mxu0 %v2819_v28  ;;  %p4035_p0 = scmp.ne.s32.totalorder %s3671_s11, %s4034_s12  ;;  %p4040_p2 = scmp.lt.s32.totalorder %s4034_s12, %s4034_s12 }
 0x3fd   :  { %2966 = vmatprep.mubr.f32.mxu0 %v2823_v35 }
 0x3fe   :  { %3199 = vmatmul.mubr.f32.gmra.mrb[56].mxu1 %v2819_v28  ;;  %v3417_v28 = vsub.f32 1.0, %v3405_v36  ;;  %p4041_p3 = por %p4040_p2, %p4039_p1 }
 0x3ff   :  { %3204 = vmatprep.mubr.f32.mxu1 %v2823_v35  ;;  %v3409_v35 = vand.u32 2147483647, %v3397_v58 }
 0x400   :  { %2967 = vmatmul.mubr.f32.gmra.mrb[58].mxu0 %v2822_v54  ;;  %p4042_p4 = pnand %p4041_p3, %p4035_p0 }
 0x401   :  { %2972 = vmatprep.mubr.f32.mxu0 %v2826_v55 }
 0x402   :  { %3205 = vmatmul.mubr.f32.gmra.mrb[58].mxu1 %v2822_v54  ;;  %v8671_v54 = vmax.f32 %v3414_v1, 0.0 }
 0x403   :  { %3210 = vmatprep.mubr.f32.mxu1 %v2826_v55 }
 0x404   :  { %2973 = vmatmul.mubr.f32.gmra.mrb[60].mxu0 %v2825_v39 }
 0x405   :  { %2978 = vmatprep.mubr.f32.mxu0 %v2829_v52 }
 0x406   :  { %3211 = vmatmul.mubr.f32.gmra.mrb[60].mxu1 %v2825_v39  ;;  %v3418_v39 = vsub.f32 1.0, %v3406_v46 }
 0x407   :  { %3216 = vmatprep.mubr.f32.mxu1 %v2829_v52  ;;  %v3410_v52 = vand.u32 2147483647, %v3398_v11 }
 0x408   :  { %2979 = vmatmul.mubr.f32.gmra.mrb[62].mxu0 %v2828_v44 }
 0x409   :  { %2984 = vmatprep.mubr.f32.mxu0 %v2832_v37  ;;  %v3422_v5 = vsub.f32 1.0, %v3410_v52 }
 0x40a   :  { %3217 = vmatmul.mubr.f32.gmra.mrb[62].mxu1 %v2828_v44 }
 0x40b   :  { %3222 = vmatprep.mubr.f32.mxu1 %v2832_v37  ;;  %v8695_v18 = vmax.f32 %v3422_v5, 0.0 }
 0x40c   :  { %2985 = vmatmul.mubr.f32.gmra.mrb[64].mxu0 %v2831_v40 }
 0x40d   :  { %2990 = vmatprep.mubr.f32.mxu0 %v2835_v20 }
 0x40e   :  { %3223 = vmatmul.mubr.f32.gmra.mrb[64].mxu1 %v2831_v40  ;;  %v8674_v40 = vmax.f32 %v3415_v42, 0.0 }
 0x40f   :  { %3228 = vmatprep.mubr.f32.mxu1 %v2835_v20  ;;  %v3419_v20 = vsub.f32 1.0, %v3407_v24 }
 0x410   :  { %2991 = vmatmul.mubr.f32.gmra.mrb[66].mxu0 %v2834_v14 }
 0x411   :  { %3061 = vmatprep.mubr.f32.mxu0 %v11247_v13  ;;  %v8686_v23 = vmax.f32 %v3419_v20, 0.0 }
 0x412   :  { %3229 = vmatmul.mubr.f32.gmra.mrb[66].mxu1 %v2834_v14  ;;  %v3411_v14 = vand.u32 2147483647, %v3399_v62 }
 0x413   :  { %3299 = vmatprep.mubr.f32.mxu1 %v11247_v13 }
 0x414   :  { %3730 = vmatmul.mubr.msk.f32.vlgmr.msra.gmra.mrb[50].mxu0 %vm2837_vm3, %v2812_v34  ;;  %v3423_v27 = vsub.f32 1.0, %v3411_v14 }
 0x415   :  { %3067 = vmatprep.mubr.f32.mxu0 %v11247_v13 }
 0x416   :  { %3741 = vmatmul.mubr.msk.f32.vlgmr.msra.gmra.mrb[50].mxu1 %vm2837_vm3, %v2812_v34  ;;  %v8698_v6 = vmax.f32 %v3423_v27, 0.0 }
 0x417   :  { %3305 = vmatprep.mubr.f32.mxu1 %v11247_v13 }
 0x418   :  { %3731 = vmatmul.mubr.msk.f32.gmra.mrb[52].mxu0 %vm2837_vm3, %v2815_v50 }
 0x419   :  { %3073 = vmatprep.mubr.f32.mxu0 %v11247_v13 }
 0x41a   :  { %3742 = vmatmul.mubr.msk.f32.gmra.mrb[52].mxu1 %vm2837_vm3, %v2815_v50  ;;  %v8677_v50 = vmax.f32 %v3416_v22, 0.0 }
 0x41b   :  { %3311 = vmatprep.mubr.f32.mxu1 %v11247_v13 }
 0x41c   :  { %3732 = vmatmul.mubr.msk.f32.gmra.mrb[54].mxu0 %vm2837_vm3, %v2818_v43 }
 0x41d   :  { %3079 = vmatprep.mubr.f32.mxu0 %v11247_v13 }
 0x41e   :  { %3743 = vmatmul.mubr.msk.f32.gmra.mrb[54].mxu1 %vm2837_vm3, %v2818_v43  ;;  %v3420_v43 = vsub.f32 1.0, %v3408_v0 }
 0x41f   :  { %3317 = vmatprep.mubr.f32.mxu1 %v11247_v13 }
 0x420   :  { %3733 = vmatmul.mubr.msk.f32.gmra.mrb[56].mxu0 %vm2837_vm3, %v2821_v45  ;;  %v8689_v41 = vmax.f32 %v3420_v43, 0.0 }
 0x421   :  { %3085 = vmatprep.mubr.f32.mxu0 %v11247_v13 }
 0x422   :  { %3744 = vmatmul.mubr.msk.f32.gmra.mrb[56].mxu1 %vm2837_vm3, %v2821_v45 }
 0x423   :  { %3323 = vmatprep.mubr.f32.mxu1 %v11247_v13 }
 0x424   :  { %3734 = vmatmul.mubr.msk.f32.gmra.mrb[58].mxu0 %vm2837_vm3, %v2824_v7 }
 0x425   :  { %3091 = vmatprep.mubr.f32.mxu0 %v11247_v13 }
 0x426   :  { %3745 = vmatmul.mubr.msk.f32.gmra.mrb[58].mxu1 %vm2837_vm3, %v2824_v7 }
 0x427   :  { %3329 = vmatprep.mubr.f32.mxu1 %v11247_v13 }
 0x428   :  { %3735 = vmatmul.mubr.msk.f32.gmra.mrb[60].mxu0 %vm2837_vm3, %v2827_v17 }
 0x429   :  { %3097 = vmatprep.mubr.f32.mxu0 %v11247_v13 }
 0x42a   :  { %3746 = vmatmul.mubr.msk.f32.gmra.mrb[60].mxu1 %vm2837_vm3, %v2827_v17  ;;  %v8680_v17 = vmax.f32 %v3417_v28, 0.0 }
 0x42b   :  { %3335 = vmatprep.mubr.f32.mxu1 %v11247_v13 }
 0x42c   :  { %3736 = vmatmul.mubr.msk.f32.gmra.mrb[62].mxu0 %vm2837_vm3, %v2830_v3 }
 0x42d   :  { %3103 = vmatprep.mubr.f32.mxu0 %v11247_v13 }
 0x42e   :  { %3747 = vmatmul.mubr.msk.f32.gmra.mrb[62].mxu1 %vm2837_vm3, %v2830_v3  ;;  %v3421_v3 = vsub.f32 1.0, %v3409_v35 }
 0x42f   :  { %3341 = vmatprep.mubr.f32.mxu1 %v11247_v13 }
 0x430   :  { %3737 = vmatmul.mubr.msk.f32.gmra.mrb[64].mxu0 %vm2837_vm3, %v2833_v59  ;;  %v8692_v16 = vmax.f32 %v3421_v3, 0.0 }
 0x431   :  { %3109 = vmatprep.mubr.f32.mxu0 %v11247_v13 }
 0x432   :  { %3748 = vmatmul.mubr.msk.f32.gmra.mrb[64].mxu1 %vm2837_vm3, %v2833_v59 }
 0x433   :  { %3347 = vmatprep.mubr.f32.mxu1 %v11247_v13 }
 0x434   :  { %3738 = vmatmul.mubr.msk.f32.gmra.mrb[66].mxu0 %vm2837_vm3, %v2836_v15 }
 0x436   :  { %3749 = vmatmul.mubr.msk.f32.gmra.mrb[66].mxu1 %vm2837_vm3, %v2836_v15  ;;  %v8683_v15 = vmax.f32 %v3418_v39, 0.0 }
 0x4e7   :  { %v3063_v31 = vpop.f32.mrb[50].mxu0 }
 0x4e8   :  { %v3436_v4 = vmul.f32 %v8666_v60, %v3063_v31  ;;  %v3065_v55 = vpop.f32.mrb[51].mxu0  ;;  %v3488_v31 = vunpack.c.0.s8 %v3487_v9 }
 0x4e9   :  { %v3301_v44 = vpop.f32.mrb[50].mxu1  ;;  %v3437_v37 = vmul.f32 %v8668_v2, %v3065_v55 }
 0x4ea   :  { %v3438_v13 = vmul.f32 %v8671_v54, %v3301_v44  ;;  %v3303_v34 = vpop.f32.mrb[51].mxu1 }
 0x4eb   :  { %v3439_v45 = vmul.f32 %v8674_v40, %v3303_v34  ;;  %v3069_v7 = vpop.f32.mrb[52].mxu0 }
 0x4ec   :  { %v3440_v59 = vmul.f32 %v8677_v50, %v3069_v7  ;;  %v3071_v25 = vpop.f32.mrb[53].mxu0 }
 0x4ed   :  { %v3307_v8 = vpop.f32.mrb[52].mxu1  ;;  %v3441_v57 = vmul.f32 %v8680_v17, %v3071_v25 }
 0x4ee   :  { %v3448_v49 = vadd.f32 %v3440_v59, %v3436_v4  ;;  %v3442_v30 = vmul.f32 %v8683_v15, %v3307_v8  ;;  %v3309_v12 = vpop.f32.mrb[53].mxu1  ;;  %v8709_v59 = vsub.s32 %v3488_v31, %v11248_v29 }
 0x4ef   :  { %v3456_v32 = vadd.f32 %v3441_v57, %v3437_v37  ;;  %v3443_v33 = vmul.f32 %v8686_v23, %v3309_v12  ;;  %v3075_v10 = vpop.f32.mrb[54].mxu0 }
 0x4f0   :  { %v3464_v56 = vadd.f32 %v3442_v30, %v3438_v13  ;;  %v3444_v21 = vmul.f32 %v8689_v41, %v3075_v10  ;;  %v3077_v19 = vpop.f32.mrb[55].mxu0 }
 0x4f1   :  { %v3472_v53 = vadd.f32 %v3443_v33, %v3439_v45  ;;  %v3313_v26 = vpop.f32.mrb[54].mxu1  ;;  %v3445_v48 = vmul.f32 %v8692_v16, %v3077_v19 }
 0x4f2   :  { %v3449_v61 = vadd.f32 %v3448_v49, %v3444_v21  ;;  %v3446_v38 = vmul.f32 %v8695_v18, %v3313_v26  ;;  %v3315_v63 = vpop.f32.mrb[55].mxu1 }
 0x4f3   :  { %v3457_v47 = vadd.f32 %v3456_v32, %v3445_v48  ;;  %v3447_v36 = vmul.f32 %v8698_v6, %v3315_v63  ;;  %v3081_v58 = vpop.f32.mrb[56].mxu0 }
 0x4f4   :  { %v3450_v1 = vrot.slane %v3449_v61, 4  ;;  %v3465_v46 = vadd.f32 %v3464_v56, %v3446_v38  ;;  %v3514_v11 = vmul.f32 %v8666_v60, %v3081_v58  ;;  %v3083_v42 = vpop.f32.mrb[57].mxu0 }
 0x4f5   :  { %v3458_v24 = vrot.slane %v3457_v47, 4  ;;  %v3473_v62 = vadd.f32 %v3472_v53, %v3447_v36  ;;  %v3319_v22 = vpop.f32.mrb[56].mxu1  ;;  %v3515_v0 = vmul.f32 %v8668_v2, %v3083_v42 }
 0x4f6   :  { %v3451_v28 = vadd.f32 %v3450_v1, %v3449_v61  ;;  %v3466_v35 = vrot.slane %v3465_v46, 4  ;;  %v3516_v4 = vmul.f32 %v8671_v54, %v3319_v22  ;;  %v3321_v55 = vpop.f32.mrb[57].mxu1 }
 0x4f7   :  { %v3459_v39 = vadd.f32 %v3458_v24, %v3457_v47  ;;  %v3474_v52 = vrot.slane %v3473_v62, 4  ;;  %v3517_v44 = vmul.f32 %v8674_v40, %v3321_v55  ;;  %v3087_v37 = vpop.f32.mrb[58].mxu0 }
 0x4f8   :  { %v3452_v20 = vrot.slane %v3451_v28, 2  ;;  %v3467_v14 = vadd.f32 %v3466_v35, %v3465_v46  ;;  %v3518_v13 = vmul.f32 %v8677_v50, %v3087_v37  ;;  %v3089_v34 = vpop.f32.mrb[59].mxu0 }
 0x4f9   :  { %v3460_v43 = vrot.slane %v3459_v39, 2  ;;  %v3475_v45 = vadd.f32 %v3474_v52, %v3473_v62  ;;  %v3325_v7 = vpop.f32.mrb[58].mxu1  ;;  %v3519_v3 = vmul.f32 %v8680_v17, %v3089_v34 }
 0x4fa   :  { %v3453_v25 = vadd.f32 %v3452_v20, %v3451_v28  ;;  %v3468_v5 = vrot.slane %v3467_v14, 2  ;;  %v3526_v8 = vadd.f32 %v3518_v13, %v3514_v11  ;;  %v3520_v57 = vmul.f32 %v8683_v15, %v3325_v7  ;;  %v3327_v27 = vpop.f32.mrb[59].mxu1 }
 0x4fb   :  { %v3461_v49 = vadd.f32 %v3460_v43, %v3459_v39  ;;  %v3476_v30 = vrot.slane %v3475_v45, 2  ;;  %v3534_v12 = vadd.f32 %v3519_v3, %v3515_v0  ;;  %v3521_v32 = vmul.f32 %v8686_v23, %v3327_v27  ;;  %v3093_v33 = vpop.f32.mrb[60].mxu0 }
 0x4fc   :  { %v3454_v10 = vrot.slane %v3453_v25, 1  ;;  %v3469_v56 = vadd.f32 %v3468_v5, %v3467_v14  ;;  %v3542_v21 = vadd.f32 %v3520_v57, %v3516_v4  ;;  %v3522_v19 = vmul.f32 %v8689_v41, %v3093_v33  ;;  %v3095_v53 = vpop.f32.mrb[61].mxu0 }
 0x4fd   :  { %v3462_v29 = vrot.slane %v3461_v49, 1  ;;  %v3477_v26 = vadd.f32 %v3476_v30, %v3475_v45  ;;  %v3550_v48 = vadd.f32 %v3521_v32, %v3517_v44  ;;  %v3331_v51 = vpop.f32.mrb[60].mxu1  ;;  %v3523_v9 = vmul.f32 %v8692_v16, %v3095_v53 }
 0x4fe   :  { %v3455_v61 = vadd.f32 %v3454_v10, %v3453_v25  ;;  %v3470_v38 = vrot.slane %v3469_v56, 1  ;;  %v3527_v63 = vadd.f32 %v3526_v8, %v3522_v19  ;;  %v3524_v47 = vmul.f32 %v8695_v18, %v3331_v51  ;;  %v3333_v36 = vpop.f32.mrb[61].mxu1 }
 0x4ff   :  { %v3463_v58 = vadd.f32 %v3462_v29, %v3461_v49  ;;  %v3478_v1 = vrot.slane %v3477_v26, 1  ;;  %v3535_v46 = vadd.f32 %v3534_v12, %v3523_v9  ;;  %v3525_v11 = vmul.f32 %v8698_v6, %v3333_v36  ;;  %v3099_v42 = vpop.f32.mrb[62].mxu0 }
 0x500   :  { %v3471_v24 = vadd.f32 %v3470_v38, %v3469_v56  ;;  %v3528_v62 = vrot.slane %v3527_v63, 4  ;;  %v3543_v22 = vadd.f32 %v3542_v21, %v3524_v47  ;;  %v3589_v0 = vmul.f32 %v8666_v60, %v3099_v42  ;;  %v3101_v31 = vpop.f32.mrb[63].mxu0 }
 0x501   :  { %v3484_v28 = vcombine.low %v3455_v61, %v3463_v58  ;;  %v3479_v35 = vadd.f32 %v3478_v1, %v3477_v26  ;;  %v3536_v4 = vrot.slane %v3535_v46, 4  ;;  %v3551_v55 = vadd.f32 %v3550_v48, %v3525_v11  ;;  %v3337_v39 = vpop.f32.mrb[62].mxu1 }
 0x502   :  { %v3529_v52 = vadd.f32 %v3528_v62, %v3527_v63  ;;  %v3544_v44 = vrot.slane %v3543_v22, 4  ;;  %v3591_v37 = vmul.f32 %v8671_v54, %v3337_v39  ;;  %v3590_v20 = vmul.f32 %v8668_v2, %v3101_v31  ;;  %v3339_v14 = vpop.f32.mrb[63].mxu1 }
 0x503   :  { %v3485_v13 = vcombine.low %v3471_v24, %v3479_v35  ;;  %v3537_v34 = vadd.f32 %v3536_v4, %v3535_v46  ;;  %v3552_v43 = vrot.slane %v3551_v55, 4  ;;  %v3592_v45 = vmul.f32 %v8674_v40, %v3339_v14  ;;  %v3105_v7 = vpop.f32.mrb[64].mxu0 }
 0x504   :  { %v3530_v60 = vrot.slane %v3529_v52, 2  ;;  %v3545_v3 = vadd.f32 %v3544_v44, %v3543_v22  ;;  %v3593_v25 = vmul.f32 %v8677_v50, %v3105_v7  ;;  %v3107_v5 = vpop.f32.mrb[65].mxu0  ;;  %v3492_v8 = vrot.slane %v3484_v28, %v8709_v59 }
 0x505   :  { %v3538_v57 = vrot.slane %v3537_v34, 2  ;;  %v3553_v27 = vadd.f32 %v3552_v43, %v3551_v55  ;;  %v3343_v49 = vpop.f32.mrb[64].mxu1  ;;  %v3594_v54 = vmul.f32 %v8680_v17, %v3107_v5  ;;  %v3499_v2 = vrot.slane %v3485_v13, %v8709_v59 }
 0x506   :  { %v11253_v30 = vlaneseq  ;;  %v3531_v40 = vadd.f32 %v3530_v60, %v3529_v52  ;;  %v3546_v32 = vrot.slane %v3545_v3, 2  ;;  %v3601_v33 = vadd.f32 %v3593_v25, %v3589_v0  ;;  %v3345_v10 = vpop.f32.mrb[65].mxu1 }
 0x507   :  { %v3595_v50 = vmul.f32 %v8683_v15, %v3343_v49  ;;  %v3539_v56 = vadd.f32 %v3538_v57, %v3537_v34  ;;  %v3554_v21 = vrot.slane %v3553_v27, 2  ;;  %v3609_v19 = vadd.f32 %v3594_v54, %v3590_v20  ;;  %v3111_v29 = vpop.f32.mrb[66].mxu0 }
 0x508   :  { %vm8726_vm4 = vcmp.lt.s32.totalorder %v11253_v30, 512  ;;  %v3596_v53 = vmul.f32 %v8686_v23, %v3345_v10  ;;  %v3532_v17 = vrot.slane %v3531_v40, 1  ;;  %v3547_v26 = vadd.f32 %v3546_v32, %v3545_v3  ;;  %v3113_v9 = vpop.f32.mrb[67].mxu0 }
 0x509   :  { %v3617_v48 = vadd.f32 %v3595_v50, %v3591_v37  ;;  %v3597_v51 = vmul.f32 %v8689_v41, %v3111_v29  ;;  %v3540_v61 = vrot.slane %v3539_v56, 1  ;;  %v3555_v38 = vadd.f32 %v3554_v21, %v3553_v27  ;;  %v3349_v47 = vpop.f32.mrb[66].mxu1 }
 0x50a   :  { %v3625_v63 = vadd.f32 %v3596_v53, %v3592_v45  ;;  %v3598_v36 = vmul.f32 %v8692_v16, %v3113_v9  ;;  %v3533_v15 = vadd.f32 %v3532_v17, %v3531_v40  ;;  %v3548_v58 = vrot.slane %v3547_v26, 1  ;;  %v3351_v11 = vpop.f32.mrb[67].mxu1 }
 0x50b   :  { %v3602_v1 = vadd.f32 %v3601_v33, %v3597_v51  ;;  %v3599_v46 = vmul.f32 %v8695_v18, %v3349_v47  ;;  %v3541_v23 = vadd.f32 %v3540_v61, %v3539_v56  ;;  %v3556_v42 = vrot.slane %v3555_v38, 1 }
 0x50c   :  { %v3610_v24 = vadd.f32 %v3609_v19, %v3598_v36  ;;  %v3600_v62 = vmul.f32 %v8698_v6, %v3351_v11  ;;  %v3549_v22 = vadd.f32 %v3548_v58, %v3547_v26  ;;  %v3500_v31 = vcombine.low %v3492_v8, %v3499_v2 }
 0x50d   :  { %v3603_v41 = vrot.slane %v3602_v1, 4  ;;  %v3618_v0 = vadd.f32 %v3617_v48, %v3599_v46  ;;  %v3562_v28 = vcombine.low %v3533_v15, %v3541_v23  ;;  %v3557_v35 = vadd.f32 %v3556_v42, %v3555_v38 }
 0x50e   :  { %v3611_v4 = vrot.slane %v3610_v24, 4  ;;  %v3626_v55 = vadd.f32 %v3625_v63, %v3600_v62  ;;  %v3507_v52 = vrot.slane %v3500_v31, %v8709_v59 }
 0x50f   :  { %v3604_v16 = vadd.f32 %v3603_v41, %v3602_v1  ;;  %v3619_v39 = vrot.slane %v3618_v0, 4  ;;  %v3563_v44 = vcombine.low %v3549_v22, %v3557_v35  ;;  %v3570_v20 = vrot.slane %v3562_v28, %v8709_v59 }
 0x510   :  { %v3612_v18 = vadd.f32 %v3611_v4, %v3610_v24  ;;  %v3627_v37 = vrot.slane %v3626_v55, 4  ;;  %3513 = vst.msk [vmem:[#allocation2] ss:$4 sm:$0xf] %vm8726_vm4, %v3507_v52 }
 0x511   :  { %v3605_v14 = vrot.slane %v3604_v16, 2  ;;  %v3620_v13 = vadd.f32 %v3619_v39, %v3618_v0  ;;  %v3577_v43 = vrot.slane %v3563_v44, %v8709_v59 }
 0x512   :  { %v3613_v6 = vrot.slane %v3612_v18, 2  ;;  %v3628_v34 = vadd.f32 %v3627_v37, %v3626_v55 }
 0x513   :  { %v3606_v45 = vadd.f32 %v3605_v14, %v3604_v16  ;;  %v3621_v7 = vrot.slane %v3620_v13, 2  ;;  %v3578_v25 = vcombine.low %v3570_v20, %v3577_v43 }
 0x514   :  { %v3614_v60 = vadd.f32 %v3613_v6, %v3612_v18  ;;  %v3629_v3 = vrot.slane %v3628_v34, 2 }
 0x515   :  { %v3607_v5 = vrot.slane %v3606_v45, 1  ;;  %v3622_v8 = vadd.f32 %v3621_v7, %v3620_v13  ;;  %v3585_v49 = vrot.slane %v3578_v25, %v8709_v59 }
 0x516   :  { %v3615_v57 = vrot.slane %v3614_v60, 1  ;;  %v3630_v27 = vadd.f32 %v3629_v3, %v3628_v34 }
 0x517   :  { %v3608_v54 = vadd.f32 %v3607_v5, %v3606_v45  ;;  %v3623_v2 = vrot.slane %v3622_v8, 1  ;;  %3588 = vst.msk [vmem:[#allocation2 + $0x1] ss:$4 sm:$0xf] %vm8726_vm4, %v3585_v49 }
 0x518   :  { %v3616_v30 = vadd.f32 %v3615_v57, %v3614_v60  ;;  %v3631_v40 = vrot.slane %v3630_v27, 1 }
 0x519   :  { %v3624_v32 = vadd.f32 %v3623_v2, %v3622_v8 }
 0x51a   :  { %v3637_v33 = vcombine.low %v3608_v54, %v3616_v30  ;;  %v3632_v50 = vadd.f32 %v3631_v40, %v3630_v27 }
 0x51c   :  { %v3638_v10 = vcombine.low %v3624_v32, %v3632_v50  ;;  %v3645_v56 = vrot.slane %v3637_v33, %v8709_v59 }
 0x51e   :  { %v3652_v21 = vrot.slane %v3638_v10, %v8709_v59 }
 0x520   :  { %v3653_v19 = vcombine.low %v3645_v56, %v3652_v21 }
 0x522   :  { %v3660_v53 = vrot.slane %v3653_v19, %v8709_v59 }
 0x524   :  { %3663 = vst.msk [vmem:[#allocation2 + $0x2] ss:$4 sm:$0xf] %vm8726_vm4, %v3660_v53 }
 0x525   :  { %4045 = shalt.err (!%p4042_p4)
}
 0x526   :  { %s4046_s2 = scalar_lea.hbm %s8768_s7, 256 }
 0x527   :  { %p4047_p5 = scmp.ne.s32.totalorder %s8768_s7, %s4046_s2  ;;  %p4050_p6 = scmp.lt.u32.totalorder %s4046_s2, %s8768_s7 }
 0x529   :  { %p4052_p7 = pnand %p4050_p6, %p4047_p5 }
 0x52b   :  { %4055 = shalt.err (!%p4052_p7)
}
 0x52c   :  { %3673 = dma.vmem_to_hbm [thread:$0]  %s3671_s11, 256, %s8768_s7, [#allocation3]  }
 0x52d   :  { %4056 = dma.done.wait [#allocation3], 256  }
 0x52e   :  { %4057 = vsyncadd [#allocation3], 4294967040 }
 0x52f   :  { %3677 = vsyncpa [#allocation3], 1 }

</bundles_post_ra>
